<compile_context>
chip_gen: v6e
topology: v6e:2x2x1
jax: 0.10.0
libtpu: 0.0.40
codegen_flags: <defaults>
</compile_context>

<pallas_src>
import functools
import math

import jax
import jax.numpy as jnp
from jax.experimental import pallas as pl
from jax.experimental.pallas import tpu as pltpu


def _spatial_attention_kernel(x_ref, w_ref, o_ref, sum_ref, max_ref, *,
                              K, H, W, C, CC):
    # x_ref:   (Nb, Cb, HW)  VMEM   input block (lane-dense spatial axis)
    # w_ref:   (2*K*K,)      SMEM   conv weight flattened [channel, ky, kx]
    # o_ref:   (1, Nb, HW)   VMEM   output block
    # sum_ref: (Nb, HW) f32  VMEM   running channel sum (across C grid steps)
    # max_ref: (Nb, HW) f32  VMEM   running channel max (across C grid steps)
    Nb, Cb, HW = x_ref.shape
    P = K // 2
    c_step = pl.program_id(1)

    @pl.when(c_step == 0)
    def _init():
        sum_ref[...] = jnp.zeros_like(sum_ref)
        max_ref[...] = jnp.full_like(max_ref, -jnp.inf)

    # Fused streaming reduction over channels: f32 sum + running max, read in
    # bounded chunks so live values stay near the vreg file instead of
    # materializing the whole (Nb, Cb, HW) tile in f32.
    nchunks = Cb // CC
    if nchunks == 1:
        xc = x_ref[...].astype(jnp.float32)                    # (Nb, Cb, HW)
        s = sum_ref[...] + jnp.sum(xc, axis=1)
        m = jnp.maximum(max_ref[...], jnp.max(xc, axis=1))
    else:
        def body(i, carry):
            s, m = carry
            c0 = pl.multiple_of(i * CC, CC)
            xc = x_ref[:, pl.ds(c0, CC), :].astype(jnp.float32)  # (Nb, CC, HW)
            return (s + jnp.sum(xc, axis=1),
                    jnp.maximum(m, jnp.max(xc, axis=1)))

        s, m = jax.lax.fori_loop(0, nchunks, body,
                                 (sum_ref[...], max_ref[...]),
                                 unroll=nchunks if nchunks <= 8 else 8)
    sum_ref[...] = s
    max_ref[...] = m

    @pl.when(c_step == pl.num_programs(1) - 1)
    def _finalize():
        avg = s * jnp.float32(1.0 / C)                          # (Nb, HW) f32
        mx = m

        # 'same' KxK conv on the flattened pooled maps.  A single zero pad of
        # width P*W + P on each side makes every tap a static lane slice; rows
        # that spill outside the image land in the zero pad, columns that spill
        # are zeroed by a per-kx mask on the output position.
        pad = P * W + P
        z = jnp.zeros((Nb, pad), jnp.float32)
        avg_p = jnp.concatenate([z, avg, z], axis=1)            # (Nb, HW + 2*pad)
        mx_p = jnp.concatenate([z, mx, z], axis=1)
        col = jax.lax.broadcasted_iota(jnp.int32, (1, HW), 1) % W

        acc = jnp.zeros((Nb, HW), jnp.float32)
        for kx in range(K):
            dx = kx - P
            acc_k = jnp.zeros((Nb, HW), jnp.float32)
            for ky in range(K):
                off = pad + (ky - P) * W + dx
                w_a = w_ref[ky * K + kx]                        # avg-channel tap
                w_m = w_ref[K * K + ky * K + kx]                # max-channel tap
                acc_k = (acc_k
                         + w_a * avg_p[:, off:off + HW]
                         + w_m * mx_p[:, off:off + HW])
            if dx == 0:
                acc = acc + acc_k
            else:
                ok = (col >= -dx) & (col < W - dx)              # valid output cols
                acc = acc + jnp.where(ok, acc_k, 0.0)

        o_ref[0] = jax.nn.sigmoid(acc).astype(o_ref.dtype)      # (Nb, HW), lane-dense


def _choose_c_block(C, HW, itemsize, target_bytes):
    """Split C across the grid only if a single full-C image block is too big."""
    if C * HW * itemsize <= target_bytes or C <= 8:
        return C
    cap = max(8, int(target_bytes // (HW * itemsize)))
    d = min(C, (cap // 8) * 8)                 # Cb must be %8 or == C (tiling rule)
    while d >= 8:
        if C % d == 0:
            return d
        d -= 8
    return C


def _choose_batch_block(N, per_item_bytes, target_bytes, min_tile_bytes=2 << 20):
    """Pick Nb so one input tile is ~target_bytes (HBM-bound op)."""
    nb = max(1, min(N, int(target_bytes // max(per_item_bytes, 1))))
    # Prefer >= 8 (else 4, else 2) grid steps so v7x's two TensorCores stay
    # balanced, but never shrink tiles below ~2 MiB just to add steps
    # (per-step overhead ~0.35us).
    for steps in (8, 4, 2):
        if N >= steps and (N // steps) * per_item_bytes >= min_tile_bytes:
            nb = min(nb, N // steps)
            break
    else:
        if N >= 2:
            nb = min(nb, max(1, N // 2))
    nb = max(1, nb)
    while N % nb:
        nb -= 1
    return int(nb)


def _choose_c_chunk(Cb, Nb, HW, budget_bytes=512 * 1024):
    """In-kernel channel chunk: bound the live f32 chunk, prefer multiples of 8."""
    cap = max(8, budget_bytes // (4 * max(1, Nb * HW)))
    if cap >= Cb:
        return Cb
    d = (min(Cb, cap) // 8) * 8
    while d >= 8:
        if Cb % d == 0:
            return d
        d -= 8
    d = min(Cb, cap)
    while d > 1:                                # fallback: any divisor (correct, slower)
        if Cb % d == 0:
            return d
        d -= 1
    return 1


def _vmem_capacity_bytes():
    try:
        return int(getattr(pltpu.get_tpu_info(), "vmem_capacity_bytes", 64 << 20))
    except Exception:
        return 64 << 20


def spatial_attention(x, weight, *, kernel_size=7):
    """x: (N, C, H, W); weight: (1, 2, K, K) conv weight (no bias).

    Returns sigmoid(conv2d(cat([mean_c(x), max_c(x)], 1), weight, padding=K//2))
    with shape (N, 1, H, W).
    """
    assert kernel_size in (3, 7), "kernel size must be 3 or 7"
    N, C, H, W = x.shape
    K = kernel_size
    assert weight.shape == (1, 2, K, K)
    HW = H * W

    # Flattened conv weight in SMEM ([channel, ky, kx] order), tiny 1-D footprint.
    w_flat = weight.astype(jnp.float32).reshape(2 * K * K)
    # Lane-dense view of x: (N, C, H*W) -- free, contiguous reshape.
    x3 = x.reshape(N, C, HW)

    itemsize = jnp.dtype(x.dtype).itemsize
    target = 8 << 20                                     # ~8 MiB input per grid step

    Cb = _choose_c_block(C, HW, itemsize, target)
    nC = C // Cb
    per_block_c = Cb * HW * itemsize
    Nb = _choose_batch_block(N, per_block_c, target)
    CC = _choose_c_chunk(Cb, Nb, HW)
    grid = (N // Nb, nC)

    # VMEM budget: double-buffered input/output blocks + accumulators + headroom,
    # capped per generation (leave headroom on 64 MiB-VMEM v7x).
    in_bytes = Nb * Cb * HW * itemsize
    out_bytes = Nb * HW * itemsize
    scratch_bytes = 2 * Nb * HW * 4
    needed = 2 * (in_bytes + out_bytes) + scratch_bytes + (4 << 20)
    vmem_cap = _vmem_capacity_bytes()
    cap = (40 << 20) if vmem_cap <= (96 << 20) else (96 << 20)
    vmem_limit = int(min(max(needed, 32 << 20), cap))
    vmem_limit = int(max(vmem_limit, needed))            # best effort for huge blocks

    kernel = functools.partial(_spatial_attention_kernel,
                               K=K, H=H, W=W, C=C, CC=CC)

    out = pl.pallas_call(
        kernel,
        out_shape=jax.ShapeDtypeStruct((N // Nb, Nb, HW), x.dtype),
        grid_spec=pltpu.PrefetchScalarGridSpec(
            num_scalar_prefetch=0,
            grid=grid,
            in_specs=[
                pl.BlockSpec((Nb, Cb, HW), lambda n, c: (n, c, 0)),
                pl.BlockSpec(memory_space=pltpu.MemorySpace.SMEM),
            ],
            out_specs=pl.BlockSpec((1, Nb, HW), lambda n, c: (n, 0, 0)),
            scratch_shapes=[
                pltpu.VMEM((Nb, HW), jnp.float32),       # running channel sum
                pltpu.VMEM((Nb, HW), jnp.float32),       # running channel max
            ],
        ),
        compiler_params=pltpu.CompilerParams(
            dimension_semantics=("parallel", "arbitrary"),
            vmem_limit_bytes=vmem_limit,
        ),
    )(x3, w_flat)

    return out.reshape(N, 1, H, W)


def _reference(x, weight, kernel_size=7):
    avg = jnp.mean(x, axis=1, keepdims=True)
    mx = jnp.max(x, axis=1, keepdims=True)
    cat = jnp.concatenate([avg, mx], axis=1)             # (N, 2, H, W)
    p = kernel_size // 2
    y = jax.lax.conv_general_dilated(
        cat, weight, window_strides=(1, 1),
        padding=[(p, p), (p, p)],
        dimension_numbers=("NCHW", "OIHW", "NCHW"))
    return jax.nn.sigmoid(y)


if __name__ == "__main__":
    key = jax.random.PRNGKey(0)

    def run_case(N, C, H, W, K):
        kx_, kw_ = jax.random.split(jax.random.fold_in(key, N * 1000 + C))
        x = jax.random.normal(kx_, (N, C, H, W), dtype=jnp.float32)
        weight = jax.random.normal(kw_, (1, 2, K, K),
                                   dtype=jnp.float32) / math.sqrt(2 * K * K)
        out = jax.block_until_ready(spatial_attention(x, weight, kernel_size=K))
        ref = _reference(x, weight, K)
        assert out.shape == (N, 1, H, W)
        assert jnp.allclose(out, ref, atol=1e-5, rtol=1e-5), \
            f"mismatch vs reference (N={N}, C={C}, H={H}, W={W}, K={K})"

    # Primary small-shape check (module default K=7).
    run_case(2, 4, 16, 16, 7)
    # Secondary check: exercises the chunked channel-reduction path and K=3.
    run_case(2, 160, 32, 32, 3)

    print("KERNEL_OK")
</pallas_src>

<mosaic_0001>
module attributes {stable_mosaic.version = 11 : i64} {
  func.func @_spatial_attention_kernel(%arg0: i32, %arg1: i32, %arg2: memref<1x4x256xf32, #tpu.memory_space<vmem>>, %arg3: memref<98xf32, #tpu.memory_space<smem>>, %arg4: memref<1x1x256xf32, #tpu.memory_space<vmem>>, %arg5: memref<1x256xf32, #tpu.memory_space<vmem>>, %arg6: memref<1x256xf32, #tpu.memory_space<vmem>>) attributes {dimension_semantics = [#tpu.dimension_semantics<parallel>, #tpu.dimension_semantics<arbitrary>], iteration_bounds = array<i64: 2, 1>, scalar_prefetch = 0 : i64, scratch_operands = 2 : i64, tpu.core_type = #tpu.core_type<tc>, window_params = [{transform_indices = @transform_0, window_bounds = array<i64: 1, 4, 256>}, {transform_indices = @transform_1, window_bounds = array<i64: 98>}, {transform_indices = @transform_2, window_bounds = array<i64: 1, 1, 256>}]} {
    %c0_i32 = arith.constant 0 : i32
    %0 = arith.cmpi eq, %arg1, %c0_i32 : i32
    %1 = arith.extui %0 : i1 to i32
    %c0_i32_0 = arith.constant 0 : i32
    %2 = arith.cmpi ne, %1, %c0_i32_0 : i32
    scf.if %2 {
      %cst_14 = arith.constant 0.000000e+00 : f32
      %15 = vector.broadcast %cst_14 : f32 to vector<1x256xf32>
      %c0_15 = arith.constant 0 : index
      %c0_16 = arith.constant 0 : index
      %16 = vector.load %arg5[%c0_15, %c0_16] : memref<1x256xf32, #tpu.memory_space<vmem>>, vector<1x256xf32>
      tpu.vector_store %arg5[%c0_15, %c0_16], %15 {strides = array<i32>} : memref<1x256xf32, #tpu.memory_space<vmem>>, vector<1x256xf32>,
      %cst_17 = arith.constant 0xFF800000 : f32
      %17 = vector.broadcast %cst_17 : f32 to vector<1x256xf32>
      %c0_18 = arith.constant 0 : index
      %c0_19 = arith.constant 0 : index
      %18 = vector.load %arg6[%c0_18, %c0_19] : memref<1x256xf32, #tpu.memory_space<vmem>>, vector<1x256xf32>
      tpu.vector_store %arg6[%c0_18, %c0_19], %17 {strides = array<i32>} : memref<1x256xf32, #tpu.memory_space<vmem>>, vector<1x256xf32>,
    } else {
    }
    %c0 = arith.constant 0 : index
    %c0_1 = arith.constant 0 : index
    %c0_2 = arith.constant 0 : index
    %3 = vector.load %arg2[%c0, %c0_1, %c0_2] : memref<1x4x256xf32, #tpu.memory_space<vmem>>, vector<1x4x256xf32>
    %c0_3 = arith.constant 0 : index
    %c0_4 = arith.constant 0 : index
    %4 = vector.load %arg5[%c0_3, %c0_4] : memref<1x256xf32, #tpu.memory_space<vmem>>, vector<1x256xf32>
    %cst = arith.constant dense<0.000000e+00> : vector<1x256xf32>
    %5 = vector.multi_reduction <add>, %3, %cst [1] : vector<1x4x256xf32> to vector<1x256xf32>
    %6 = arith.addf %4, %5 : vector<1x256xf32>
    %c0_5 = arith.constant 0 : index
    %c0_6 = arith.constant 0 : index
    %7 = vector.load %arg6[%c0_5, %c0_6] : memref<1x256xf32, #tpu.memory_space<vmem>>, vector<1x256xf32>
    %cst_7 = arith.constant dense<0xFF800000> : vector<1x256xf32>
    %8 = vector.multi_reduction <maximumf>, %3, %cst_7 [1] : vector<1x4x256xf32> to vector<1x256xf32>
    %9 = arith.maximumf %7, %8 : vector<1x256xf32>
    %c0_8 = arith.constant 0 : index
    %c0_9 = arith.constant 0 : index
    %10 = vector.load %arg5[%c0_8, %c0_9] : memref<1x256xf32, #tpu.memory_space<vmem>>, vector<1x256xf32>
    tpu.vector_store %arg5[%c0_8, %c0_9], %6 {strides = array<i32>} : memref<1x256xf32, #tpu.memory_space<vmem>>, vector<1x256xf32>,
    %c0_10 = arith.constant 0 : index
    %c0_11 = arith.constant 0 : index
    %11 = vector.load %arg6[%c0_10, %c0_11] : memref<1x256xf32, #tpu.memory_space<vmem>>, vector<1x256xf32>
    tpu.vector_store %arg6[%c0_10, %c0_11], %9 {strides = array<i32>} : memref<1x256xf32, #tpu.memory_space<vmem>>, vector<1x256xf32>,
    %c0_i32_12 = arith.constant 0 : i32
    %12 = arith.cmpi eq, %arg1, %c0_i32_12 : i32
    %13 = arith.extui %12 : i1 to i32
    %c0_i32_13 = arith.constant 0 : i32
    %14 = arith.cmpi ne, %13, %c0_i32_13 : i32
    scf.if %14 {
      %cst_14 = arith.constant 2.500000e-01 : f32
      %15 = vector.broadcast %cst_14 : f32 to vector<1x256xf32>
      %16 = arith.mulf %6, %15 : vector<1x256xf32>
      %cst_15 = arith.constant 0.000000e+00 : f32
      %17 = vector.broadcast %cst_15 : f32 to vector<1x51xf32>
      %18 = tpu.concatenate %17, %16, %17 in 1 : vector<1x51xf32>, vector<1x256xf32>, vector<1x51xf32> -> vector<1x358xf32>
      %19 = tpu.concatenate %17, %9, %17 in 1 : vector<1x51xf32>, vector<1x256xf32>, vector<1x51xf32> -> vector<1x358xf32>
      %20 = tpu.iota {dimensions = array<i32: 1>} : vector<1x256xi32>
      %c16_i32 = arith.constant 16 : i32
      %c0_i32_16 = arith.constant 0 : i32
      %21 = arith.cmpi eq, %c16_i32, %c0_i32_16 : i32
      %c1_i32 = arith.constant 1 : i32
      %22 = arith.select %21, %c1_i32, %c16_i32 : i32
      %23 = vector.broadcast %22 : i32 to vector<1x256xi32>
      %24 = arith.remsi %20, %23 : vector<1x256xi32>
      %c0_i32_17 = arith.constant 0 : i32
      %25 = vector.broadcast %c0_i32_17 : i32 to vector<1x256xi32>
      %26 = arith.cmpi ne, %24, %25 : vector<1x256xi32>
      %c0_i32_18 = arith.constant 0 : i32
      %27 = vector.broadcast %c0_i32_18 : i32 to vector<1x256xi32>
      %28 = arith.cmpi slt, %24, %27 : vector<1x256xi32>
      %c0_i32_19 = arith.constant 0 : i32
      %29 = arith.cmpi slt, %22, %c0_i32_19 : i32
      %30 = vector.broadcast %29 : i1 to vector<1x256xi1>
      %31 = vector.broadcast %30 : vector<1x256xi1> to vector<1x256xi1>
      %32 = arith.xori %28, %31 : vector<1x256xi1>
      %33 = arith.andi %32, %26 : vector<1x256xi1>
      %34 = vector.broadcast %22 : i32 to vector<1x256xi32>
      %35 = arith.addi %24, %34 : vector<1x256xi32>
      %36 = arith.select %33, %35, %24 : vector<1x256xi1>, vector<1x256xi32>
      %cst_20 = arith.constant 0.000000e+00 : f32
      %37 = vector.broadcast %cst_20 : f32 to vector<1x256xf32>
      %cst_21 = arith.constant 0.000000e+00 : f32
      %38 = vector.broadcast %cst_21 : f32 to vector<1x256xf32>
      %c0_22 = arith.constant 0 : index
      %39 = memref.load %arg3[%c0_22] : memref<98xf32, #tpu.memory_space<smem>>
      %c49 = arith.constant 49 : index
      %40 = memref.load %arg3[%c49] : memref<98xf32, #tpu.memory_space<smem>>
      %41 = vector.extract_strided_slice %18 {offsets = [0, 0], sizes = [1, 256], strides = [1, 1]} : vector<1x358xf32> to vector<1x256xf32>
      %42 = vector.broadcast %39 : f32 to vector<1x256xf32>
      %43 = arith.mulf %42, %41 : vector<1x256xf32>
      %44 = arith.addf %38, %43 : vector<1x256xf32>
      %45 = vector.extract_strided_slice %19 {offsets = [0, 0], sizes = [1, 256], strides = [1, 1]} : vector<1x358xf32> to vector<1x256xf32>
      %46 = vector.broadcast %40 : f32 to vector<1x256xf32>
      %47 = arith.mulf %46, %45 : vector<1x256xf32>
      %48 = arith.addf %44, %47 : vector<1x256xf32>
      %c7 = arith.constant 7 : index
      %49 = memref.load %arg3[%c7] : memref<98xf32, #tpu.memory_space<smem>>
      %c56 = arith.constant 56 : index
      %50 = memref.load %arg3[%c56] : memref<98xf32, #tpu.memory_space<smem>>
      %51 = vector.extract_strided_slice %18 {offsets = [0, 16], sizes = [1, 256], strides = [1, 1]} : vector<1x358xf32> to vector<1x256xf32>
      %52 = vector.broadcast %49 : f32 to vector<1x256xf32>
      %53 = arith.mulf %52, %51 : vector<1x256xf32>
      %54 = arith.addf %48, %53 : vector<1x256xf32>
      %55 = vector.extract_strided_slice %19 {offsets = [0, 16], sizes = [1, 256], strides = [1, 1]} : vector<1x358xf32> to vector<1x256xf32>
      %56 = vector.broadcast %50 : f32 to vector<1x256xf32>
      %57 = arith.mulf %56, %55 : vector<1x256xf32>
      %58 = arith.addf %54, %57 : vector<1x256xf32>
      %c14 = arith.constant 14 : index
      %59 = memref.load %arg3[%c14] : memref<98xf32, #tpu.memory_space<smem>>
      %c63 = arith.constant 63 : index
      %60 = memref.load %arg3[%c63] : memref<98xf32, #tpu.memory_space<smem>>
      %61 = vector.extract_strided_slice %18 {offsets = [0, 32], sizes = [1, 256], strides = [1, 1]} : vector<1x358xf32> to vector<1x256xf32>
      %62 = vector.broadcast %59 : f32 to vector<1x256xf32>
      %63 = arith.mulf %62, %61 : vector<1x256xf32>
      %64 = arith.addf %58, %63 : vector<1x256xf32>
      %65 = vector.extract_strided_slice %19 {offsets = [0, 32], sizes = [1, 256], strides = [1, 1]} : vector<1x358xf32> to vector<1x256xf32>
      %66 = vector.broadcast %60 : f32 to vector<1x256xf32>
      %67 = arith.mulf %66, %65 : vector<1x256xf32>
      %68 = arith.addf %64, %67 : vector<1x256xf32>
      %c21 = arith.constant 21 : index
      %69 = memref.load %arg3[%c21] : memref<98xf32, #tpu.memory_space<smem>>
      %c70 = arith.constant 70 : index
      %70 = memref.load %arg3[%c70] : memref<98xf32, #tpu.memory_space<smem>>
      %71 = vector.extract_strided_slice %18 {offsets = [0, 48], sizes = [1, 256], strides = [1, 1]} : vector<1x358xf32> to vector<1x256xf32>
      %72 = vector.broadcast %69 : f32 to vector<1x256xf32>
      %73 = arith.mulf %72, %71 : vector<1x256xf32>
      %74 = arith.addf %68, %73 : vector<1x256xf32>
      %75 = vector.extract_strided_slice %19 {offsets = [0, 48], sizes = [1, 256], strides = [1, 1]} : vector<1x358xf32> to vector<1x256xf32>
      %76 = vector.broadcast %70 : f32 to vector<1x256xf32>
      %77 = arith.mulf %76, %75 : vector<1x256xf32>
      %78 = arith.addf %74, %77 : vector<1x256xf32>
      %c28 = arith.constant 28 : index
      %79 = memref.load %arg3[%c28] : memref<98xf32, #tpu.memory_space<smem>>
      %c77 = arith.constant 77 : index
      %80 = memref.load %arg3[%c77] : memref<98xf32, #tpu.memory_space<smem>>
      %81 = vector.extract_strided_slice %18 {offsets = [0, 64], sizes = [1, 256], strides = [1, 1]} : vector<1x358xf32> to vector<1x256xf32>
      %82 = vector.broadcast %79 : f32 to vector<1x256xf32>
      %83 = arith.mulf %82, %81 : vector<1x256xf32>
      %84 = arith.addf %78, %83 : vector<1x256xf32>
      %85 = vector.extract_strided_slice %19 {offsets = [0, 64], sizes = [1, 256], strides = [1, 1]} : vector<1x358xf32> to vector<1x256xf32>
      %86 = vector.broadcast %80 : f32 to vector<1x256xf32>
      %87 = arith.mulf %86, %85 : vector<1x256xf32>
      %88 = arith.addf %84, %87 : vector<1x256xf32>
      %c35 = arith.constant 35 : index
      %89 = memref.load %arg3[%c35] : memref<98xf32, #tpu.memory_space<smem>>
      %c84 = arith.constant 84 : index
      %90 = memref.load %arg3[%c84] : memref<98xf32, #tpu.memory_space<smem>>
      %91 = vector.extract_strided_slice %18 {offsets = [0, 80], sizes = [1, 256], strides = [1, 1]} : vector<1x358xf32> to vector<1x256xf32>
      %92 = vector.broadcast %89 : f32 to vector<1x256xf32>
      %93 = arith.mulf %92, %91 : vector<1x256xf32>
      %94 = arith.addf %88, %93 : vector<1x256xf32>
      %95 = vector.extract_strided_slice %19 {offsets = [0, 80], sizes = [1, 256], strides = [1, 1]} : vector<1x358xf32> to vector<1x256xf32>
      %96 = vector.broadcast %90 : f32 to vector<1x256xf32>
      %97 = arith.mulf %96, %95 : vector<1x256xf32>
      %98 = arith.addf %94, %97 : vector<1x256xf32>
      %c42 = arith.constant 42 : index
      %99 = memref.load %arg3[%c42] : memref<98xf32, #tpu.memory_space<smem>>
      %c91 = arith.constant 91 : index
      %100 = memref.load %arg3[%c91] : memref<98xf32, #tpu.memory_space<smem>>
      %101 = vector.extract_strided_slice %18 {offsets = [0, 96], sizes = [1, 256], strides = [1, 1]} : vector<1x358xf32> to vector<1x256xf32>
      %102 = vector.broadcast %99 : f32 to vector<1x256xf32>
      %103 = arith.mulf %102, %101 : vector<1x256xf32>
      %104 = arith.addf %98, %103 : vector<1x256xf32>
      %105 = vector.extract_strided_slice %19 {offsets = [0, 96], sizes = [1, 256], strides = [1, 1]} : vector<1x358xf32> to vector<1x256xf32>
      %106 = vector.broadcast %100 : f32 to vector<1x256xf32>
      %107 = arith.mulf %106, %105 : vector<1x256xf32>
      %108 = arith.addf %104, %107 : vector<1x256xf32>
      %c3_i32 = arith.constant 3 : i32
      %109 = vector.broadcast %c3_i32 : i32 to vector<1x256xi32>
      %110 = arith.cmpi sge, %36, %109 : vector<1x256xi32>
      %c19_i32 = arith.constant 19 : i32
      %111 = vector.broadcast %c19_i32 : i32 to vector<1x256xi32>
      %112 = arith.cmpi slt, %36, %111 : vector<1x256xi32>
      %113 = arith.andi %110, %112 : vector<1x256xi1>
      %cst_23 = arith.constant 0.000000e+00 : f32
      %114 = vector.broadcast %cst_23 : f32 to vector<1x256xf32>
      %115 = arith.select %113, %108, %114 : vector<1x256xi1>, vector<1x256xf32>
      %116 = arith.addf %37, %115 : vector<1x256xf32>
      %cst_24 = arith.constant 0.000000e+00 : f32
      %117 = vector.broadcast %cst_24 : f32 to vector<1x256xf32>
      %c1 = arith.constant 1 : index
      %118 = memref.load %arg3[%c1] : memref<98xf32, #tpu.memory_space<smem>>
      %c50 = arith.constant 50 : index
      %119 = memref.load %arg3[%c50] : memref<98xf32, #tpu.memory_space<smem>>
      %120 = vector.extract_strided_slice %18 {offsets = [0, 1], sizes = [1, 256], strides = [1, 1]} : vector<1x358xf32> to vector<1x256xf32>
      %121 = vector.broadcast %118 : f32 to vector<1x256xf32>
      %122 = arith.mulf %121, %120 : vector<1x256xf32>
      %123 = arith.addf %117, %122 : vector<1x256xf32>
      %124 = vector.extract_strided_slice %19 {offsets = [0, 1], sizes = [1, 256], strides = [1, 1]} : vector<1x358xf32> to vector<1x256xf32>
      %125 = vector.broadcast %119 : f32 to vector<1x256xf32>
      %126 = arith.mulf %125, %124 : vector<1x256xf32>
      %127 = arith.addf %123, %126 : vector<1x256xf32>
      %c8 = arith.constant 8 : index
      %128 = memref.load %arg3[%c8] : memref<98xf32, #tpu.memory_space<smem>>
      %c57 = arith.constant 57 : index
      %129 = memref.load %arg3[%c57] : memref<98xf32, #tpu.memory_space<smem>>
      %130 = vector.extract_strided_slice %18 {offsets = [0, 17], sizes = [1, 256], strides = [1, 1]} : vector<1x358xf32> to vector<1x256xf32>
      %131 = vector.broadcast %128 : f32 to vector<1x256xf32>
      %132 = arith.mulf %131, %130 : vector<1x256xf32>
      %133 = arith.addf %127, %132 : vector<1x256xf32>
      %134 = vector.extract_strided_slice %19 {offsets = [0, 17], sizes = [1, 256], strides = [1, 1]} : vector<1x358xf32> to vector<1x256xf32>
      %135 = vector.broadcast %129 : f32 to vector<1x256xf32>
      %136 = arith.mulf %135, %134 : vector<1x256xf32>
      %137 = arith.addf %133, %136 : vector<1x256xf32>
      %c15 = arith.constant 15 : index
      %138 = memref.load %arg3[%c15] : memref<98xf32, #tpu.memory_space<smem>>
      %c64 = arith.constant 64 : index
      %139 = memref.load %arg3[%c64] : memref<98xf32, #tpu.memory_space<smem>>
      %140 = vector.extract_strided_slice %18 {offsets = [0, 33], sizes = [1, 256], strides = [1, 1]} : vector<1x358xf32> to vector<1x256xf32>
      %141 = vector.broadcast %138 : f32 to vector<1x256xf32>
      %142 = arith.mulf %141, %140 : vector<1x256xf32>
      %143 = arith.addf %137, %142 : vector<1x256xf32>
      %144 = vector.extract_strided_slice %19 {offsets = [0, 33], sizes = [1, 256], strides = [1, 1]} : vector<1x358xf32> to vector<1x256xf32>
      %145 = vector.broadcast %139 : f32 to vector<1x256xf32>
      %146 = arith.mulf %145, %144 : vector<1x256xf32>
      %147 = arith.addf %143, %146 : vector<1x256xf32>
      %c22 = arith.constant 22 : index
      %148 = memref.load %arg3[%c22] : memref<98xf32, #tpu.memory_space<smem>>
      %c71 = arith.constant 71 : index
      %149 = memref.load %arg3[%c71] : memref<98xf32, #tpu.memory_space<smem>>
      %150 = vector.extract_strided_slice %18 {offsets = [0, 49], sizes = [1, 256], strides = [1, 1]} : vector<1x358xf32> to vector<1x256xf32>
      %151 = vector.broadcast %148 : f32 to vector<1x256xf32>
      %152 = arith.mulf %151, %150 : vector<1x256xf32>
      %153 = arith.addf %147, %152 : vector<1x256xf32>
      %154 = vector.extract_strided_slice %19 {offsets = [0, 49], sizes = [1, 256], strides = [1, 1]} : vector<1x358xf32> to vector<1x256xf32>
      %155 = vector.broadcast %149 : f32 to vector<1x256xf32>
      %156 = arith.mulf %155, %154 : vector<1x256xf32>
      %157 = arith.addf %153, %156 : vector<1x256xf32>
      %c29 = arith.constant 29 : index
      %158 = memref.load %arg3[%c29] : memref<98xf32, #tpu.memory_space<smem>>
      %c78 = arith.constant 78 : index
      %159 = memref.load %arg3[%c78] : memref<98xf32, #tpu.memory_space<smem>>
      %160 = vector.extract_strided_slice %18 {offsets = [0, 65], sizes = [1, 256], strides = [1, 1]} : vector<1x358xf32> to vector<1x256xf32>
      %161 = vector.broadcast %158 : f32 to vector<1x256xf32>
      %162 = arith.mulf %161, %160 : vector<1x256xf32>
      %163 = arith.addf %157, %162 : vector<1x256xf32>
      %164 = vector.extract_strided_slice %19 {offsets = [0, 65], sizes = [1, 256], strides = [1, 1]} : vector<1x358xf32> to vector<1x256xf32>
      %165 = vector.broadcast %159 : f32 to vector<1x256xf32>
      %166 = arith.mulf %165, %164 : vector<1x256xf32>
      %167 = arith.addf %163, %166 : vector<1x256xf32>
      %c36 = arith.constant 36 : index
      %168 = memref.load %arg3[%c36] : memref<98xf32, #tpu.memory_space<smem>>
      %c85 = arith.constant 85 : index
      %169 = memref.load %arg3[%c85] : memref<98xf32, #tpu.memory_space<smem>>
      %170 = vector.extract_strided_slice %18 {offsets = [0, 81], sizes = [1, 256], strides = [1, 1]} : vector<1x358xf32> to vector<1x256xf32>
      %171 = vector.broadcast %168 : f32 to vector<1x256xf32>
      %172 = arith.mulf %171, %170 : vector<1x256xf32>
      %173 = arith.addf %167, %172 : vector<1x256xf32>
      %174 = vector.extract_strided_slice %19 {offsets = [0, 81], sizes = [1, 256], strides = [1, 1]} : vector<1x358xf32> to vector<1x256xf32>
      %175 = vector.broadcast %169 : f32 to vector<1x256xf32>
      %176 = arith.mulf %175, %174 : vector<1x256xf32>
      %177 = arith.addf %173, %176 : vector<1x256xf32>
      %c43 = arith.constant 43 : index
      %178 = memref.load %arg3[%c43] : memref<98xf32, #tpu.memory_space<smem>>
      %c92 = arith.constant 92 : index
      %179 = memref.load %arg3[%c92] : memref<98xf32, #tpu.memory_space<smem>>
      %180 = vector.extract_strided_slice %18 {offsets = [0, 97], sizes = [1, 256], strides = [1, 1]} : vector<1x358xf32> to vector<1x256xf32>
      %181 = vector.broadcast %178 : f32 to vector<1x256xf32>
      %182 = arith.mulf %181, %180 : vector<1x256xf32>
      %183 = arith.addf %177, %182 : vector<1x256xf32>
      %184 = vector.extract_strided_slice %19 {offsets = [0, 97], sizes = [1, 256], strides = [1, 1]} : vector<1x358xf32> to vector<1x256xf32>
      %185 = vector.broadcast %179 : f32 to vector<1x256xf32>
      %186 = arith.mulf %185, %184 : vector<1x256xf32>
      %187 = arith.addf %183, %186 : vector<1x256xf32>
      %c2_i32 = arith.constant 2 : i32
      %188 = vector.broadcast %c2_i32 : i32 to vector<1x256xi32>
      %189 = arith.cmpi sge, %36, %188 : vector<1x256xi32>
      %c18_i32 = arith.constant 18 : i32
      %190 = vector.broadcast %c18_i32 : i32 to vector<1x256xi32>
      %191 = arith.cmpi slt, %36, %190 : vector<1x256xi32>
      %192 = arith.andi %189, %191 : vector<1x256xi1>
      %cst_25 = arith.constant 0.000000e+00 : f32
      %193 = vector.broadcast %cst_25 : f32 to vector<1x256xf32>
      %194 = arith.select %192, %187, %193 : vector<1x256xi1>, vector<1x256xf32>
      %195 = arith.addf %116, %194 : vector<1x256xf32>
      %cst_26 = arith.constant 0.000000e+00 : f32
      %196 = vector.broadcast %cst_26 : f32 to vector<1x256xf32>
      %c2 = arith.constant 2 : index
      %197 = memref.load %arg3[%c2] : memref<98xf32, #tpu.memory_space<smem>>
      %c51 = arith.constant 51 : index
      %198 = memref.load %arg3[%c51] : memref<98xf32, #tpu.memory_space<smem>>
      %199 = vector.extract_strided_slice %18 {offsets = [0, 2], sizes = [1, 256], strides = [1, 1]} : vector<1x358xf32> to vector<1x256xf32>
      %200 = vector.broadcast %197 : f32 to vector<1x256xf32>
      %201 = arith.mulf %200, %199 : vector<1x256xf32>
      %202 = arith.addf %196, %201 : vector<1x256xf32>
      %203 = vector.extract_strided_slice %19 {offsets = [0, 2], sizes = [1, 256], strides = [1, 1]} : vector<1x358xf32> to vector<1x256xf32>
      %204 = vector.broadcast %198 : f32 to vector<1x256xf32>
      %205 = arith.mulf %204, %203 : vector<1x256xf32>
      %206 = arith.addf %202, %205 : vector<1x256xf32>
      %c9 = arith.constant 9 : index
      %207 = memref.load %arg3[%c9] : memref<98xf32, #tpu.memory_space<smem>>
      %c58 = arith.constant 58 : index
      %208 = memref.load %arg3[%c58] : memref<98xf32, #tpu.memory_space<smem>>
      %209 = vector.extract_strided_slice %18 {offsets = [0, 18], sizes = [1, 256], strides = [1, 1]} : vector<1x358xf32> to vector<1x256xf32>
      %210 = vector.broadcast %207 : f32 to vector<1x256xf32>
      %211 = arith.mulf %210, %209 : vector<1x256xf32>
      %212 = arith.addf %206, %211 : vector<1x256xf32>
      %213 = vector.extract_strided_slice %19 {offsets = [0, 18], sizes = [1, 256], strides = [1, 1]} : vector<1x358xf32> to vector<1x256xf32>
      %214 = vector.broadcast %208 : f32 to vector<1x256xf32>
      %215 = arith.mulf %214, %213 : vector<1x256xf32>
      %216 = arith.addf %212, %215 : vector<1x256xf32>
      %c16 = arith.constant 16 : index
      %217 = memref.load %arg3[%c16] : memref<98xf32, #tpu.memory_space<smem>>
      %c65 = arith.constant 65 : index
      %218 = memref.load %arg3[%c65] : memref<98xf32, #tpu.memory_space<smem>>
      %219 = vector.extract_strided_slice %18 {offsets = [0, 34], sizes = [1, 256], strides = [1, 1]} : vector<1x358xf32> to vector<1x256xf32>
      %220 = vector.broadcast %217 : f32 to vector<1x256xf32>
      %221 = arith.mulf %220, %219 : vector<1x256xf32>
      %222 = arith.addf %216, %221 : vector<1x256xf32>
      %223 = vector.extract_strided_slice %19 {offsets = [0, 34], sizes = [1, 256], strides = [1, 1]} : vector<1x358xf32> to vector<1x256xf32>
      %224 = vector.broadcast %218 : f32 to vector<1x256xf32>
      %225 = arith.mulf %224, %223 : vector<1x256xf32>
      %226 = arith.addf %222, %225 : vector<1x256xf32>
      %c23 = arith.constant 23 : index
      %227 = memref.load %arg3[%c23] : memref<98xf32, #tpu.memory_space<smem>>
      %c72 = arith.constant 72 : index
      %228 = memref.load %arg3[%c72] : memref<98xf32, #tpu.memory_space<smem>>
      %229 = vector.extract_strided_slice %18 {offsets = [0, 50], sizes = [1, 256], strides = [1, 1]} : vector<1x358xf32> to vector<1x256xf32>
      %230 = vector.broadcast %227 : f32 to vector<1x256xf32>
      %231 = arith.mulf %230, %229 : vector<1x256xf32>
      %232 = arith.addf %226, %231 : vector<1x256xf32>
      %233 = vector.extract_strided_slice %19 {offsets = [0, 50], sizes = [1, 256], strides = [1, 1]} : vector<1x358xf32> to vector<1x256xf32>
      %234 = vector.broadcast %228 : f32 to vector<1x256xf32>
      %235 = arith.mulf %234, %233 : vector<1x256xf32>
      %236 = arith.addf %232, %235 : vector<1x256xf32>
      %c30 = arith.constant 30 : index
      %237 = memref.load %arg3[%c30] : memref<98xf32, #tpu.memory_space<smem>>
      %c79 = arith.constant 79 : index
      %238 = memref.load %arg3[%c79] : memref<98xf32, #tpu.memory_space<smem>>
      %239 = vector.extract_strided_slice %18 {offsets = [0, 66], sizes = [1, 256], strides = [1, 1]} : vector<1x358xf32> to vector<1x256xf32>
      %240 = vector.broadcast %237 : f32 to vector<1x256xf32>
      %241 = arith.mulf %240, %239 : vector<1x256xf32>
      %242 = arith.addf %236, %241 : vector<1x256xf32>
      %243 = vector.extract_strided_slice %19 {offsets = [0, 66], sizes = [1, 256], strides = [1, 1]} : vector<1x358xf32> to vector<1x256xf32>
      %244 = vector.broadcast %238 : f32 to vector<1x256xf32>
      %245 = arith.mulf %244, %243 : vector<1x256xf32>
      %246 = arith.addf %242, %245 : vector<1x256xf32>
      %c37 = arith.constant 37 : index
      %247 = memref.load %arg3[%c37] : memref<98xf32, #tpu.memory_space<smem>>
      %c86 = arith.constant 86 : index
      %248 = memref.load %arg3[%c86] : memref<98xf32, #tpu.memory_space<smem>>
      %249 = vector.extract_strided_slice %18 {offsets = [0, 82], sizes = [1, 256], strides = [1, 1]} : vector<1x358xf32> to vector<1x256xf32>
      %250 = vector.broadcast %247 : f32 to vector<1x256xf32>
      %251 = arith.mulf %250, %249 : vector<1x256xf32>
      %252 = arith.addf %246, %251 : vector<1x256xf32>
      %253 = vector.extract_strided_slice %19 {offsets = [0, 82], sizes = [1, 256], strides = [1, 1]} : vector<1x358xf32> to vector<1x256xf32>
      %254 = vector.broadcast %248 : f32 to vector<1x256xf32>
      %255 = arith.mulf %254, %253 : vector<1x256xf32>
      %256 = arith.addf %252, %255 : vector<1x256xf32>
      %c44 = arith.constant 44 : index
      %257 = memref.load %arg3[%c44] : memref<98xf32, #tpu.memory_space<smem>>
      %c93 = arith.constant 93 : index
      %258 = memref.load %arg3[%c93] : memref<98xf32, #tpu.memory_space<smem>>
      %259 = vector.extract_strided_slice %18 {offsets = [0, 98], sizes = [1, 256], strides = [1, 1]} : vector<1x358xf32> to vector<1x256xf32>
      %260 = vector.broadcast %257 : f32 to vector<1x256xf32>
      %261 = arith.mulf %260, %259 : vector<1x256xf32>
      %262 = arith.addf %256, %261 : vector<1x256xf32>
      %263 = vector.extract_strided_slice %19 {offsets = [0, 98], sizes = [1, 256], strides = [1, 1]} : vector<1x358xf32> to vector<1x256xf32>
      %264 = vector.broadcast %258 : f32 to vector<1x256xf32>
      %265 = arith.mulf %264, %263 : vector<1x256xf32>
      %266 = arith.addf %262, %265 : vector<1x256xf32>
      %c1_i32_27 = arith.constant 1 : i32
      %267 = vector.broadcast %c1_i32_27 : i32 to vector<1x256xi32>
      %268 = arith.cmpi sge, %36, %267 : vector<1x256xi32>
      %c17_i32 = arith.constant 17 : i32
      %269 = vector.broadcast %c17_i32 : i32 to vector<1x256xi32>
      %270 = arith.cmpi slt, %36, %269 : vector<1x256xi32>
      %271 = arith.andi %268, %270 : vector<1x256xi1>
      %cst_28 = arith.constant 0.000000e+00 : f32
      %272 = vector.broadcast %cst_28 : f32 to vector<1x256xf32>
      %273 = arith.select %271, %266, %272 : vector<1x256xi1>, vector<1x256xf32>
      %274 = arith.addf %195, %273 : vector<1x256xf32>
      %cst_29 = arith.constant 0.000000e+00 : f32
      %275 = vector.broadcast %cst_29 : f32 to vector<1x256xf32>
      %c3 = arith.constant 3 : index
      %276 = memref.load %arg3[%c3] : memref<98xf32, #tpu.memory_space<smem>>
      %c52 = arith.constant 52 : index
      %277 = memref.load %arg3[%c52] : memref<98xf32, #tpu.memory_space<smem>>
      %278 = vector.extract_strided_slice %18 {offsets = [0, 3], sizes = [1, 256], strides = [1, 1]} : vector<1x358xf32> to vector<1x256xf32>
      %279 = vector.broadcast %276 : f32 to vector<1x256xf32>
      %280 = arith.mulf %279, %278 : vector<1x256xf32>
      %281 = arith.addf %275, %280 : vector<1x256xf32>
      %282 = vector.extract_strided_slice %19 {offsets = [0, 3], sizes = [1, 256], strides = [1, 1]} : vector<1x358xf32> to vector<1x256xf32>
      %283 = vector.broadcast %277 : f32 to vector<1x256xf32>
      %284 = arith.mulf %283, %282 : vector<1x256xf32>
      %285 = arith.addf %281, %284 : vector<1x256xf32>
      %c10 = arith.constant 10 : index
      %286 = memref.load %arg3[%c10] : memref<98xf32, #tpu.memory_space<smem>>
      %c59 = arith.constant 59 : index
      %287 = memref.load %arg3[%c59] : memref<98xf32, #tpu.memory_space<smem>>
      %288 = vector.extract_strided_slice %18 {offsets = [0, 19], sizes = [1, 256], strides = [1, 1]} : vector<1x358xf32> to vector<1x256xf32>
      %289 = vector.broadcast %286 : f32 to vector<1x256xf32>
      %290 = arith.mulf %289, %288 : vector<1x256xf32>
      %291 = arith.addf %285, %290 : vector<1x256xf32>
      %292 = vector.extract_strided_slice %19 {offsets = [0, 19], sizes = [1, 256], strides = [1, 1]} : vector<1x358xf32> to vector<1x256xf32>
      %293 = vector.broadcast %287 : f32 to vector<1x256xf32>
      %294 = arith.mulf %293, %292 : vector<1x256xf32>
      %295 = arith.addf %291, %294 : vector<1x256xf32>
      %c17 = arith.constant 17 : index
      %296 = memref.load %arg3[%c17] : memref<98xf32, #tpu.memory_space<smem>>
      %c66 = arith.constant 66 : index
      %297 = memref.load %arg3[%c66] : memref<98xf32, #tpu.memory_space<smem>>
      %298 = vector.extract_strided_slice %18 {offsets = [0, 35], sizes = [1, 256], strides = [1, 1]} : vector<1x358xf32> to vector<1x256xf32>
      %299 = vector.broadcast %296 : f32 to vector<1x256xf32>
      %300 = arith.mulf %299, %298 : vector<1x256xf32>
      %301 = arith.addf %295, %300 : vector<1x256xf32>
      %302 = vector.extract_strided_slice %19 {offsets = [0, 35], sizes = [1, 256], strides = [1, 1]} : vector<1x358xf32> to vector<1x256xf32>
      %303 = vector.broadcast %297 : f32 to vector<1x256xf32>
      %304 = arith.mulf %303, %302 : vector<1x256xf32>
      %305 = arith.addf %301, %304 : vector<1x256xf32>
      %c24 = arith.constant 24 : index
      %306 = memref.load %arg3[%c24] : memref<98xf32, #tpu.memory_space<smem>>
      %c73 = arith.constant 73 : index
      %307 = memref.load %arg3[%c73] : memref<98xf32, #tpu.memory_space<smem>>
      %308 = vector.extract_strided_slice %18 {offsets = [0, 51], sizes = [1, 256], strides = [1, 1]} : vector<1x358xf32> to vector<1x256xf32>
      %309 = vector.broadcast %306 : f32 to vector<1x256xf32>
      %310 = arith.mulf %309, %308 : vector<1x256xf32>
      %311 = arith.addf %305, %310 : vector<1x256xf32>
      %312 = vector.extract_strided_slice %19 {offsets = [0, 51], sizes = [1, 256], strides = [1, 1]} : vector<1x358xf32> to vector<1x256xf32>
      %313 = vector.broadcast %307 : f32 to vector<1x256xf32>
      %314 = arith.mulf %313, %312 : vector<1x256xf32>
      %315 = arith.addf %311, %314 : vector<1x256xf32>
      %c31 = arith.constant 31 : index
      %316 = memref.load %arg3[%c31] : memref<98xf32, #tpu.memory_space<smem>>
      %c80 = arith.constant 80 : index
      %317 = memref.load %arg3[%c80] : memref<98xf32, #tpu.memory_space<smem>>
      %318 = vector.extract_strided_slice %18 {offsets = [0, 67], sizes = [1, 256], strides = [1, 1]} : vector<1x358xf32> to vector<1x256xf32>
      %319 = vector.broadcast %316 : f32 to vector<1x256xf32>
      %320 = arith.mulf %319, %318 : vector<1x256xf32>
      %321 = arith.addf %315, %320 : vector<1x256xf32>
      %322 = vector.extract_strided_slice %19 {offsets = [0, 67], sizes = [1, 256], strides = [1, 1]} : vector<1x358xf32> to vector<1x256xf32>
      %323 = vector.broadcast %317 : f32 to vector<1x256xf32>
      %324 = arith.mulf %323, %322 : vector<1x256xf32>
      %325 = arith.addf %321, %324 : vector<1x256xf32>
      %c38 = arith.constant 38 : index
      %326 = memref.load %arg3[%c38] : memref<98xf32, #tpu.memory_space<smem>>
      %c87 = arith.constant 87 : index
      %327 = memref.load %arg3[%c87] : memref<98xf32, #tpu.memory_space<smem>>
      %328 = vector.extract_strided_slice %18 {offsets = [0, 83], sizes = [1, 256], strides = [1, 1]} : vector<1x358xf32> to vector<1x256xf32>
      %329 = vector.broadcast %326 : f32 to vector<1x256xf32>
      %330 = arith.mulf %329, %328 : vector<1x256xf32>
      %331 = arith.addf %325, %330 : vector<1x256xf32>
      %332 = vector.extract_strided_slice %19 {offsets = [0, 83], sizes = [1, 256], strides = [1, 1]} : vector<1x358xf32> to vector<1x256xf32>
      %333 = vector.broadcast %327 : f32 to vector<1x256xf32>
      %334 = arith.mulf %333, %332 : vector<1x256xf32>
      %335 = arith.addf %331, %334 : vector<1x256xf32>
      %c45 = arith.constant 45 : index
      %336 = memref.load %arg3[%c45] : memref<98xf32, #tpu.memory_space<smem>>
      %c94 = arith.constant 94 : index
      %337 = memref.load %arg3[%c94] : memref<98xf32, #tpu.memory_space<smem>>
      %338 = vector.extract_strided_slice %18 {offsets = [0, 99], sizes = [1, 256], strides = [1, 1]} : vector<1x358xf32> to vector<1x256xf32>
      %339 = vector.broadcast %336 : f32 to vector<1x256xf32>
      %340 = arith.mulf %339, %338 : vector<1x256xf32>
      %341 = arith.addf %335, %340 : vector<1x256xf32>
      %342 = vector.extract_strided_slice %19 {offsets = [0, 99], sizes = [1, 256], strides = [1, 1]} : vector<1x358xf32> to vector<1x256xf32>
      %343 = vector.broadcast %337 : f32 to vector<1x256xf32>
      %344 = arith.mulf %343, %342 : vector<1x256xf32>
      %345 = arith.addf %341, %344 : vector<1x256xf32>
      %346 = arith.addf %274, %345 : vector<1x256xf32>
      %cst_30 = arith.constant 0.000000e+00 : f32
      %347 = vector.broadcast %cst_30 : f32 to vector<1x256xf32>
      %c4 = arith.constant 4 : index
      %348 = memref.load %arg3[%c4] : memref<98xf32, #tpu.memory_space<smem>>
      %c53 = arith.constant 53 : index
      %349 = memref.load %arg3[%c53] : memref<98xf32, #tpu.memory_space<smem>>
      %350 = vector.extract_strided_slice %18 {offsets = [0, 4], sizes = [1, 256], strides = [1, 1]} : vector<1x358xf32> to vector<1x256xf32>
      %351 = vector.broadcast %348 : f32 to vector<1x256xf32>
      %352 = arith.mulf %351, %350 : vector<1x256xf32>
      %353 = arith.addf %347, %352 : vector<1x256xf32>
      %354 = vector.extract_strided_slice %19 {offsets = [0, 4], sizes = [1, 256], strides = [1, 1]} : vector<1x358xf32> to vector<1x256xf32>
      %355 = vector.broadcast %349 : f32 to vector<1x256xf32>
      %356 = arith.mulf %355, %354 : vector<1x256xf32>
      %357 = arith.addf %353, %356 : vector<1x256xf32>
      %c11 = arith.constant 11 : index
      %358 = memref.load %arg3[%c11] : memref<98xf32, #tpu.memory_space<smem>>
      %c60 = arith.constant 60 : index
      %359 = memref.load %arg3[%c60] : memref<98xf32, #tpu.memory_space<smem>>
      %360 = vector.extract_strided_slice %18 {offsets = [0, 20], sizes = [1, 256], strides = [1, 1]} : vector<1x358xf32> to vector<1x256xf32>
      %361 = vector.broadcast %358 : f32 to vector<1x256xf32>
      %362 = arith.mulf %361, %360 : vector<1x256xf32>
      %363 = arith.addf %357, %362 : vector<1x256xf32>
      %364 = vector.extract_strided_slice %19 {offsets = [0, 20], sizes = [1, 256], strides = [1, 1]} : vector<1x358xf32> to vector<1x256xf32>
      %365 = vector.broadcast %359 : f32 to vector<1x256xf32>
      %366 = arith.mulf %365, %364 : vector<1x256xf32>
      %367 = arith.addf %363, %366 : vector<1x256xf32>
      %c18 = arith.constant 18 : index
      %368 = memref.load %arg3[%c18] : memref<98xf32, #tpu.memory_space<smem>>
      %c67 = arith.constant 67 : index
      %369 = memref.load %arg3[%c67] : memref<98xf32, #tpu.memory_space<smem>>
      %370 = vector.extract_strided_slice %18 {offsets = [0, 36], sizes = [1, 256], strides = [1, 1]} : vector<1x358xf32> to vector<1x256xf32>
      %371 = vector.broadcast %368 : f32 to vector<1x256xf32>
      %372 = arith.mulf %371, %370 : vector<1x256xf32>
      %373 = arith.addf %367, %372 : vector<1x256xf32>
      %374 = vector.extract_strided_slice %19 {offsets = [0, 36], sizes = [1, 256], strides = [1, 1]} : vector<1x358xf32> to vector<1x256xf32>
      %375 = vector.broadcast %369 : f32 to vector<1x256xf32>
      %376 = arith.mulf %375, %374 : vector<1x256xf32>
      %377 = arith.addf %373, %376 : vector<1x256xf32>
      %c25 = arith.constant 25 : index
      %378 = memref.load %arg3[%c25] : memref<98xf32, #tpu.memory_space<smem>>
      %c74 = arith.constant 74 : index
      %379 = memref.load %arg3[%c74] : memref<98xf32, #tpu.memory_space<smem>>
      %380 = vector.extract_strided_slice %18 {offsets = [0, 52], sizes = [1, 256], strides = [1, 1]} : vector<1x358xf32> to vector<1x256xf32>
      %381 = vector.broadcast %378 : f32 to vector<1x256xf32>
      %382 = arith.mulf %381, %380 : vector<1x256xf32>
      %383 = arith.addf %377, %382 : vector<1x256xf32>
      %384 = vector.extract_strided_slice %19 {offsets = [0, 52], sizes = [1, 256], strides = [1, 1]} : vector<1x358xf32> to vector<1x256xf32>
      %385 = vector.broadcast %379 : f32 to vector<1x256xf32>
      %386 = arith.mulf %385, %384 : vector<1x256xf32>
      %387 = arith.addf %383, %386 : vector<1x256xf32>
      %c32 = arith.constant 32 : index
      %388 = memref.load %arg3[%c32] : memref<98xf32, #tpu.memory_space<smem>>
      %c81 = arith.constant 81 : index
      %389 = memref.load %arg3[%c81] : memref<98xf32, #tpu.memory_space<smem>>
      %390 = vector.extract_strided_slice %18 {offsets = [0, 68], sizes = [1, 256], strides = [1, 1]} : vector<1x358xf32> to vector<1x256xf32>
      %391 = vector.broadcast %388 : f32 to vector<1x256xf32>
      %392 = arith.mulf %391, %390 : vector<1x256xf32>
      %393 = arith.addf %387, %392 : vector<1x256xf32>
      %394 = vector.extract_strided_slice %19 {offsets = [0, 68], sizes = [1, 256], strides = [1, 1]} : vector<1x358xf32> to vector<1x256xf32>
      %395 = vector.broadcast %389 : f32 to vector<1x256xf32>
      %396 = arith.mulf %395, %394 : vector<1x256xf32>
      %397 = arith.addf %393, %396 : vector<1x256xf32>
      %c39 = arith.constant 39 : index
      %398 = memref.load %arg3[%c39] : memref<98xf32, #tpu.memory_space<smem>>
      %c88 = arith.constant 88 : index
      %399 = memref.load %arg3[%c88] : memref<98xf32, #tpu.memory_space<smem>>
      %400 = vector.extract_strided_slice %18 {offsets = [0, 84], sizes = [1, 256], strides = [1, 1]} : vector<1x358xf32> to vector<1x256xf32>
      %401 = vector.broadcast %398 : f32 to vector<1x256xf32>
      %402 = arith.mulf %401, %400 : vector<1x256xf32>
      %403 = arith.addf %397, %402 : vector<1x256xf32>
      %404 = vector.extract_strided_slice %19 {offsets = [0, 84], sizes = [1, 256], strides = [1, 1]} : vector<1x358xf32> to vector<1x256xf32>
      %405 = vector.broadcast %399 : f32 to vector<1x256xf32>
      %406 = arith.mulf %405, %404 : vector<1x256xf32>
      %407 = arith.addf %403, %406 : vector<1x256xf32>
      %c46 = arith.constant 46 : index
      %408 = memref.load %arg3[%c46] : memref<98xf32, #tpu.memory_space<smem>>
      %c95 = arith.constant 95 : index
      %409 = memref.load %arg3[%c95] : memref<98xf32, #tpu.memory_space<smem>>
      %410 = vector.extract_strided_slice %18 {offsets = [0, 100], sizes = [1, 256], strides = [1, 1]} : vector<1x358xf32> to vector<1x256xf32>
      %411 = vector.broadcast %408 : f32 to vector<1x256xf32>
      %412 = arith.mulf %411, %410 : vector<1x256xf32>
      %413 = arith.addf %407, %412 : vector<1x256xf32>
      %414 = vector.extract_strided_slice %19 {offsets = [0, 100], sizes = [1, 256], strides = [1, 1]} : vector<1x358xf32> to vector<1x256xf32>
      %415 = vector.broadcast %409 : f32 to vector<1x256xf32>
      %416 = arith.mulf %415, %414 : vector<1x256xf32>
      %417 = arith.addf %413, %416 : vector<1x256xf32>
      %c-1_i32 = arith.constant -1 : i32
      %418 = vector.broadcast %c-1_i32 : i32 to vector<1x256xi32>
      %419 = arith.cmpi sge, %36, %418 : vector<1x256xi32>
      %c15_i32 = arith.constant 15 : i32
      %420 = vector.broadcast %c15_i32 : i32 to vector<1x256xi32>
      %421 = arith.cmpi slt, %36, %420 : vector<1x256xi32>
      %422 = arith.andi %419, %421 : vector<1x256xi1>
      %cst_31 = arith.constant 0.000000e+00 : f32
      %423 = vector.broadcast %cst_31 : f32 to vector<1x256xf32>
      %424 = arith.select %422, %417, %423 : vector<1x256xi1>, vector<1x256xf32>
      %425 = arith.addf %346, %424 : vector<1x256xf32>
      %cst_32 = arith.constant 0.000000e+00 : f32
      %426 = vector.broadcast %cst_32 : f32 to vector<1x256xf32>
      %c5 = arith.constant 5 : index
      %427 = memref.load %arg3[%c5] : memref<98xf32, #tpu.memory_space<smem>>
      %c54 = arith.constant 54 : index
      %428 = memref.load %arg3[%c54] : memref<98xf32, #tpu.memory_space<smem>>
      %429 = vector.extract_strided_slice %18 {offsets = [0, 5], sizes = [1, 256], strides = [1, 1]} : vector<1x358xf32> to vector<1x256xf32>
      %430 = vector.broadcast %427 : f32 to vector<1x256xf32>
      %431 = arith.mulf %430, %429 : vector<1x256xf32>
      %432 = arith.addf %426, %431 : vector<1x256xf32>
      %433 = vector.extract_strided_slice %19 {offsets = [0, 5], sizes = [1, 256], strides = [1, 1]} : vector<1x358xf32> to vector<1x256xf32>
      %434 = vector.broadcast %428 : f32 to vector<1x256xf32>
      %435 = arith.mulf %434, %433 : vector<1x256xf32>
      %436 = arith.addf %432, %435 : vector<1x256xf32>
      %c12 = arith.constant 12 : index
      %437 = memref.load %arg3[%c12] : memref<98xf32, #tpu.memory_space<smem>>
      %c61 = arith.constant 61 : index
      %438 = memref.load %arg3[%c61] : memref<98xf32, #tpu.memory_space<smem>>
      %439 = vector.extract_strided_slice %18 {offsets = [0, 21], sizes = [1, 256], strides = [1, 1]} : vector<1x358xf32> to vector<1x256xf32>
      %440 = vector.broadcast %437 : f32 to vector<1x256xf32>
      %441 = arith.mulf %440, %439 : vector<1x256xf32>
      %442 = arith.addf %436, %441 : vector<1x256xf32>
      %443 = vector.extract_strided_slice %19 {offsets = [0, 21], sizes = [1, 256], strides = [1, 1]} : vector<1x358xf32> to vector<1x256xf32>
      %444 = vector.broadcast %438 : f32 to vector<1x256xf32>
      %445 = arith.mulf %444, %443 : vector<1x256xf32>
      %446 = arith.addf %442, %445 : vector<1x256xf32>
      %c19 = arith.constant 19 : index
      %447 = memref.load %arg3[%c19] : memref<98xf32, #tpu.memory_space<smem>>
      %c68 = arith.constant 68 : index
      %448 = memref.load %arg3[%c68] : memref<98xf32, #tpu.memory_space<smem>>
      %449 = vector.extract_strided_slice %18 {offsets = [0, 37], sizes = [1, 256], strides = [1, 1]} : vector<1x358xf32> to vector<1x256xf32>
      %450 = vector.broadcast %447 : f32 to vector<1x256xf32>
      %451 = arith.mulf %450, %449 : vector<1x256xf32>
      %452 = arith.addf %446, %451 : vector<1x256xf32>
      %453 = vector.extract_strided_slice %19 {offsets = [0, 37], sizes = [1, 256], strides = [1, 1]} : vector<1x358xf32> to vector<1x256xf32>
      %454 = vector.broadcast %448 : f32 to vector<1x256xf32>
      %455 = arith.mulf %454, %453 : vector<1x256xf32>
      %456 = arith.addf %452, %455 : vector<1x256xf32>
      %c26 = arith.constant 26 : index
      %457 = memref.load %arg3[%c26] : memref<98xf32, #tpu.memory_space<smem>>
      %c75 = arith.constant 75 : index
      %458 = memref.load %arg3[%c75] : memref<98xf32, #tpu.memory_space<smem>>
      %459 = vector.extract_strided_slice %18 {offsets = [0, 53], sizes = [1, 256], strides = [1, 1]} : vector<1x358xf32> to vector<1x256xf32>
      %460 = vector.broadcast %457 : f32 to vector<1x256xf32>
      %461 = arith.mulf %460, %459 : vector<1x256xf32>
      %462 = arith.addf %456, %461 : vector<1x256xf32>
      %463 = vector.extract_strided_slice %19 {offsets = [0, 53], sizes = [1, 256], strides = [1, 1]} : vector<1x358xf32> to vector<1x256xf32>
      %464 = vector.broadcast %458 : f32 to vector<1x256xf32>
      %465 = arith.mulf %464, %463 : vector<1x256xf32>
      %466 = arith.addf %462, %465 : vector<1x256xf32>
      %c33 = arith.constant 33 : index
      %467 = memref.load %arg3[%c33] : memref<98xf32, #tpu.memory_space<smem>>
      %c82 = arith.constant 82 : index
      %468 = memref.load %arg3[%c82] : memref<98xf32, #tpu.memory_space<smem>>
      %469 = vector.extract_strided_slice %18 {offsets = [0, 69], sizes = [1, 256], strides = [1, 1]} : vector<1x358xf32> to vector<1x256xf32>
      %470 = vector.broadcast %467 : f32 to vector<1x256xf32>
      %471 = arith.mulf %470, %469 : vector<1x256xf32>
      %472 = arith.addf %466, %471 : vector<1x256xf32>
      %473 = vector.extract_strided_slice %19 {offsets = [0, 69], sizes = [1, 256], strides = [1, 1]} : vector<1x358xf32> to vector<1x256xf32>
      %474 = vector.broadcast %468 : f32 to vector<1x256xf32>
      %475 = arith.mulf %474, %473 : vector<1x256xf32>
      %476 = arith.addf %472, %475 : vector<1x256xf32>
      %c40 = arith.constant 40 : index
      %477 = memref.load %arg3[%c40] : memref<98xf32, #tpu.memory_space<smem>>
      %c89 = arith.constant 89 : index
      %478 = memref.load %arg3[%c89] : memref<98xf32, #tpu.memory_space<smem>>
      %479 = vector.extract_strided_slice %18 {offsets = [0, 85], sizes = [1, 256], strides = [1, 1]} : vector<1x358xf32> to vector<1x256xf32>
      %480 = vector.broadcast %477 : f32 to vector<1x256xf32>
      %481 = arith.mulf %480, %479 : vector<1x256xf32>
      %482 = arith.addf %476, %481 : vector<1x256xf32>
      %483 = vector.extract_strided_slice %19 {offsets = [0, 85], sizes = [1, 256], strides = [1, 1]} : vector<1x358xf32> to vector<1x256xf32>
      %484 = vector.broadcast %478 : f32 to vector<1x256xf32>
      %485 = arith.mulf %484, %483 : vector<1x256xf32>
      %486 = arith.addf %482, %485 : vector<1x256xf32>
      %c47 = arith.constant 47 : index
      %487 = memref.load %arg3[%c47] : memref<98xf32, #tpu.memory_space<smem>>
      %c96 = arith.constant 96 : index
      %488 = memref.load %arg3[%c96] : memref<98xf32, #tpu.memory_space<smem>>
      %489 = vector.extract_strided_slice %18 {offsets = [0, 101], sizes = [1, 256], strides = [1, 1]} : vector<1x358xf32> to vector<1x256xf32>
      %490 = vector.broadcast %487 : f32 to vector<1x256xf32>
      %491 = arith.mulf %490, %489 : vector<1x256xf32>
      %492 = arith.addf %486, %491 : vector<1x256xf32>
      %493 = vector.extract_strided_slice %19 {offsets = [0, 101], sizes = [1, 256], strides = [1, 1]} : vector<1x358xf32> to vector<1x256xf32>
      %494 = vector.broadcast %488 : f32 to vector<1x256xf32>
      %495 = arith.mulf %494, %493 : vector<1x256xf32>
      %496 = arith.addf %492, %495 : vector<1x256xf32>
      %c-2_i32 = arith.constant -2 : i32
      %497 = vector.broadcast %c-2_i32 : i32 to vector<1x256xi32>
      %498 = arith.cmpi sge, %36, %497 : vector<1x256xi32>
      %c14_i32 = arith.constant 14 : i32
      %499 = vector.broadcast %c14_i32 : i32 to vector<1x256xi32>
      %500 = arith.cmpi slt, %36, %499 : vector<1x256xi32>
      %501 = arith.andi %498, %500 : vector<1x256xi1>
      %cst_33 = arith.constant 0.000000e+00 : f32
      %502 = vector.broadcast %cst_33 : f32 to vector<1x256xf32>
      %503 = arith.select %501, %496, %502 : vector<1x256xi1>, vector<1x256xf32>
      %504 = arith.addf %425, %503 : vector<1x256xf32>
      %cst_34 = arith.constant 0.000000e+00 : f32
      %505 = vector.broadcast %cst_34 : f32 to vector<1x256xf32>
      %c6 = arith.constant 6 : index
      %506 = memref.load %arg3[%c6] : memref<98xf32, #tpu.memory_space<smem>>
      %c55 = arith.constant 55 : index
      %507 = memref.load %arg3[%c55] : memref<98xf32, #tpu.memory_space<smem>>
      %508 = vector.extract_strided_slice %18 {offsets = [0, 6], sizes = [1, 256], strides = [1, 1]} : vector<1x358xf32> to vector<1x256xf32>
      %509 = vector.broadcast %506 : f32 to vector<1x256xf32>
      %510 = arith.mulf %509, %508 : vector<1x256xf32>
      %511 = arith.addf %505, %510 : vector<1x256xf32>
      %512 = vector.extract_strided_slice %19 {offsets = [0, 6], sizes = [1, 256], strides = [1, 1]} : vector<1x358xf32> to vector<1x256xf32>
      %513 = vector.broadcast %507 : f32 to vector<1x256xf32>
      %514 = arith.mulf %513, %512 : vector<1x256xf32>
      %515 = arith.addf %511, %514 : vector<1x256xf32>
      %c13 = arith.constant 13 : index
      %516 = memref.load %arg3[%c13] : memref<98xf32, #tpu.memory_space<smem>>
      %c62 = arith.constant 62 : index
      %517 = memref.load %arg3[%c62] : memref<98xf32, #tpu.memory_space<smem>>
      %518 = vector.extract_strided_slice %18 {offsets = [0, 22], sizes = [1, 256], strides = [1, 1]} : vector<1x358xf32> to vector<1x256xf32>
      %519 = vector.broadcast %516 : f32 to vector<1x256xf32>
      %520 = arith.mulf %519, %518 : vector<1x256xf32>
      %521 = arith.addf %515, %520 : vector<1x256xf32>
      %522 = vector.extract_strided_slice %19 {offsets = [0, 22], sizes = [1, 256], strides = [1, 1]} : vector<1x358xf32> to vector<1x256xf32>
      %523 = vector.broadcast %517 : f32 to vector<1x256xf32>
      %524 = arith.mulf %523, %522 : vector<1x256xf32>
      %525 = arith.addf %521, %524 : vector<1x256xf32>
      %c20 = arith.constant 20 : index
      %526 = memref.load %arg3[%c20] : memref<98xf32, #tpu.memory_space<smem>>
      %c69 = arith.constant 69 : index
      %527 = memref.load %arg3[%c69] : memref<98xf32, #tpu.memory_space<smem>>
      %528 = vector.extract_strided_slice %18 {offsets = [0, 38], sizes = [1, 256], strides = [1, 1]} : vector<1x358xf32> to vector<1x256xf32>
      %529 = vector.broadcast %526 : f32 to vector<1x256xf32>
      %530 = arith.mulf %529, %528 : vector<1x256xf32>
      %531 = arith.addf %525, %530 : vector<1x256xf32>
      %532 = vector.extract_strided_slice %19 {offsets = [0, 38], sizes = [1, 256], strides = [1, 1]} : vector<1x358xf32> to vector<1x256xf32>
      %533 = vector.broadcast %527 : f32 to vector<1x256xf32>
      %534 = arith.mulf %533, %532 : vector<1x256xf32>
      %535 = arith.addf %531, %534 : vector<1x256xf32>
      %c27 = arith.constant 27 : index
      %536 = memref.load %arg3[%c27] : memref<98xf32, #tpu.memory_space<smem>>
      %c76 = arith.constant 76 : index
      %537 = memref.load %arg3[%c76] : memref<98xf32, #tpu.memory_space<smem>>
      %538 = vector.extract_strided_slice %18 {offsets = [0, 54], sizes = [1, 256], strides = [1, 1]} : vector<1x358xf32> to vector<1x256xf32>
      %539 = vector.broadcast %536 : f32 to vector<1x256xf32>
      %540 = arith.mulf %539, %538 : vector<1x256xf32>
      %541 = arith.addf %535, %540 : vector<1x256xf32>
      %542 = vector.extract_strided_slice %19 {offsets = [0, 54], sizes = [1, 256], strides = [1, 1]} : vector<1x358xf32> to vector<1x256xf32>
      %543 = vector.broadcast %537 : f32 to vector<1x256xf32>
      %544 = arith.mulf %543, %542 : vector<1x256xf32>
      %545 = arith.addf %541, %544 : vector<1x256xf32>
      %c34 = arith.constant 34 : index
      %546 = memref.load %arg3[%c34] : memref<98xf32, #tpu.memory_space<smem>>
      %c83 = arith.constant 83 : index
      %547 = memref.load %arg3[%c83] : memref<98xf32, #tpu.memory_space<smem>>
      %548 = vector.extract_strided_slice %18 {offsets = [0, 70], sizes = [1, 256], strides = [1, 1]} : vector<1x358xf32> to vector<1x256xf32>
      %549 = vector.broadcast %546 : f32 to vector<1x256xf32>
      %550 = arith.mulf %549, %548 : vector<1x256xf32>
      %551 = arith.addf %545, %550 : vector<1x256xf32>
      %552 = vector.extract_strided_slice %19 {offsets = [0, 70], sizes = [1, 256], strides = [1, 1]} : vector<1x358xf32> to vector<1x256xf32>
      %553 = vector.broadcast %547 : f32 to vector<1x256xf32>
      %554 = arith.mulf %553, %552 : vector<1x256xf32>
      %555 = arith.addf %551, %554 : vector<1x256xf32>
      %c41 = arith.constant 41 : index
      %556 = memref.load %arg3[%c41] : memref<98xf32, #tpu.memory_space<smem>>
      %c90 = arith.constant 90 : index
      %557 = memref.load %arg3[%c90] : memref<98xf32, #tpu.memory_space<smem>>
      %558 = vector.extract_strided_slice %18 {offsets = [0, 86], sizes = [1, 256], strides = [1, 1]} : vector<1x358xf32> to vector<1x256xf32>
      %559 = vector.broadcast %556 : f32 to vector<1x256xf32>
      %560 = arith.mulf %559, %558 : vector<1x256xf32>
      %561 = arith.addf %555, %560 : vector<1x256xf32>
      %562 = vector.extract_strided_slice %19 {offsets = [0, 86], sizes = [1, 256], strides = [1, 1]} : vector<1x358xf32> to vector<1x256xf32>
      %563 = vector.broadcast %557 : f32 to vector<1x256xf32>
      %564 = arith.mulf %563, %562 : vector<1x256xf32>
      %565 = arith.addf %561, %564 : vector<1x256xf32>
      %c48 = arith.constant 48 : index
      %566 = memref.load %arg3[%c48] : memref<98xf32, #tpu.memory_space<smem>>
      %c97 = arith.constant 97 : index
      %567 = memref.load %arg3[%c97] : memref<98xf32, #tpu.memory_space<smem>>
      %568 = vector.extract_strided_slice %18 {offsets = [0, 102], sizes = [1, 256], strides = [1, 1]} : vector<1x358xf32> to vector<1x256xf32>
      %569 = vector.broadcast %566 : f32 to vector<1x256xf32>
      %570 = arith.mulf %569, %568 : vector<1x256xf32>
      %571 = arith.addf %565, %570 : vector<1x256xf32>
      %572 = vector.extract_strided_slice %19 {offsets = [0, 102], sizes = [1, 256], strides = [1, 1]} : vector<1x358xf32> to vector<1x256xf32>
      %573 = vector.broadcast %567 : f32 to vector<1x256xf32>
      %574 = arith.mulf %573, %572 : vector<1x256xf32>
      %575 = arith.addf %571, %574 : vector<1x256xf32>
      %c-3_i32 = arith.constant -3 : i32
      %576 = vector.broadcast %c-3_i32 : i32 to vector<1x256xi32>
      %577 = arith.cmpi sge, %36, %576 : vector<1x256xi32>
      %c13_i32 = arith.constant 13 : i32
      %578 = vector.broadcast %c13_i32 : i32 to vector<1x256xi32>
      %579 = arith.cmpi slt, %36, %578 : vector<1x256xi32>
      %580 = arith.andi %577, %579 : vector<1x256xi1>
      %cst_35 = arith.constant 0.000000e+00 : f32
      %581 = vector.broadcast %cst_35 : f32 to vector<1x256xf32>
      %582 = arith.select %580, %575, %581 : vector<1x256xi1>, vector<1x256xf32>
      %583 = arith.addf %504, %582 : vector<1x256xf32>
      %584 = arith.negf %583 : vector<1x256xf32>
      %585 = math.exp %584 : vector<1x256xf32>
      %cst_36 = arith.constant 1.000000e+00 : f32
      %586 = vector.broadcast %cst_36 : f32 to vector<1x256xf32>
      %587 = arith.addf %586, %585 : vector<1x256xf32>
      %588 = arith.divf %586, %587 : vector<1x256xf32>
      %c0_37 = arith.constant 0 : index
      %c0_38 = arith.constant 0 : index
      %c0_39 = arith.constant 0 : index
      %589 = vector.load %arg4[%c0_37, %c0_38, %c0_39] : memref<1x1x256xf32, #tpu.memory_space<vmem>>, vector<1x1x256xf32>
      %590 = vector.shape_cast %589 : vector<1x1x256xf32> to vector<1x256xf32>
      %591 = vector.shape_cast %588 : vector<1x256xf32> to vector<1x1x256xf32>
      tpu.vector_store %arg4[%c0_37, %c0_38, %c0_39], %591 {strides = array<i32>} : memref<1x1x256xf32, #tpu.memory_space<vmem>>, vector<1x1x256xf32>,
    } else {
    }
    return
  }
  func.func @transform_0(%arg0: i32, %arg1: i32) -> (i32, i32, i32) {
    %c0_i32 = arith.constant 0 : i32
    %c0_i32_0 = arith.constant 0 : i32
    return %arg0, %arg1, %c0_i32 : i32, i32, i32
  }
  func.func @transform_1(%arg0: i32, %arg1: i32) -> i32 {
    %c0_i32 = arith.constant 0 : i32
    %c0_i32_0 = arith.constant 0 : i32
    return %c0_i32 : i32
  }
  func.func @transform_2(%arg0: i32, %arg1: i32) -> (i32, i32, i32) {
    %c0_i32 = arith.constant 0 : i32
    %c0_i32_0 = arith.constant 0 : i32
    %c0_i32_1 = arith.constant 0 : i32
    return %arg0, %c0_i32, %c0_i32_0 : i32, i32, i32
  }
}

</mosaic_0001>

<bundles_post_ra>
// kernel: tpu_custom_call.1
= control target key start
LH: loop header
LB: loop body
LE: loop exit
PB: predicated region body
PF: predicated region fallthrough
CT: control target
= control target key end

     0   :  { %7 = vsyncpa [#allocation5], 0  ;;  %s4366_s0 = inlined_call_operand.hbm [shape: f32[2,4,256], index: 0, kind: input, shape index: {}]   ;;  %s4367_s1 = inlined_call_operand.vmem [shape: f32[98], index: 1, kind: input, shape index: {}]   ;;  %s4368_s2 = inlined_call_operand.hbm [shape: f32[2,1,256], index: 2, kind: output, shape index: {}]  }
   0x1   :  { %9 = vsyncpa [#allocation5 + $0x1], 0 }
   0x2   :  { %10 = vsyncpa [#allocation7], 0 }
   0x3   :  { %11 = vsyncpa [#allocation6], 0 }
   0x4   :  { %13 = vsyncpa [#allocation6 + $0x1], 0  ;;  %s2951_s9 = smov 0   ;;  %s2953_s10 = smov 0  }
   0x5   :  { %s2955_s11 = smov 0   ;;  %s2957_s12 = smov 0  }
   0x6   :  { %s2959_s13 = smov 0   ;;  %s2961_s14 = smov 0  }
   0x7 LB: > { %s2572_s15 = sadd.s32 4294967295, %s2915_s14   ;;  %s2573_s16 = sadd.s32 4294967294, %s2915_s14   ;;  %s2915_s14 = sphi %s2961_s14, %s19_s14   ;;  %s2911_s13 = sphi %s2959_s13, %s4492_s13   ;;  %s2907_s12 = sphi %s2957_s12, %s4491_s12   ;;  %s2903_s11 = sphi %s2955_s11, %s4490_s11   ;;  %s2899_s10 = sphi %s2953_s10, %s4489_s10   ;;  %s2895_s9 = sphi %s2951_s9, %s4488_s9  }
   0x8   : > { %p53_p0 = scmp.ne.s32.totalorder %s2899_s10, %s2895_s9  ;;  %p2985_p1 = scmp.eq.s32.totalorder %s2572_s15, 0 }
   0x9   : > { %p2989_p2 = scmp.eq.s32.totalorder %s2572_s15, 1  ;;  %p104_p3 = scmp.eq.s32.totalorder %s2573_s16, 1 }
   0xa   : > { %p2995_p4 = por %p2985_p1, %p53_p0  ;;  %p2574_p5 = scmp.ge.s32.totalorder %s2915_s14, 1 }
   0xb   : > { %p3000_p6 = por %p104_p3, %p53_p0  ;;  %p111_p7 = scmp.lt.s32.totalorder %s2915_s14, 3 }
   0xc   : > { %s4394_s19 = scalar_select %p2995_p4, 1, 0 }
   0xd   : > { %s4395_s20 = scalar_select %p3000_p6, 1, 0 }
   0xe   : > { %s124_s23 = sshll.u32 %s4367_s1, 4  ;;  %p3008_p8 = pnand %p2574_p5, %p111_p7  ;;  %s125_s23 = int_to_ptr.vmem [resolvable:$true] %s124_s23 }
   0xf   : > { %s31_s26 = sadd.s32 1, %s2911_s13  ;;  %s40_s27 = sadd.s32 1, %s2903_s11 }
  0x10   : > { %p2698_p10 = pneg %p3008_p8  ;;  %p33_p12 = scmp.ge.s32.totalorder %s31_s26, 2 }
  0x11   : > { %s2788_s28 = scalar_lea.vmem %s125_s23, 16  ;;  %p2796_p7 = scmp.lt.s32.totalorder %s125_s23, %s125_s23 }
  0x12   : > { %p3017_p11 = pnand %p2698_p10, %p2985_p1  ;;  %p2789_p13 = scmp.ne.s32.totalorder %s125_s23, %s2788_s28 }
  0x13   : > { %p2797_p6 = scmp.lt.s32.totalorder %s2788_s28, %s2788_s28 }
  0x14   : > { %p2790_p0 = pneg %p3017_p11 }
  0x15   : > { %p2798_p9 = por %p2797_p6, %p2796_p7 }
  0x16   : > { %p2791_p3 = pnand %p2790_p0, %p2789_p13 }
  0x18   : > { %p2792_p5 = pneg %p2791_p3 }
  0x1a   : > { %p2799_p4 = pnand %p2798_p9, %p2792_p5 }
  0x1c   : > { %2802 = shalt.err (!%p2799_p4)
}
  0x1d   : > { %s2917_s29 = smov [#allocation8]   ;;  %s4494_s26 = smov (%p33_p12, %s31_s26), 0 }
  0x1e   : > { %2701 = dma.vmem_to_smem (!%p3017_p11), %s125_s23, 16, %s2917_s29, [#allocation7]  }
  0x1f   : > { %p47_p10 = scmp.ne.s32.totalorder %s2903_s11, %s2899_s10  ;;  %p48_p6 = scmp.eq.s32.totalorder %s2915_s14, 0 }
  0x20   : > { %s35_s30 = ssub.s32 %s2911_s13, %s4494_s26  ;;  %p2711_p4 = scmp.lt.s32.totalorder %s2915_s14, 2 }
  0x21   : > { %p38_p9 = scmp.eq.s32.totalorder %s35_s30, 0  ;;  %p49_p13 = por %p48_p6, %p47_p10 }
  0x22   : > { %p3037_p0 = por %p2989_p2, %p47_p10  ;;  %s135_s4 = sand.u32 1, %s2903_s11  }
  0x23   : > { %s3043_s5 = scalar_select %p38_p9, %s2903_s11, %s40_s27  }
  0x24   : > { %s2577_s6 = sshll.u32 %s135_s4, 3  ;;  %s2688_s7 = sshll.u32 %s2911_s13, 7 }
  0x25   : > { %s147_s16 = scalar_lea.hbm %s4366_s0, %s2688_s7  ;;  %s139_s21 = scalar_lea.vmem [#allocation4], %s2577_s6 }
  0x26   : > { %s149_s22 = sshll.u32 %s139_s21, 4  ;;  %p3049_p11 = pnand %p2711_p4, %p49_p13  ;;  %s150_s22 = int_to_ptr.vmem [resolvable:$true] %s149_s22 }
  0x27   : > { %s136_s18 = scalar_lea.sflag [#allocation5], %s135_s4  ;;  %s2816_s25 = scalar_lea.vmem %s150_s22, 128 }
  0x28   : > { %p2805_p2 = pneg %p3049_p11  ;;  %p2817_p12 = scmp.ne.s32.totalorder %s150_s22, %s2816_s25 }
  0x29   : > { %s2918_s27 = smov [#allocation4]  }
  0x2a   : > { %p2819_p3 = pnand %p2817_p12, %p2805_p2  ;;  %s2821_s28 = sshll.u32 %s2918_s27, 4  ;;  %s2822_s28 = int_to_ptr.vmem [resolvable:$false] %s2821_s28 }
  0x2b   : > { %s2823_s29 = scalar_lea.vmem %s2822_s28, 256  ;;  %p2824_p7 = scmp.lt.s32.totalorder %s150_s22, %s2822_s28 }
  0x2c   : > { %p2820_p5 = pneg %p2819_p3  ;;  %p2825_p10 = scmp.lt.s32.totalorder %s2823_s29, %s2816_s25 }
  0x2e   : > { %p2826_p6 = por %p2825_p10, %p2824_p7 }
  0x30   : > { %p2827_p9 = pnand %p2826_p6, %p2820_p5 }
  0x32   : > { %2830 = shalt.err (!%p2827_p9)
}
  0x33   : > { %2705 = dma.hbm_to_vmem [thread:$0]  (!%p3049_p11), %s147_s16, 128, %s150_s22, %s136_s18  }
  0x34   : > { %158 = sbr.rel (%p3008_p8) target bundleno = 1196 (0x4ac), region = 28 }
  0x39   : > { %s3060_s30 = sand.u32 1, %s2899_s10   ;;  %p4400_p4 = scmp.ne.s32.totalorder %s4394_s19, 0 }
  0x3a   : > { %s2581_s4 = sshll.u32 %s3060_s30, 3  ;;  %s161_s6 = scalar_lea.sflag [#allocation5], %s3060_s30 }
  0x3b   : > { %s164_s7 = scalar_lea.vmem [#allocation4], %s2581_s4 }
  0x3c   : > { %2882 = dma.done.wait (%p4400_p4), %s161_s6, 128  }
  0x3d   : > { %2884 = vsyncadd (%p4400_p4), %s161_s6, 4294967168 }
  0x3e   : > { %2886 = dma.done.wait (%p2985_p1), [#allocation7], 16  }
  0x3f   : > { %2888 = vsyncadd (%p2985_p1), [#allocation7], 4294967280 }
  0x40   : > { %173 = sfence }
  0x41   : > { %v4370_v0 = vlaneseq  ;;  %v200_v1 = vld [vmem:[%s164_s7] sm:$0xff]  ;;  %vm205_vm0 = vcmask 1043456   ;;  %v4401_v4 = vmov 0  ;;  %v2919_v6 = vmov -inf   ;;  %s2922_s17 = smov 51   ;;  %s2586_s19 = sld [smem:[#allocation8 + $0x38]] }
  0x42   : > { %v203_v2 = vcombine.high %v200_v1, %v200_v1  ;;  %v240_v3 = vsel %vm205_vm0, %v200_v1, -inf  ;;  %v2920_v8 = vmov 0.0   ;;  %v206_v9 = vsel %vm205_vm0, %v200_v1, 0.0  ;;  %s2588_s24 = sld [smem:[#allocation8 + $0x3f]]  ;;  %s2923_s8 = smov 112  }
  0x43   : > { %vm3073_vm1 = vcmp.lt.s32.totalorder %v4370_v0, 256  ;;  %v241_v5 = vrot.slane %v240_v3, 4  ;;  %v207_v13 = vrot.slane %v206_v9, 4  ;;  %v2921_v15 = vmov 1966171168   ;;  %s2590_s15 = sld [smem:[#allocation8 + $0x46]] }
  0x44   : > { %v4402_v4 = vsel %vm3073_vm1, 4294967295, %v4401_v4  ;;  %199 = vst.msk [vmem:[#allocation3] sm:$0x3] %vm3073_vm1, %v2919_v6  ;;  %v247_v7 = vsel %vm205_vm0, %v203_v2, -inf  ;;  %198 = vst.msk [vmem:[#allocation2] sm:$0x3] %vm3073_vm1, %v2920_v8  ;;  %v224_v16 = vunpack.c.l.s4 %v2921_v15 }
  0x45   : > { %4403 = vst [vmem:[#allocation13_spill] sm:$0xff] %v4402_v4  ;;  %v213_v10 = vsel %vm205_vm0, %v203_v2, 0.0  ;;  %v242_v11 = vmax.f32 %v240_v3, %v241_v5  ;;  %v248_v12 = vrot.slane %v247_v7, 4  ;;  %v208_v19 = vadd.f32 %v207_v13, %v206_v9  ;;  %s2592_s16 = sld [smem:[#allocation8 + $0x4d]]  ;;  %s2924_s21 = smov 96  }
  0x46   : > { %v214_v14 = vrot.slane %v213_v10, 4  ;;  %v225_v25 = vunpack.c.0.s8 %v224_v16  ;;  %v227_v26 = vshrl.u32 %v4370_v0, 7  ;;  %vm296_vm2 = vcmask 416768   ;;  %s2594_s22 = sld [smem:[#allocation8 + $0x54]]  ;;  %s2925_s23 = smov 80  }
  0x47   : > { %v243_v17 = vrot.slane %v242_v11, 2  ;;  %v249_v18 = vmax.f32 %v247_v7, %v248_v12  ;;  %v209_v23 = vrot.slane %v208_v19, 2  ;;  %v383_v56 = vstv %s2586_s19  ;;  %s2596_s18 = sld [smem:[#allocation8 + $0x5b]]  ;;  %s2926_s25 = smov 64  }
  0x48   : > { %v215_v20 = vadd.f32 %v214_v14, %v213_v10  ;;  %v3082_v35 = vsub.s32 %v225_v25, %v227_v26  ;;  %v286_v45 = vsub.s32 0, %v227_v26  ;;  %v290_v49 = vsub.s32 1, %v227_v26  ;;  %s2600_s27 = sld [smem:[#allocation8 + $0x39]]  ;;  %s2927_s28 = smov 48  }
  0x49   : > { %v244_v21 = vmax.f32 %v242_v11, %v243_v17  ;;  %v250_v22 = vrot.slane %v249_v18, 2  ;;  %v210_v29 = vadd.f32 %v209_v23, %v208_v19  ;;  %v424_v2 = vstv %s2588_s24  ;;  %s2602_s29 = sld [smem:[#allocation8 + $0x40]]  ;;  %s2928_s7 = smov 32  }
  0x4a   : > { %v216_v24 = vrot.slane %v215_v20, 2  ;;  %4404 = vst [vmem:[#allocation14_spill] sm:$0xff] %v3082_v35  ;;  %v465_v6 = vstv %s2590_s15  ;;  %s2598_s4 = sld [smem:[#allocation8 + $0x32]]  ;;  %vm376_vm3 = vcmask 916480   ;;  %vm417_vm4 = vcmask 785408  }
  0x4b   : > { %v245_v27 = vrot.slane %v244_v21, 1  ;;  %v251_v28 = vmax.f32 %v249_v18, %v250_v22  ;;  %v211_v33 = vrot.slane %v210_v29, 1  ;;  %v239_v42 = vld [vmem:[#allocation3] sm:$0x3]  ;;  %v201_v46 = vld [vmem:[#allocation2] sm:$0x3]  ;;  %v506_v9 = vstv %s2592_s16 }
  0x4c   : > { %v217_v30 = vadd.f32 %v216_v24, %v215_v20  ;;  %v547_v12 = vstv %s2594_s22  ;;  %s2597_s6 = sld [smem:[#allocation8 + $0x1]]  ;;  %vm458_vm5 = vcmask 654336   ;;  %vm499_vm6 = vcmask 523264  }
  0x4d   : > { %v246_v31 = vmax.f32 %v244_v21, %v245_v27  ;;  %v252_v32 = vrot.slane %v251_v28, 1  ;;  %v212_v37 = vadd.f32 %v211_v33, %v210_v29  ;;  %v588_v16 = vstv %s2596_s18  ;;  %s2606_s19 = sld [smem:[#allocation8 + $0x4e]] }
  0x4e   : > { %v218_v34 = vrot.slane %v217_v30, 1  ;;  %v656_v19 = vstv %s2600_s27  ;;  %s2608_s24 = sld [smem:[#allocation8 + $0x55]]  ;;  %vm540_vm7 = vcmask 392192   ;;  %vm581_vm8 = vcmask 261120  }
  0x4f   : > { %v253_v36 = vmax.f32 %v251_v28, %v252_v32  ;;  %v700_v24 = vstv %s2602_s29  ;;  %s2585_s15 = sld [smem:[#allocation8 + $0x7]]  ;;  %vm912_vm9 = vcmask 1039360   ;;  %vm1216_vm11 = vcmask 1031168  }
  0x50   : > { %v219_v38 = vadd.f32 %v218_v34, %v217_v30  ;;  %v3138_v28 = vstv %s2598_s4  ;;  %s2587_s16 = sld [smem:[#allocation8 + $0xe]]  ;;  %vm1816_vm0 = vcmask 1014784  }
  0x51   : > { %v256_v39 = vcombine.low %v246_v31, %v253_v36  ;;  %s2589_s22 = sld [smem:[#allocation8 + $0x15]] }
  0x52   : > { %v222_v40 = vcombine.low %v212_v37, %v219_v38  ;;  %v3136_v27 = vstv %s2597_s6  ;;  %s2591_s18 = sld [smem:[#allocation8 + $0x1c]] }
  0x53   : > { %v263_v41 = vrot.slane %v256_v39, %v3082_v35  ;;  %v788_v36 = vstv %s2606_s19  ;;  %s2593_s27 = sld [smem:[#allocation8 + $0x23]] }
  0x54   : > { %v229_v43 = vrot.slane %v222_v40, %v3082_v35  ;;  %v832_v39 = vstv %s2608_s24  ;;  %s2610_s29 = sld [smem:[#allocation8 + $0x5c]] }
  0x55   : > { %v270_v44 = vrot.slane %v263_v41, %v3082_v35  ;;  %v3156_v40 = vstv %s2585_s15  ;;  %s2595_s4 = sld [smem:[#allocation8 + $0x2a]] }
  0x56   : > { %v236_v47 = vrot.slane %v229_v43, %v3082_v35  ;;  %s2599_s6 = sld [smem:[#allocation8 + $0x8]] }
  0x57   : > { %v272_v48 = vmax.f32 %v239_v42, %v270_v44  ;;  %s2603_s19 = sld [smem:[#allocation8 + $0x16]] }
  0x58   : > { %v238_v50 = vadd.f32 %v236_v47, %v201_v46  ;;  %s2605_s24 = sld [smem:[#allocation8 + $0x1d]] }
  0x59   : > { %v307_v51 = vrot.slane %v272_v48, %v286_v45  ;;  %278 = vst.msk [vmem:[#allocation3] sm:$0x3] %vm3073_vm1, %v272_v48  ;;  %v311_v53 = vrot.slane %v272_v48, %v290_v49  ;;  %s2607_s15 = sld [smem:[#allocation8 + $0x24]] }
  0x5a   : > { %v282_v52 = vmul.f32 0.25, %v238_v50  ;;  %277 = vst.msk [vmem:[#allocation2] sm:$0x3] %vm3073_vm1, %v238_v50 }
  0x5b   : > { %312 = vrot.lane.b32.xlu1 %v307_v51, %s2922_s17 }
  0x5c   : > { %v287_v54 = vrot.slane %v282_v52, %v286_v45  ;;  %v291_v55 = vrot.slane %v282_v52, %v290_v49  ;;  %v404_v49 = vstv %s2587_s16  ;;  %s2609_s16 = sld [smem:[#allocation8 + $0x2b]] }
  0x5e   : > { %292 = vrot.lane.b32.xlu0 %v287_v54, %s2922_s17  ;;  %v445_v54 = vstv %s2589_s22  ;;  %s2613_s22 = sld [smem:[#allocation8 + $0x9]] }
  0x5f   : > { %314 = vrot.lane.b32.xlu1 %v311_v53, %s2922_s17 }
  0x62   : > { %294 = vrot.lane.b32.xlu0 %v291_v55, %s2922_s17  ;;  %s2604_s17 = sld [smem:[#allocation8 + $0x47]] }
  0x68   : > { %v744_v31 = vstv %s2604_s17  ;;  %s2601_s17 = sld [smem:[#allocation8 + $0xf]] }
  0xcd   : > { %v313_v57 = vpop.permute.xlu1 %312 }
  0xce   : > { %v3093_v58 = vsel %vm296_vm2, 0.0, %v313_v57 }
  0xcf   : > { %v384_v59 = vmul.f32 %v383_v56, %v3093_v58  ;;  %v425_v3 = vmul.f32 %v424_v2, %v3093_v58  ;;  %v466_v10 = vmul.f32 %v465_v6, %v3093_v58  ;;  %v507_v17 = vmul.f32 %v506_v9, %v3093_v58 }
  0xd0   : > { %v293_v15 = vpop.permute.xlu0 %292  ;;  %v548_v25 = vmul.f32 %v547_v12, %v3093_v58  ;;  %v589_v37 = vmul.f32 %v588_v16, %v3093_v58  ;;  %v657_v45 = vmul.f32 %v656_v19, %v3093_v58  ;;  %v701_v50 = vmul.f32 %v700_v24, %v3093_v58 }
  0xd1   : > { %390 = vrot.lane.b32.xlu1 %v384_v59, %s2923_s8  ;;  %v315_v60 = vpop.permute.xlu1 %314  ;;  %v3161_v43 = vsel %vm296_vm2, 0.0, %v293_v15  ;;  %v745_v55 = vmul.f32 %v744_v31, %v3093_v58 }
  0xd2   : > { %v3098_v61 = vsel %vm296_vm2, %v313_v57, %v315_v60  ;;  %v3101_v62 = vsel %vm296_vm2, %v315_v60, 0.0  ;;  %v364_v44 = vmul.f32 %v3156_v40, %v3161_v43  ;;  %v405_v51 = vmul.f32 %v404_v49, %v3161_v43 }
  0xd3   : > { %4405 = vst [vmem:[#allocation15_spill] sm:$0xff] %v3098_v61  ;;  %4406 = vst [vmem:[#allocation16_spill] sm:$0xff] %v3101_v62  ;;  %v386_v63 = vmul.f32 %v383_v56, %v3101_v62  ;;  %v385_v1 = vmul.f32 %v383_v56, %v3098_v61  ;;  %v426_v5 = vmul.f32 %v424_v2, %v3098_v61  ;;  %v486_v60 = vstv %s2591_s18  ;;  %s2614_s18 = sld [smem:[#allocation8 + $0x3a]] }
  0xd4   : > { %v427_v7 = vmul.f32 %v424_v2, %v3101_v62  ;;  %v467_v8 = vmul.f32 %v465_v6, %v3098_v61  ;;  %v508_v11 = vmul.f32 %v506_v9, %v3098_v61  ;;  %v468_v13 = vmul.f32 %v465_v6, %v3101_v62  ;;  %v295_v20 = vpop.permute.xlu0 %294 }
  0xd5   : > { %394 = vrot.lane.b32.xlu1 %v386_v63, %s2923_s8  ;;  %392 = vrot.lane.b32.xlu0 %v385_v1, %s2923_s8  ;;  %v549_v14 = vmul.f32 %v547_v12, %v3098_v61  ;;  %v590_v18 = vmul.f32 %v588_v16, %v3098_v61  ;;  %v509_v21 = vmul.f32 %v506_v9, %v3101_v62  ;;  %v3169_v46 = vsel %vm296_vm2, %v295_v20, 0.0 }
  0xd6   : > { %v658_v22 = vmul.f32 %v656_v19, %v3098_v61  ;;  %v3132_v23 = vsel %vm296_vm2, %v293_v15, %v295_v20  ;;  %v702_v26 = vmul.f32 %v700_v24, %v3098_v61  ;;  %v628_v30 = vmul.f32 %v3138_v28, %v3098_v61 }
  0xd7   : > { %4407 = vst [vmem:[#allocation17_spill] sm:$0xff] %v3132_v23  ;;  %v621_v29 = vmul.f32 %v3136_v27, %v3132_v23  ;;  %v550_v32 = vmul.f32 %v547_v12, %v3101_v62  ;;  %v746_v33 = vmul.f32 %v744_v31, %v3098_v61  ;;  %v790_v38 = vmul.f32 %v788_v36, %v3098_v61 }
  0xd8   : > { %v591_v41 = vmul.f32 %v588_v16, %v3101_v62  ;;  %v834_v42 = vmul.f32 %v832_v39, %v3098_v61  ;;  %v366_v47 = vmul.f32 %v3156_v40, %v3169_v46  ;;  %v659_v48 = vmul.f32 %v656_v19, %v3101_v62 }
  0xd9   : > { %431 = vrot.lane.b32.xlu1 %v425_v3, %s2924_s21  ;;  %433 = vrot.lane.b32.xlu0 %v426_v5, %s2924_s21  ;;  %v3148_v34 = vadd.f32 %v628_v30, %v621_v29  ;;  %v703_v52 = vmul.f32 %v700_v24, %v3101_v62  ;;  %v407_v53 = vmul.f32 %v404_v49, %v3169_v46  ;;  %v527_v5 = vstv %s2593_s27  ;;  %s2615_s27 = sld [smem:[#allocation8 + $0x10]] }
  0xda   : > { %v446_v56 = vmul.f32 %v445_v54, %v3161_v43  ;;  %v747_v57 = vmul.f32 %v744_v31, %v3101_v62  ;;  %v448_v59 = vmul.f32 %v445_v54, %v3169_v46  ;;  %v789_v63 = vmul.f32 %v788_v36, %v3093_v58 }
  0xdb   : > { %v487_v1 = vmul.f32 %v486_v60, %v3161_v43  ;;  %v791_v2 = vmul.f32 %v788_v36, %v3101_v62  ;;  %v489_v3 = vmul.f32 %v486_v60, %v3169_v46  ;;  %v833_v6 = vmul.f32 %v832_v39, %v3093_v58 }
  0xdc   : > { %v530_v9 = vmul.f32 %v527_v5, %v3169_v46  ;;  %v365_v15 = vmul.f32 %v3156_v40, %v3132_v23  ;;  %v635_v16 = vstv %s2599_s6  ;;  %v447_v20 = vmul.f32 %v445_v54, %v3132_v23  ;;  %s2618_s6 = sld [smem:[#allocation8 + $0x48]] }
  0xdd   : > { %435 = vrot.lane.b32.xlu1 %v427_v7, %s2924_s21  ;;  %474 = vrot.lane.b32.xlu0 %v467_v8, %s2925_s23  ;;  %v528_v7 = vmul.f32 %v527_v5, %v3161_v43  ;;  %v835_v8 = vmul.f32 %v832_v39, %v3101_v62  ;;  %v638_v19 = vmul.f32 %v635_v16, %v3169_v46  ;;  %v723_v29 = vstv %s2603_s19  ;;  %s2620_s19 = sld [smem:[#allocation8 + $0x4f]] }
  0xde   : > { %v488_v24 = vmul.f32 %v486_v60, %v3132_v23  ;;  %v724_v30 = vmul.f32 %v723_v29, %v3161_v43  ;;  %v637_v36 = vmul.f32 %v635_v16, %v3132_v23  ;;  %vm1514_vm2 = vcmask 1022976  }
  0xe1   : > { %472 = vrot.lane.b32.xlu1 %v466_v10, %s2925_s23  ;;  %515 = vrot.lane.b32.xlu0 %v508_v11, %s2926_s25  ;;  %v3208_v10 = vstv %s2610_s29  ;;  %v568_v11 = vstv %s2595_s4  ;;  %s2616_s29 = sld [smem:[#allocation8 + $0x41]] }
  0xe2   : > { %v877_v12 = vmul.f32 %v3208_v10, %v3093_v58  ;;  %v570_v31 = vmul.f32 %v568_v11, %v3132_v23  ;;  %s2617_s4 = sld [smem:[#allocation8 + $0x17]] }
  0xe5   : > { %476 = vrot.lane.b32.xlu1 %v468_v13, %s2925_s23  ;;  %556 = vrot.lane.b32.xlu0 %v549_v14, %s2927_s28  ;;  %v569_v13 = vmul.f32 %v568_v11, %v3161_v43  ;;  %v571_v14 = vmul.f32 %v568_v11, %v3169_v46  ;;  %v878_v11 = vmul.f32 %v3208_v10, %v3098_v61 }
  0xe9   : > { %513 = vrot.lane.b32.xlu1 %v507_v17, %s2926_s25  ;;  %597 = vrot.lane.b32.xlu0 %v590_v18, %s2928_s7  ;;  %v636_v17 = vmul.f32 %v635_v16, %v3161_v43  ;;  %v406_v18 = vmul.f32 %v404_v49, %v3132_v23 }
  0xed   : > { %517 = vrot.lane.b32.xlu1 %v509_v21, %s2926_s25  ;;  %665 = vrot.lane.b32.xlu0 %v658_v22, %s2923_s8  ;;  %v679_v21 = vstv %s2601_s17  ;;  %s2619_s17 = sld [smem:[#allocation8 + $0x1e]] }
  0xee   : > { %v680_v22 = vmul.f32 %v679_v21, %v3161_v43 }
  0xf1   : > { %554 = vrot.lane.b32.xlu1 %v548_v25, %s2927_s28  ;;  %709 = vrot.lane.b32.xlu0 %v702_v26, %s2924_s21  ;;  %v682_v25 = vmul.f32 %v679_v21, %v3169_v46  ;;  %v529_v26 = vmul.f32 %v527_v5, %v3132_v23 }
  0xf5   : > { %558 = vrot.lane.b32.xlu1 %v550_v32, %s2927_s28  ;;  %753 = vrot.lane.b32.xlu0 %v746_v33, %s2925_s23  ;;  %v726_v33 = vmul.f32 %v723_v29, %v3169_v46 }
  0xf9   : > { %595 = vrot.lane.b32.xlu1 %v589_v37, %s2928_s7  ;;  %797 = vrot.lane.b32.xlu0 %v790_v38, %s2926_s25  ;;  %v767_v37 = vstv %s2605_s24  ;;  %s2621_s24 = sld [smem:[#allocation8 + $0x25]] }
  0xfa   : > { %v768_v40 = vmul.f32 %v767_v37, %v3161_v43 }
  0xfd   : > { %599 = vrot.lane.b32.xlu1 %v591_v41, %s2928_s7  ;;  %841 = vrot.lane.b32.xlu0 %v834_v42, %s2927_s28  ;;  %v681_v41 = vmul.f32 %v679_v21, %v3132_v23  ;;  %v983_v21 = vstv %s2615_s27  ;;  %s2628_s27 = sld [smem:[#allocation8 + $0x3b]] }
 0x101   : > { %663 = vrot.lane.b32.xlu1 %v657_v45, %s2923_s8  ;;  %370 = vrot.lane.b32.xlu0 %v364_v44, %s2923_s8  ;;  %v770_v45 = vmul.f32 %v767_v37, %v3169_v46 }
 0x105   : > { %667 = vrot.lane.b32.xlu1 %v659_v48, %s2923_s8  ;;  %374 = vrot.lane.b32.xlu0 %v366_v47, %s2923_s8  ;;  %v725_v47 = vmul.f32 %v723_v29, %v3132_v23  ;;  %v811_v48 = vstv %s2607_s15  ;;  %s2622_s15 = sld [smem:[#allocation8 + $0x56]] }
 0x109   : > { %707 = vrot.lane.b32.xlu1 %v701_v50, %s2924_s21  ;;  %411 = vrot.lane.b32.xlu0 %v405_v51, %s2924_s21  ;;  %v812_v51 = vmul.f32 %v811_v48, %v3161_v43 }
 0x10d   : > { %711 = vrot.lane.b32.xlu1 %v703_v52, %s2924_s21  ;;  %415 = vrot.lane.b32.xlu0 %v407_v53, %s2924_s21  ;;  %v769_v52 = vmul.f32 %v767_v37, %v3132_v23 }
 0x111   : > { %751 = vrot.lane.b32.xlu1 %v745_v55, %s2925_s23  ;;  %452 = vrot.lane.b32.xlu0 %v446_v56, %s2925_s23  ;;  %v814_v55 = vmul.f32 %v811_v48, %v3169_v46  ;;  %v813_v56 = vmul.f32 %v811_v48, %v3132_v23 }
 0x115   : > { %755 = vrot.lane.b32.xlu1 %v747_v57, %s2925_s23  ;;  %456 = vrot.lane.b32.xlu0 %v448_v59, %s2925_s23  ;;  %v855_v57 = vstv %s2609_s16  ;;  %s2623_s16 = sld [smem:[#allocation8 + $0x2c]] }
 0x116   : > { %v858_v5 = vmul.f32 %v855_v57, %v3169_v46 }
 0x119   : > { %795 = vrot.lane.b32.xlu1 %v789_v63, %s2926_s25  ;;  %493 = vrot.lane.b32.xlu0 %v487_v1, %s2926_s25  ;;  %v856_v63 = vmul.f32 %v855_v57, %v3161_v43  ;;  %v857_v1 = vmul.f32 %v855_v57, %v3132_v23 }
 0x11d   : > { %799 = vrot.lane.b32.xlu1 %v791_v2, %s2926_s25  ;;  %497 = vrot.lane.b32.xlu0 %v489_v3, %s2926_s25 }
 0x121   : > { %839 = vrot.lane.b32.xlu1 %v833_v6, %s2927_s28  ;;  %534 = vrot.lane.b32.xlu0 %v528_v7, %s2927_s28  ;;  %v879_v6 = vmul.f32 %v3208_v10, %v3101_v62  ;;  %v939_v7 = vstv %s2613_s22  ;;  %s2624_s22 = sld [smem:[#allocation8 + $0x5d]] }
 0x122   : > { %v942_v16 = vmul.f32 %v939_v7, %v3169_v46 }
 0x125   : > { %843 = vrot.lane.b32.xlu1 %v835_v8, %s2927_s28  ;;  %538 = vrot.lane.b32.xlu0 %v530_v9, %s2927_s28 }
 0x127   : > { %v1180_v4 = vstv %s2624_s22  ;;  %s2611_s22 = sld [smem:[#allocation8 + $0x2]] }
 0x129   : > { %883 = vrot.lane.b32.xlu1 %v877_v12, %s2928_s7  ;;  %575 = vrot.lane.b32.xlu0 %v569_v13, %s2928_s7  ;;  %v940_v12 = vmul.f32 %v939_v7, %v3161_v43 }
 0x12d   : > { %579 = vrot.lane.b32.xlu0 %v571_v14, %s2928_s7  ;;  %372 = vrot.lane.b32.xlu1 %v365_v15, %s2923_s8  ;;  %v941_v15 = vmul.f32 %v939_v7, %v3132_v23 }
 0x131   : > { %642 = vrot.lane.b32.xlu0 %v636_v17, %s2923_s8  ;;  %413 = vrot.lane.b32.xlu1 %v406_v18, %s2924_s21  ;;  %v960_v17 = vstv %s2614_s18  ;;  %s2627_s18 = sld [smem:[#allocation8 + $0xa]] }
 0x135   : > { %646 = vrot.lane.b32.xlu0 %v638_v19, %s2923_s8  ;;  %454 = vrot.lane.b32.xlu1 %v447_v20, %s2925_s23  ;;  %v961_v19 = vmul.f32 %v960_v17, %v3093_v58  ;;  %v962_v20 = vmul.f32 %v960_v17, %v3098_v61 }
 0x139   : > { %686 = vrot.lane.b32.xlu0 %v680_v22, %s2924_s21  ;;  %495 = vrot.lane.b32.xlu1 %v488_v24, %s2926_s25 }
 0x13d   : > { %690 = vrot.lane.b32.xlu0 %v682_v25, %s2924_s21  ;;  %536 = vrot.lane.b32.xlu1 %v529_v26, %s2927_s28  ;;  %v963_v25 = vmul.f32 %v960_v17, %v3101_v62  ;;  %v984_v26 = vmul.f32 %v983_v21, %v3161_v43 }
 0x141   : > { %730 = vrot.lane.b32.xlu0 %v724_v30, %s2925_s23  ;;  %577 = vrot.lane.b32.xlu1 %v570_v31, %s2928_s7  ;;  %v985_v31 = vmul.f32 %v983_v21, %v3132_v23 }
 0x143   : > { %v3242_v32 = vpop.permute.xlu1 %390 }
 0x144   : > { %4408 = vst [vmem:[#allocation18_spill] sm:$0xff] %v3242_v32 }
 0x145   : > { %734 = vrot.lane.b32.xlu0 %v726_v33, %s2925_s23  ;;  %644 = vrot.lane.b32.xlu1 %v637_v36, %s2923_s8  ;;  %v986_v33 = vmul.f32 %v983_v21, %v3169_v46  ;;  %v1004_v36 = vstv %s2616_s29  ;;  %s2629_s29 = sld [smem:[#allocation8 + $0x11]] }
 0x147   : > { %v3248_v38 = vpop.permute.xlu1 %394  ;;  %v3250_v39 = vpop.permute.xlu0 %392 }
 0x148   : > { %4409 = vst [vmem:[#allocation19_spill] sm:$0xff] %v3248_v38  ;;  %4410 = vst [vmem:[#allocation20_spill] sm:$0xff] %v3250_v39 }
 0x149   : > { %774 = vrot.lane.b32.xlu0 %v768_v40, %s2926_s25  ;;  %688 = vrot.lane.b32.xlu1 %v681_v41, %s2924_s21  ;;  %v1005_v41 = vmul.f32 %v1004_v36, %v3093_v58 }
 0x14b   : > { %v3256_v42 = vpop.permute.xlu1 %431  ;;  %v3258_v44 = vpop.permute.xlu0 %433 }
 0x14c   : > { %4411 = vst [vmem:[#allocation21_spill] sm:$0xff] %v3256_v42  ;;  %4412 = vst [vmem:[#allocation22_spill] sm:$0xff] %v3258_v44 }
 0x14d   : > { %778 = vrot.lane.b32.xlu0 %v770_v45, %s2926_s25  ;;  %732 = vrot.lane.b32.xlu1 %v725_v47, %s2925_s23  ;;  %v1006_v45 = vmul.f32 %v1004_v36, %v3098_v61  ;;  %v1027_v47 = vstv %s2617_s4  ;;  %s2630_s4 = sld [smem:[#allocation8 + $0x42]] }
 0x14f   : > { %v3264_v49 = vpop.permute.xlu1 %435  ;;  %v3266_v50 = vpop.permute.xlu0 %474 }
 0x150   : > { %4413 = vst [vmem:[#allocation23_spill] sm:$0xff] %v3264_v49  ;;  %4414 = vst [vmem:[#allocation24_spill] sm:$0xff] %v3266_v50 }
 0x151   : > { %818 = vrot.lane.b32.xlu0 %v812_v51, %s2927_s28  ;;  %776 = vrot.lane.b32.xlu1 %v769_v52, %s2926_s25  ;;  %v1007_v52 = vmul.f32 %v1004_v36, %v3101_v62 }
 0x153   : > { %v3272_v53 = vpop.permute.xlu1 %472  ;;  %v3274_v54 = vpop.permute.xlu0 %515 }
 0x154   : > { %4415 = vst [vmem:[#allocation25_spill] sm:$0xff] %v3272_v53  ;;  %4416 = vst [vmem:[#allocation26_spill] sm:$0xff] %v3274_v54 }
 0x155   : > { %822 = vrot.lane.b32.xlu0 %v814_v55, %s2927_s28  ;;  %820 = vrot.lane.b32.xlu1 %v813_v56, %s2927_s28  ;;  %v1028_v55 = vmul.f32 %v1027_v47, %v3161_v43 }
 0x157   : > { %v3280_v59 = vpop.permute.xlu1 %476  ;;  %v3282_v60 = vpop.permute.xlu0 %556 }
 0x158   : > { %4417 = vst [vmem:[#allocation27_spill] sm:$0xff] %v3280_v59  ;;  %4418 = vst [vmem:[#allocation28_spill] sm:$0xff] %v3282_v60 }
 0x159   : > { %862 = vrot.lane.b32.xlu0 %v856_v63, %s2928_s7  ;;  %864 = vrot.lane.b32.xlu1 %v857_v1, %s2928_s7  ;;  %v1029_v63 = vmul.f32 %v1027_v47, %v3132_v23  ;;  %v1030_v1 = vmul.f32 %v1027_v47, %v3169_v46 }
 0x15b   : > { %v3288_v2 = vpop.permute.xlu1 %513  ;;  %v3290_v3 = vpop.permute.xlu0 %597 }
 0x15c   : > { %4419 = vst [vmem:[#allocation29_spill] sm:$0xff] %v3288_v2  ;;  %4420 = vst [vmem:[#allocation30_spill] sm:$0xff] %v3290_v3  ;;  %v1264_v3 = vstv %s2628_s27  ;;  %s2636_s27 = sld [smem:[#allocation8 + $0x57]] }
 0x15d   : > { %866 = vrot.lane.b32.xlu0 %v858_v5, %s2928_s7  ;;  %887 = vrot.lane.b32.xlu1 %v879_v6, %s2928_s7  ;;  %v1048_v5 = vstv %s2618_s6  ;;  %s2631_s6 = sld [smem:[#allocation8 + $0x18]] }
 0x15f   : > { %v3297_v8 = vpop.permute.xlu1 %517  ;;  %v3299_v9 = vpop.permute.xlu0 %665 }
 0x160   : > { %4421 = vst [vmem:[#allocation31_spill] sm:$0xff] %v3297_v8 }
 0x161   : > { %885 = vrot.lane.b32.xlu0 %v878_v11, %s2928_s7  ;;  %946 = vrot.lane.b32.xlu1 %v940_v12, %s2923_s8  ;;  %v1049_v11 = vmul.f32 %v1048_v5, %v3093_v58  ;;  %v1050_v12 = vmul.f32 %v1048_v5, %v3098_v61 }
 0x163   : > { %v3306_v13 = vpop.permute.xlu1 %554  ;;  %v3308_v14 = vpop.permute.xlu0 %709 }
 0x164   : > { %4422 = vst [vmem:[#allocation32_spill] sm:$0xff] %v3306_v13  ;;  %v1287_v13 = vstv %s2629_s29  ;;  %s2930_s29 = smov 126  }
 0x165   : > { %948 = vrot.lane.b32.xlu0 %v941_v15, %s2923_s8  ;;  %950 = vrot.lane.b32.xlu1 %v942_v16, %s2923_s8  ;;  %v1071_v15 = vstv %s2619_s17  ;;  %v1288_v2 = vmul.f32 %v1287_v13, %v3161_v43  ;;  %s2632_s17 = sld [smem:[#allocation8 + $0x49]] }
 0x167   : > { %v3314_v10 = vpop.permute.xlu1 %558  ;;  %v3316_v18 = vpop.permute.xlu0 %753 }
 0x168   : > { %4423 = vst [vmem:[#allocation33_spill] sm:$0xff] %v3314_v10 }
 0x169   : > { %967 = vrot.lane.b32.xlu0 %v961_v19, %s2923_s8  ;;  %969 = vrot.lane.b32.xlu1 %v962_v20, %s2923_s8  ;;  %v1051_v19 = vmul.f32 %v1048_v5, %v3101_v62  ;;  %v1072_v20 = vmul.f32 %v1071_v15, %v3161_v43 }
 0x16b   : > { %v3322_v22 = vpop.permute.xlu1 %595  ;;  %v3324_v24 = vpop.permute.xlu0 %797 }
 0x16c   : > { %4424 = vst [vmem:[#allocation34_spill] sm:$0xff] %v3322_v22 }
 0x16d   : > { %971 = vrot.lane.b32.xlu0 %v963_v25, %s2923_s8  ;;  %990 = vrot.lane.b32.xlu1 %v984_v26, %s2924_s21  ;;  %v1073_v26 = vmul.f32 %v1071_v15, %v3132_v23 }
 0x16f   : > { %v3330_v29 = vpop.permute.xlu1 %599  ;;  %v3332_v30 = vpop.permute.xlu0 %841 }
 0x170   : > { %4425 = vst [vmem:[#allocation35_spill] sm:$0xff] %v3330_v29  ;;  %v1243_v29 = vstv %s2627_s18  ;;  %s2612_s18 = sld [smem:[#allocation8 + $0x33]] }
 0x171   : > { %992 = vrot.lane.b32.xlu0 %v985_v31, %s2924_s21  ;;  %994 = vrot.lane.b32.xlu1 %v986_v33, %s2924_s21  ;;  %v1074_v31 = vmul.f32 %v1071_v15, %v3169_v46  ;;  %v1092_v33 = vstv %s2620_s19  ;;  %s2633_s19 = sld [smem:[#allocation8 + $0x1f]] }
 0x172   : > { %v1094_v47 = vmul.f32 %v1092_v33, %v3098_v61 }
 0x173   : > { %v3338_v37 = vpop.permute.xlu1 %663  ;;  %v3340_v40 = vpop.permute.xlu0 %370 }
 0x174   : > { %4426 = vst [vmem:[#allocation36_spill] sm:$0xff] %v3340_v40 }
 0x175   : > { %1011 = vrot.lane.b32.xlu0 %v1005_v41, %s2924_s21  ;;  %1013 = vrot.lane.b32.xlu1 %v1006_v45, %s2924_s21  ;;  %v1093_v45 = vmul.f32 %v1092_v33, %v3093_v58 }
 0x177   : > { %v3346_v48 = vpop.permute.xlu1 %667  ;;  %v3348_v51 = vpop.permute.xlu0 %374  ;;  %v1375_v59 = vstv %s2633_s19  ;;  %s2626_s19 = sld [smem:[#allocation8 + $0x34]] }
 0x178   : > { %4427 = vst [vmem:[#allocation37_spill] sm:$0xff] %v3348_v51  ;;  %v1376_v50 = vmul.f32 %v1375_v59, %v3161_v43 }
 0x179   : > { %1015 = vrot.lane.b32.xlu0 %v1007_v52, %s2924_s21  ;;  %1034 = vrot.lane.b32.xlu1 %v1028_v55, %s2925_s23  ;;  %v1115_v52 = vstv %s2621_s24  ;;  %s2634_s24 = sld [smem:[#allocation8 + $0x50]] }
 0x17a   : > { %v1116_v5 = vmul.f32 %v1115_v52, %v3161_v43  ;;  %v1117_v15 = vmul.f32 %v1115_v52, %v3132_v23 }
 0x17b   : > { %v3354_v56 = vpop.permute.xlu1 %707  ;;  %v3356_v57 = vpop.permute.xlu0 %411 }
 0x17c   : > { %4428 = vst [vmem:[#allocation38_spill] sm:$0xff] %v3356_v57 }
 0x17d   : > { %1036 = vrot.lane.b32.xlu0 %v1029_v63, %s2925_s23  ;;  %1038 = vrot.lane.b32.xlu1 %v1030_v1, %s2925_s23  ;;  %v1095_v1 = vmul.f32 %v1092_v33, %v3101_v62 }
 0x17f   : > { %v3362_v6 = vpop.permute.xlu1 %711  ;;  %v3364_v7 = vpop.permute.xlu0 %415 }
 0x180   : > { %4429 = vst [vmem:[#allocation39_spill] sm:$0xff] %v3364_v7 }
 0x181   : > { %1055 = vrot.lane.b32.xlu0 %v1049_v11, %s2925_s23  ;;  %1057 = vrot.lane.b32.xlu1 %v1050_v12, %s2925_s23 }
 0x183   : > { %v3370_v16 = vpop.permute.xlu1 %751  ;;  %v3372_v17 = vpop.permute.xlu0 %452 }
 0x184   : > { %4430 = vst [vmem:[#allocation40_spill] sm:$0xff] %v3372_v17  ;;  %v757_v53 = vsel %vm458_vm5, %v3370_v16, %v3316_v18 }
 0x185   : > { %1059 = vrot.lane.b32.xlu0 %v1051_v19, %s2925_s23  ;;  %1078 = vrot.lane.b32.xlu1 %v1072_v20, %s2926_s25  ;;  %v1118_v19 = vmul.f32 %v1115_v52, %v3169_v46  ;;  %v1136_v20 = vstv %s2622_s15  ;;  %s2635_s15 = sld [smem:[#allocation8 + $0x26]] }
 0x186   : > { %v1138_v33 = vmul.f32 %v1136_v20, %v3098_v61 }
 0x187   : > { %v3378_v21 = vpop.permute.xlu1 %755  ;;  %v3380_v25 = vpop.permute.xlu0 %456 }
 0x188   : > { %4431 = vst [vmem:[#allocation41_spill] sm:$0xff] %v3380_v25 }
 0x189   : > { %1080 = vrot.lane.b32.xlu0 %v1073_v26, %s2926_s25  ;;  %1082 = vrot.lane.b32.xlu1 %v1074_v31, %s2926_s25 }
 0x18b   : > { %v3386_v36 = vpop.permute.xlu1 %795  ;;  %v3388_v41 = vpop.permute.xlu0 %493 }
 0x18c   : > { %4432 = vst [vmem:[#allocation42_spill] sm:$0xff] %v3388_v41  ;;  %v1290_v41 = vmul.f32 %v1287_v13, %v3169_v46 }
 0x18d   : > { %1099 = vrot.lane.b32.xlu0 %v1093_v45, %s2926_s25  ;;  %1101 = vrot.lane.b32.xlu1 %v1094_v47, %s2926_s25  ;;  %v1137_v45 = vmul.f32 %v1136_v20, %v3093_v58  ;;  %v1159_v47 = vstv %s2623_s16  ;;  %s2929_s16 = smov 127  }
 0x18f   : > { %v3394_v55 = vpop.permute.xlu1 %799  ;;  %v3396_v63 = vpop.permute.xlu0 %497 }
 0x190   : > { %4433 = vst [vmem:[#allocation43_spill] sm:$0xff] %v3396_v63 }
 0x191   : > { %1103 = vrot.lane.b32.xlu0 %v1095_v1, %s2926_s25  ;;  %1122 = vrot.lane.b32.xlu1 %v1116_v5, %s2927_s28  ;;  %v1160_v5 = vmul.f32 %v1159_v47, %v3161_v43 }
 0x193   : > { %v3402_v11 = vpop.permute.xlu1 %839  ;;  %v3404_v12 = vpop.permute.xlu0 %534 }
 0x194   : > { %4434 = vst [vmem:[#allocation44_spill] sm:$0xff] %v3404_v12  ;;  %v620_v12 = vmul.f32 %v3136_v27, %v3161_v43 }
 0x195   : > { %1124 = vrot.lane.b32.xlu0 %v1117_v15, %s2927_s28  ;;  %1126 = vrot.lane.b32.xlu1 %v1118_v19, %s2927_s28  ;;  %v1139_v15 = vmul.f32 %v1136_v20, %v3101_v62 }
 0x197   : > { %v3410_v26 = vpop.permute.xlu1 %843  ;;  %v3412_v31 = vpop.permute.xlu0 %538 }
 0x198   : > { %4435 = vst [vmem:[#allocation45_spill] sm:$0xff] %v3412_v31 }
 0x199   : > { %1145 = vrot.lane.b32.xlu1 %v1138_v33, %s2927_s28  ;;  %1143 = vrot.lane.b32.xlu0 %v1137_v45, %s2927_s28  ;;  %v1162_v33 = vmul.f32 %v1159_v47, %v3169_v46  ;;  %v1161_v45 = vmul.f32 %v1159_v47, %v3132_v23 }
 0x19b   : > { %v3418_v52 = vpop.permute.xlu1 %883  ;;  %v3420_v1 = vpop.permute.xlu0 %575 }
 0x19c   : > { %4436 = vst [vmem:[#allocation46_spill] sm:$0xff] %v3420_v1 }
 0x19d   : > { %1166 = vrot.lane.b32.xlu1 %v1160_v5, %s2928_s7  ;;  %1147 = vrot.lane.b32.xlu0 %v1139_v15, %s2927_s28  ;;  %v1182_v5 = vmul.f32 %v1180_v4, %v3098_v61  ;;  %v1181_v15 = vmul.f32 %v1180_v4, %v3093_v58 }
 0x19f   : > { %v3426_v19 = vpop.permute.xlu1 %372  ;;  %v3428_v0 = vpop.permute.xlu0 %579 }
 0x1a0   : > { %4437 = vst [vmem:[#allocation47_spill] sm:$0xff] %v3426_v19  ;;  %4438 = vst [vmem:[#allocation48_spill] sm:$0xff] %v3428_v0 }
 0x1a1   : > { %1170 = vrot.lane.b32.xlu1 %v1162_v33, %s2928_s7  ;;  %1168 = vrot.lane.b32.xlu0 %v1161_v45, %s2928_s7  ;;  %v1245_v33 = vmul.f32 %v1243_v29, %v3132_v23  ;;  %v1183_v45 = vmul.f32 %v1180_v4, %v3101_v62 }
 0x1a3   : > { %v3434_v20 = vpop.permute.xlu1 %413  ;;  %v643_v35 = vpop.permute.xlu0 %642 }
 0x1a4   : > { %4439 = vst [vmem:[#allocation49_spill] sm:$0xff] %v3434_v20 }
 0x1a5   : > { %1189 = vrot.lane.b32.xlu1 %v1182_v5, %s2928_s7  ;;  %1187 = vrot.lane.b32.xlu0 %v1181_v15, %s2928_s7  ;;  %v1265_v5 = vmul.f32 %v1264_v3, %v3093_v58  ;;  %v1244_v15 = vmul.f32 %v1243_v29, %v3161_v43 }
 0x1a7   : > { %v3440_v22 = vpop.permute.xlu1 %454  ;;  %v3442_v47 = vpop.permute.xlu0 %646 }
 0x1a8   : > { %4440 = vst [vmem:[#allocation50_spill] sm:$0xff] %v3440_v22 }
 0x1a9   : > { %1252 = vrot.lane.b32.xlu1 %v1245_v33, %s2923_s8  ;;  %1191 = vrot.lane.b32.xlu0 %v1183_v45, %s2928_s7  ;;  %v1267_v33 = vmul.f32 %v1264_v3, %v3101_v62  ;;  %v1246_v45 = vmul.f32 %v1243_v29, %v3169_v46  ;;  %v627_v29 = vmul.f32 %v3138_v28, %v3093_v58 }
 0x1ab   : > { %v3448_v0 = vpop.permute.xlu1 %495  ;;  %v687_v1 = vpop.permute.xlu0 %686 }
 0x1ac   : > { %4441 = vst [vmem:[#allocation51_spill] sm:$0xff] %v3448_v0  ;;  %v1331_v0 = vstv %s2631_s6  ;;  %s2638_s6 = sld [smem:[#allocation8 + $0x5e]] }
 0x1ad   : > { %1271 = vrot.lane.b32.xlu1 %v1265_v5, %s2923_s8  ;;  %1250 = vrot.lane.b32.xlu0 %v1244_v15, %s2923_s8  ;;  %v1289_v5 = vmul.f32 %v1287_v13, %v3132_v23  ;;  %v1266_v15 = vmul.f32 %v1264_v3, %v3098_v61  ;;  %v1333_v13 = vmul.f32 %v1331_v0, %v3132_v23 }
 0x1af   : > { %v3454_v10 = vpop.permute.xlu1 %536  ;;  %v3456_v4 = vpop.permute.xlu0 %690 }
 0x1b0   : > { %4442 = vst [vmem:[#allocation52_spill] sm:$0xff] %v3454_v10  ;;  %v1308_v10 = vstv %s2630_s4  ;;  %s2637_s4 = sld [smem:[#allocation8 + $0x2d]] }
 0x1b1   : > { %1275 = vrot.lane.b32.xlu1 %v1267_v33, %s2923_s8  ;;  %1254 = vrot.lane.b32.xlu0 %v1246_v45, %s2923_s8  ;;  %v622_v33 = vmul.f32 %v3136_v27, %v3169_v46  ;;  %v630_v45 = vadd.f32 %v627_v29, %v620_v12  ;;  %v1309_v8 = vmul.f32 %v1308_v10, %v3093_v58 }
 0x1b2   : > { %v1311_v63 = vmul.f32 %v1308_v10, %v3101_v62 }
 0x1b3   : > { %v3462_v60 = vpop.permute.xlu1 %577  ;;  %v731_v31 = vpop.permute.xlu0 %730 }
 0x1b4   : > { %4443 = vst [vmem:[#allocation53_spill] sm:$0xff] %v3462_v60 }
 0x1b5   : > { %1296 = vrot.lane.b32.xlu1 %v1289_v5, %s2924_s21  ;;  %1273 = vrot.lane.b32.xlu0 %v1266_v15, %s2923_s8  ;;  %v629_v15 = vmul.f32 %v3138_v28, %v3101_v62 }
 0x1b7   : > { %v3474_v60 = vpop.permute.xlu1 %644  ;;  %v3476_v3 = vpop.permute.xlu0 %734  ;;  %v632_v27 = vadd.f32 %v629_v15, %v622_v33 }
 0x1b8   : > { %v648_v5 = vsel %vm376_vm3, %v643_v35, %v3474_v60  ;;  %v669_v35 = vsel %vm376_vm3, %v3338_v37, %v3299_v9  ;;  %v1310_v37 = vmul.f32 %v1308_v10, %v3098_v61  ;;  %v713_v10 = vsel %vm417_vm4, %v3354_v56, %v3308_v14 }
 0x1b9   : > { %v653_v54 = vadd.f32 %v648_v5, %v630_v45  ;;  %1315 = vrot.lane.b32.xlu1 %v1309_v8, %s2924_s21  ;;  %1294 = vrot.lane.b32.xlu0 %v1288_v2, %s2924_s21  ;;  %v655_v28 = vadd.f32 %v3442_v47, %v632_v27  ;;  %v1352_v5 = vstv %s2632_s17  ;;  %v1334_v56 = vmul.f32 %v1331_v0, %v3169_v46  ;;  %s2625_s17 = sld [smem:[#allocation8 + $0x3]] }
 0x1ba   : > { %v1353_v27 = vmul.f32 %v1352_v5, %v3093_v58 }
 0x1bb   : > { %v3486_v12 = vpop.permute.xlu1 %688  ;;  %v775_v29 = vpop.permute.xlu0 %774  ;;  %v674_v45 = vadd.f32 %v669_v35, %v653_v54  ;;  %v676_v15 = vadd.f32 %v3346_v48, %v655_v28  ;;  %v1332_v35 = vmul.f32 %v1331_v0, %v3161_v43  ;;  %v1396_v0 = vstv %s2634_s24  ;;  %s2641_s24 = sld [smem:[#allocation8 + $0xb]] }
 0x1bc   : > { %v692_v2 = vsel %vm417_vm4, %v687_v1, %v3486_v12  ;;  %v1397_v16 = vmul.f32 %v1396_v0, %v3093_v58  ;;  %v693_v20 = vsel %vm417_vm4, %v3486_v12, %v3456_v4 }
 0x1bd   : > { %1319 = vrot.lane.b32.xlu1 %v1311_v63, %s2924_s21  ;;  %1298 = vrot.lane.b32.xlu0 %v1290_v41, %s2924_s21  ;;  %v697_v54 = vadd.f32 %v692_v2, %v674_v45  ;;  %v699_v41 = vadd.f32 %v3456_v4, %v676_v15  ;;  %v1355_v15 = vmul.f32 %v1352_v5, %v3101_v62 }
 0x1bf   : > { %v3498_v8 = vpop.permute.xlu1 %732  ;;  %v3500_v33 = vpop.permute.xlu0 %778  ;;  %v718_v28 = vadd.f32 %v713_v10, %v697_v54  ;;  %v720_v2 = vadd.f32 %v3362_v6, %v699_v41  ;;  %v1377_v41 = vmul.f32 %v1375_v59, %v3132_v23 }
 0x1c0   : > { %v736_v45 = vsel %vm458_vm5, %v731_v31, %v3498_v8 }
 0x1c1   : > { %1340 = vrot.lane.b32.xlu1 %v1333_v13, %s2925_s23  ;;  %1317 = vrot.lane.b32.xlu0 %v1310_v37, %s2924_s21  ;;  %v743_v54 = vadd.f32 %v3476_v3, %v720_v2  ;;  %v741_v10 = vadd.f32 %v736_v45, %v718_v28 }
 0x1c3   : > { %v3508_v63 = vpop.permute.xlu1 %776  ;;  %v819_v1 = vpop.permute.xlu0 %818  ;;  %v764_v28 = vadd.f32 %v3378_v21, %v743_v54  ;;  %v762_v45 = vadd.f32 %v757_v53, %v741_v10  ;;  %v1399_v10 = vmul.f32 %v1396_v0, %v3101_v62 }
 0x1c4   : > { %v780_v2 = vsel %vm499_vm6, %v775_v29, %v3508_v63 }
 0x1c5   : > { %1359 = vrot.lane.b32.xlu1 %v1353_v27, %s2925_s23  ;;  %1338 = vrot.lane.b32.xlu0 %v1332_v35, %s2925_s23  ;;  %v1354_v35 = vmul.f32 %v1352_v5, %v3098_v61  ;;  %v785_v25 = vadd.f32 %v780_v2, %v762_v45 }
 0x1c7   : > { %v3520_v13 = vpop.permute.xlu1 %820  ;;  %v3522_v37 = vpop.permute.xlu0 %822 }
 0x1c8   : > { %v824_v2 = vsel %vm540_vm7, %v819_v1, %v3520_v13 }
 0x1c9   : > { %1363 = vrot.lane.b32.xlu1 %v1355_v15, %s2925_s23  ;;  %1342 = vrot.lane.b32.xlu0 %v1334_v56, %s2925_s23  ;;  %v787_v15 = vadd.f32 %v3500_v33, %v764_v28  ;;  %v3560_v28 = vstv %s2635_s15  ;;  %s2642_s15 = sld [smem:[#allocation8 + $0x3c]] }
 0x1cb   : > { %v3529_v27 = vpop.permute.xlu1 %864  ;;  %v863_v31 = vpop.permute.xlu0 %862  ;;  %v808_v53 = vadd.f32 %v3394_v55, %v787_v15 }
 0x1cd   : > { %1384 = vrot.lane.b32.xlu1 %v1377_v41, %s2926_s25  ;;  %1361 = vrot.lane.b32.xlu0 %v1354_v35, %s2925_s23  ;;  %v1378_v41 = vmul.f32 %v1375_v59, %v3169_v46  ;;  %v801_v35 = vsel %vm499_vm6, %v3386_v36, %v3324_v24  ;;  %v1421_v36 = vmul.f32 %v3560_v28, %v3132_v23 }
 0x1ce   : > { %v806_v45 = vadd.f32 %v801_v35, %v785_v25 }
 0x1cf   : > { %v3542_v5 = vpop.permute.xlu1 %887  ;;  %v3544_v56 = vpop.permute.xlu0 %866 }
 0x1d0   : > { %v829_v17 = vadd.f32 %v824_v2, %v806_v45  ;;  %v868_v45 = vsel %vm581_vm8, %v863_v31, %v3529_v27 }
 0x1d1   : > { %1403 = vrot.lane.b32.xlu1 %v1397_v16, %s2926_s25  ;;  %1382 = vrot.lane.b32.xlu0 %v1376_v50, %s2926_s25  ;;  %v831_v50 = vadd.f32 %v3522_v37, %v808_v53  ;;  %v1398_v16 = vmul.f32 %v1396_v0, %v3098_v61  ;;  %v845_v0 = vsel %vm540_vm7, %v3402_v11, %v3332_v30 }
 0x1d2   : > { %v850_v35 = vadd.f32 %v845_v0, %v829_v17 }
 0x1d3   : > { %v3551_v54 = vpop.permute.xlu1 %946  ;;  %v3553_v29 = vpop.permute.xlu0 %885  ;;  %v852_v25 = vadd.f32 %v3410_v26, %v831_v50 }
 0x1d5   : > { %1407 = vrot.lane.b32.xlu1 %v1399_v10, %s2926_s25  ;;  %1386 = vrot.lane.b32.xlu0 %v1378_v41, %s2926_s25  ;;  %v875_v53 = vadd.f32 %v3544_v56, %v852_v25  ;;  %v1420_v41 = vmul.f32 %v3560_v28, %v3161_v43  ;;  %v873_v25 = vadd.f32 %v868_v45, %v850_v35 }
 0x1d6   : > { %v649_v45 = vsel %vm376_vm3, %v3474_v60, %v3442_v47  ;;  %v923_v60 = vstv %s2611_s22  ;;  %s2643_s22 = sld [smem:[#allocation8 + $0x12]] }
 0x1d7   : > { %v3567_v15 = vpop.permute.xlu1 %950  ;;  %v3569_v59 = vpop.permute.xlu0 %948  ;;  %v896_v50 = vadd.f32 %v3542_v5, %v875_v53  ;;  %v925_v39 = vmul.f32 %v923_v60, %v3132_v23 }
 0x1d9   : > { %1428 = vrot.lane.b32.xlu1 %v1421_v36, %s2927_s28  ;;  %1405 = vrot.lane.b32.xlu0 %v1398_v16, %s2926_s25  ;;  %v889_v16 = vsel %vm581_vm8, %v3418_v52, %v3553_v29 }
 0x1da   : > { %v894_v11 = vadd.f32 %v889_v16, %v873_v25  ;;  %v654_v25 = vadd.f32 %v649_v45, %v3148_v34  ;;  %v926_v34 = vmul.f32 %v923_v60, %v3169_v46  ;;  %v930_v45 = vstv %s2612_s18  ;;  %s2644_s18 = sld [smem:[#allocation8 + $0x43]] }
 0x1db   : > { %v3578_v10 = vpop.permute.xlu1 %969  ;;  %v3580_v1 = vpop.permute.xlu0 %967 }
 0x1dd   : > { %1426 = vrot.lane.b32.xlu0 %v1420_v41, %s2927_s28 }
 0x1df   : > { %v3591_v2 = vpop.permute.xlu1 %990  ;;  %v972_v36 = vpop.permute.xlu0 %971 }
 0x1e1   : > { %910 = vrot.lane.b32.xlu0 %v896_v50, %s2929_s16 }
 0x1e3   : > { %v995_v17 = vpop.permute.xlu1 %994  ;;  %v3597_v0 = vpop.permute.xlu0 %992 }
 0x1e5   : > { %906 = vrot.lane.b32.xlu0 %v894_v11, %s2929_s16  ;;  %v670_v11 = vsel %vm376_vm3, %v3299_v9, %v3346_v48  ;;  %v933_v9 = vmul.f32 %v930_v45, %v3101_v62  ;;  %v714_v48 = vsel %vm417_vm4, %v3308_v14, %v3362_v6  ;;  %v974_v14 = vsel %vm376_vm3, %v3578_v10, %v972_v36 }
 0x1e6   : > { %v675_v57 = vadd.f32 %v670_v11, %v654_v25  ;;  %v932_v25 = vmul.f32 %v930_v45, %v3098_v61 }
 0x1e7   : > { %v3600_v31 = vpop.permute.xlu1 %1013  ;;  %v3602_v53 = vpop.permute.xlu0 %1011  ;;  %v936_v51 = vadd.f32 %v933_v9, %v926_v34  ;;  %v924_v34 = vmul.f32 %v923_v60, %v3161_v43 }
 0x1e8   : > { %v698_v32 = vadd.f32 %v693_v20, %v675_v57  ;;  %v953_v57 = vsel %vm376_vm3, %v3569_v59, %v3567_v15  ;;  %v737_v20 = vsel %vm458_vm5, %v3498_v8, %v3476_v3  ;;  %v935_v40 = vadd.f32 %v932_v25, %v925_v39 }
 0x1e9   : > { %v959_v19 = vadd.f32 %v3567_v15, %v936_v51  ;;  %v931_v3 = vmul.f32 %v930_v45, %v3093_v58  ;;  %v952_v8 = vsel %vm376_vm3, %v3551_v54, %v3569_v59 }
 0x1ea   : > { %v719_v11 = vadd.f32 %v714_v48, %v698_v32  ;;  %v958_v6 = vadd.f32 %v953_v57, %v935_v40  ;;  %v997_v48 = vsel %vm417_vm4, %v3597_v0, %v995_v17  ;;  %v758_v40 = vsel %vm458_vm5, %v3316_v18, %v3378_v21 }
 0x1eb   : > { %v3604_v41 = vpop.permute.xlu1 %1034  ;;  %v1016_v22 = vpop.permute.xlu0 %1015  ;;  %v980_v9 = vadd.f32 %v972_v36, %v959_v19  ;;  %v934_v25 = vadd.f32 %v931_v3, %v924_v34  ;;  %v973_v18 = vsel %vm376_vm3, %v3580_v1, %v3578_v10 }
 0x1ec   : > { %v742_v32 = vadd.f32 %v737_v20, %v719_v11  ;;  %v979_v61 = vadd.f32 %v974_v14, %v958_v6  ;;  %v1018_v51 = vsel %vm417_vm4, %v3600_v31, %v1016_v22  ;;  %v781_v11 = vsel %vm499_vm6, %v3508_v63, %v3500_v33 }
 0x1ed   : > { %v1003_v39 = vadd.f32 %v995_v17, %v980_v9 }
 0x1ee   : > { %v1002_v15 = vadd.f32 %v997_v48, %v979_v61  ;;  %v763_v60 = vadd.f32 %v758_v40, %v742_v32  ;;  %v957_v61 = vadd.f32 %v952_v8, %v934_v25 }
 0x1ef   : > { %v1039_v49 = vpop.permute.xlu1 %1038  ;;  %v3606_v42 = vpop.permute.xlu0 %1036  ;;  %v1024_v45 = vadd.f32 %v1016_v22, %v1003_v39  ;;  %v996_v22 = vsel %vm417_vm4, %v3591_v2, %v3597_v0  ;;  %v802_v2 = vsel %vm499_vm6, %v3324_v24, %v3394_v55 }
 0x1f0   : > { %v1041_v17 = vsel %vm458_vm5, %v3606_v42, %v1039_v49  ;;  %v1023_v21 = vadd.f32 %v1018_v51, %v1002_v15  ;;  %v786_v6 = vadd.f32 %v781_v11, %v763_v60  ;;  %v978_v32 = vadd.f32 %v973_v18, %v957_v61 }
 0x1f1   : > { %v1047_v54 = vadd.f32 %v1039_v49, %v1024_v45  ;;  %v1017_v49 = vsel %vm417_vm4, %v3602_v53, %v3600_v31  ;;  %v1040_v0 = vsel %vm458_vm5, %v3604_v41, %v3606_v42 }
 0x1f2   : > { %v1046_v57 = vadd.f32 %v1041_v17, %v1023_v21  ;;  %v1001_v1 = vadd.f32 %v996_v22, %v978_v32  ;;  %v807_v3 = vadd.f32 %v802_v2, %v786_v6  ;;  %v846_v17 = vsel %vm540_vm7, %v3332_v30, %v3410_v26 }
 0x1f3   : > { %v3608_v52 = vpop.permute.xlu1 %1057  ;;  %v3610_v35 = vpop.permute.xlu0 %1055  ;;  %v890_v30 = vsel %vm581_vm8, %v3553_v29, %v3542_v5  ;;  %v1422_v5 = vmul.f32 %v3560_v28, %v3169_v46  ;;  %v1463_v32 = vstv %s2637_s4  ;;  %v4445_v28 = vld [vmem:[#allocation16_spill] sm:$0xff]  ;;  %s2647_s4 = sld [smem:[#allocation8 + $0x20]] }
 0x1f4   : > { %v1022_v39 = vadd.f32 %v1017_v49, %v1001_v1  ;;  %v1061_v24 = vsel %vm458_vm5, %v3610_v35, %v3608_v52  ;;  %v1466_v49 = vmul.f32 %v1463_v32, %v3169_v46 }
 0x1f6   : > { %v1045_v40 = vadd.f32 %v1040_v0, %v1022_v39 }
 0x1f7   : > { %v3615_v50 = vpop.permute.xlu1 %1078  ;;  %v1060_v16 = vpop.permute.xlu0 %1059 }
 0x1f8   : > { %v1062_v59 = vsel %vm458_vm5, %v3608_v52, %v1060_v16  ;;  %v1068_v33 = vadd.f32 %v1060_v16, %v1047_v54  ;;  %v1066_v25 = vadd.f32 %v1061_v24, %v1045_v40 }
 0x1f9   : > { %v1067_v10 = vadd.f32 %v1062_v59, %v1046_v57 }
 0x1fb   : > { %v1083_v44 = vpop.permute.xlu1 %1082  ;;  %v3621_v7 = vpop.permute.xlu0 %1080 }
 0x1fc   : > { %v1085_v63 = vsel %vm499_vm6, %v3621_v7, %v1083_v44  ;;  %v1091_v34 = vadd.f32 %v1083_v44, %v1068_v33  ;;  %v825_v44 = vsel %vm540_vm7, %v3520_v13, %v3522_v37  ;;  %v1464_v33 = vmul.f32 %v1463_v32, %v3161_v43 }
 0x1fd   : > { %v1090_v16 = vadd.f32 %v1085_v63, %v1067_v10  ;;  %v830_v60 = vadd.f32 %v825_v44, %v807_v3  ;;  %v4446_v10 = vld [vmem:[#allocation17_spill] sm:$0xff] }
 0x1fe   : > { %v1465_v1 = vmul.f32 %v1463_v32, %v4446_v10 }
 0x1ff   : > { %v3626_v47 = vpop.permute.xlu1 %1101  ;;  %v3628_v38 = vpop.permute.xlu0 %1099  ;;  %v851_v61 = vadd.f32 %v846_v17, %v830_v60  ;;  %v1227_v17 = vstv %s2625_s17  ;;  %s2655_s17 = sld [smem:[#allocation8 + $0xc]] }
 0x200   : > { %v1105_v52 = vsel %vm499_vm6, %v3628_v38, %v3626_v47 }
 0x203   : > { %v3637_v4 = vpop.permute.xlu1 %1122  ;;  %v1104_v12 = vpop.permute.xlu0 %1103 }
 0x204   : > { %v1106_v9 = vsel %vm499_vm6, %v3626_v47, %v1104_v12  ;;  %v1112_v51 = vadd.f32 %v1104_v12, %v1091_v34  ;;  %v1084_v12 = vsel %vm499_vm6, %v3615_v50, %v3621_v7  ;;  %v869_v7 = vsel %vm581_vm8, %v3529_v27, %v3544_v56 }
 0x205   : > { %v1111_v55 = vadd.f32 %v1106_v9, %v1090_v16  ;;  %v874_v56 = vadd.f32 %v869_v7, %v851_v61  ;;  %v1484_v34 = vstv %s2638_s6  ;;  %s2648_s6 = sld [smem:[#allocation8 + $0x51]] }
 0x206   : > { %v1485_v2 = vmul.f32 %v1484_v34, %v3093_v58  ;;  %v1487_v0 = vmul.f32 %v1484_v34, %v4445_v28 }
 0x207   : > { %v1127_v23 = vpop.permute.xlu1 %1126  ;;  %v3648_v62 = vpop.permute.xlu0 %1124  ;;  %v895_v59 = vadd.f32 %v890_v30, %v874_v56  ;;  %v1228_v30 = vmul.f32 %v1227_v17, %v3161_v43 }
 0x208   : > { %v1129_v31 = vsel %vm540_vm7, %v3648_v62, %v1127_v23  ;;  %v1135_v42 = vadd.f32 %v1127_v23, %v1112_v51  ;;  %v1089_v23 = vadd.f32 %v1084_v12, %v1066_v25  ;;  %v1128_v50 = vsel %vm540_vm7, %v3637_v4, %v3648_v62 }
 0x209   : > { %v1134_v8 = vadd.f32 %v1129_v31, %v1111_v55 }
 0x20a   : > { %v1110_v38 = vadd.f32 %v1105_v52, %v1089_v23 }
 0x20b   : > { %v3662_v19 = vpop.permute.xlu1 %1145  ;;  %v3664_v36 = vpop.permute.xlu0 %1143 }
 0x20c   : > { %v1149_v26 = vsel %vm540_vm7, %v3664_v36, %v3662_v19  ;;  %v1133_v62 = vadd.f32 %v1128_v50, %v1110_v38  ;;  %v1440_v36 = vstv %s2636_s27  ;;  %v1230_v50 = vmul.f32 %v1227_v17, %v3169_v46  ;;  %s2645_s27 = sld [smem:[#allocation8 + $0x19]] }
 0x20d   : > { %v1443_v63 = vmul.f32 %v1440_v36, %v4445_v28 }
 0x20e   : > { %v1154_v22 = vadd.f32 %v1149_v26, %v1133_v62 }
 0x20f   : > { %v1167_v20 = vpop.permute.xlu1 %1166  ;;  %v1148_v14 = vpop.permute.xlu0 %1147 }
 0x210   : > { %v1150_v41 = vsel %vm540_vm7, %v3662_v19, %v1148_v14  ;;  %v1156_v13 = vadd.f32 %v1148_v14, %v1135_v42  ;;  %v4444_v14 = vld [vmem:[#allocation15_spill] sm:$0xff] }
 0x211   : > { %v1155_v35 = vadd.f32 %v1150_v41, %v1134_v8  ;;  %v1442_v6 = vmul.f32 %v1440_v36, %v4444_v14  ;;  %v1486_v9 = vmul.f32 %v1484_v34, %v4444_v14 }
 0x213   : > { %v1169_v48 = vpop.permute.xlu0 %1168  ;;  %v1171_v53 = vpop.permute.xlu1 %1170 }
 0x214   : > { %v1173_v37 = vsel %vm581_vm8, %v1169_v48, %v1171_v53  ;;  %v1179_v45 = vadd.f32 %v1171_v53, %v1156_v13  ;;  %v1172_v4 = vsel %vm581_vm8, %v1167_v20, %v1169_v48  ;;  %v1441_v20 = vmul.f32 %v1440_v36, %v3093_v58 }
 0x215   : > { %v1178_v11 = vadd.f32 %v1173_v37, %v1155_v35  ;;  %v1177_v29 = vadd.f32 %v1172_v4, %v1154_v22  ;;  %v1229_v22 = vmul.f32 %v1227_v17, %v4446_v10 }
 0x217   : > { %v1188_v15 = vpop.permute.xlu0 %1187  ;;  %v1190_v18 = vpop.permute.xlu1 %1189 }
 0x218   : > { %v1193_v57 = vsel %vm581_vm8, %v1188_v15, %v1190_v18 }
 0x219   : > { %v1198_v19 = vadd.f32 %v1193_v57, %v1177_v29 }
 0x21b   : > { %v1192_v21 = vpop.permute.xlu0 %1191  ;;  %v1253_v3 = vpop.permute.xlu1 %1252 }
 0x21c   : > { %v1194_v47 = vsel %vm581_vm8, %v1190_v18, %v1192_v21  ;;  %v1200_v54 = vadd.f32 %v1192_v21, %v1179_v45  ;;  %v1234_v18 = vstv %s2626_s19  ;;  %s2656_s19 = sld [smem:[#allocation8 + $0x3d]] }
 0x21d   : > { %v1199_v27 = vadd.f32 %v1194_v47, %v1178_v11  ;;  %v1237_v21 = vmul.f32 %v1234_v18, %v4445_v28  ;;  %v1235_v26 = vmul.f32 %v1234_v18, %v3093_v58 }
 0x21e   : > { %1214 = vrot.lane.b32.xlu1 %v1200_v54, %s2930_s29 }
 0x21f   : > { %1212 = vrot.lane.b32.xlu0 %v1199_v27, %s2930_s29  ;;  %v1251_v16 = vpop.permute.xlu0 %1250  ;;  %v1272_v51 = vpop.permute.xlu1 %1271  ;;  %v1240_v61 = vadd.f32 %v1237_v21, %v1230_v50 }
 0x220   : > { %v1256_v56 = vsel %vm376_vm3, %v1251_v16, %v1253_v3 }
 0x222   : > { %908 = vrot.lane.b32.xlu1 %v895_v59, %s2929_s16  ;;  %v1238_v59 = vadd.f32 %v1235_v26, %v1228_v30  ;;  %s2931_s16 = smov 125  }
 0x223   : > { %1430 = vrot.lane.b32.xlu0 %v1422_v5, %s2927_s28  ;;  %v1255_v48 = vpop.permute.xlu0 %1254  ;;  %v1276_v44 = vpop.permute.xlu1 %1275 }
 0x224   : > { %v1263_v47 = vadd.f32 %v1255_v48, %v1240_v61  ;;  %v1261_v29 = vadd.f32 %v1256_v56, %v1238_v59 }
 0x226   : > { %1210 = vrot.lane.b32.xlu1 %v1198_v19, %s2930_s29  ;;  %v1284_v62 = vadd.f32 %v1276_v44, %v1263_v47  ;;  %v1236_v19 = vmul.f32 %v1234_v18, %v4444_v14  ;;  %s2646_s29 = sld [smem:[#allocation8 + $0x4a]] }
 0x227   : > { %1449 = vrot.lane.b32.xlu0 %v1442_v6, %s2927_s28  ;;  %v1274_v39 = vpop.permute.xlu0 %1273  ;;  %v1297_v55 = vpop.permute.xlu1 %1296  ;;  %v1257_v6 = vsel %vm376_vm3, %v1253_v3, %v1255_v48 }
 0x228   : > { %v1277_v57 = vsel %vm376_vm3, %v1272_v51, %v1274_v39 }
 0x22a   : > { %1447 = vrot.lane.b32.xlu1 %v1441_v20, %s2927_s28 }
 0x22b   : > { %1470 = vrot.lane.b32.xlu0 %v1464_v33, %s2928_s7  ;;  %v1295_v31 = vpop.permute.xlu0 %1294  ;;  %v1316_v40 = vpop.permute.xlu1 %1315  ;;  %v1239_v33 = vadd.f32 %v1236_v19, %v1229_v22 }
 0x22c   : > { %v1300_v32 = vsel %vm417_vm4, %v1295_v31, %v1297_v55 }
 0x22e   : > { %1451 = vrot.lane.b32.xlu1 %v1443_v63, %s2927_s28  ;;  %v1282_v63 = vadd.f32 %v1277_v57, %v1261_v29 }
 0x22f   : > { %1474 = vrot.lane.b32.xlu0 %v1466_v49, %s2928_s7  ;;  %v1299_v24 = vpop.permute.xlu0 %1298  ;;  %v1320_v41 = vpop.permute.xlu1 %1319  ;;  %v1278_v49 = vsel %vm376_vm3, %v1274_v39, %v1276_v44 }
 0x230   : > { %v1307_v5 = vadd.f32 %v1299_v24, %v1284_v62  ;;  %v1301_v16 = vsel %vm417_vm4, %v1297_v55, %v1299_v24 }
 0x232   : > { %1472 = vrot.lane.b32.xlu1 %v1465_v1, %s2928_s7  ;;  %v1328_v34 = vadd.f32 %v1320_v41, %v1307_v5 }
 0x233   : > { %1493 = vrot.lane.b32.xlu0 %v1486_v9, %s2928_s7  ;;  %v1318_v53 = vpop.permute.xlu0 %1317  ;;  %v1341_v8 = vpop.permute.xlu1 %1340  ;;  %v1262_v9 = vadd.f32 %v1257_v6, %v1239_v33 }
 0x234   : > { %v1321_v1 = vsel %vm417_vm4, %v1316_v40, %v1318_v53  ;;  %v1322_v50 = vsel %vm417_vm4, %v1318_v53, %v1320_v41 }
 0x235   : > { %v1283_v3 = vadd.f32 %v1278_v49, %v1262_v9 }
 0x236   : > { %1491 = vrot.lane.b32.xlu1 %v1485_v2, %s2928_s7  ;;  %v1305_v2 = vadd.f32 %v1300_v32, %v1282_v63 }
 0x237   : > { %v1339_v42 = vpop.permute.xlu0 %1338  ;;  %v1360_v60 = vpop.permute.xlu1 %1359  ;;  %v1306_v44 = vadd.f32 %v1301_v16, %v1283_v3 }
 0x238   : > { %v1344_v51 = vsel %vm458_vm5, %v1339_v42, %v1341_v8  ;;  %v1326_v31 = vadd.f32 %v1321_v1, %v1305_v2 }
 0x239   : > { %v1327_v42 = vadd.f32 %v1322_v50, %v1306_v44  ;;  %v1560_v50 = vstv %s2642_s15  ;;  %s2657_s15 = sld [smem:[#allocation8 + $0x13]] }
 0x23a   : > { %1495 = vrot.lane.b32.xlu1 %v1487_v0, %s2928_s7  ;;  %v1349_v40 = vadd.f32 %v1344_v51, %v1326_v31  ;;  %v1561_v44 = vmul.f32 %v1560_v50, %v3093_v58 }
 0x23b   : > { %v1343_v12 = vpop.permute.xlu0 %1342  ;;  %v1364_v13 = vpop.permute.xlu1 %1363 }
 0x23c   : > { %v1351_v17 = vadd.f32 %v1343_v12, %v1328_v34  ;;  %v1345_v21 = vsel %vm458_vm5, %v1341_v8, %v1343_v12 }
 0x23e   : > { %v1372_v24 = vadd.f32 %v1364_v13, %v1351_v17 }
 0x23f   : > { %v3749_v15 = vpop.permute.xlu0 %1361  ;;  %v3753_v52 = vpop.permute.xlu1 %1384 }
 0x240   : > { %v1365_v39 = vsel %vm458_vm5, %v1360_v60, %v3749_v15  ;;  %v1366_v30 = vsel %vm458_vm5, %v3749_v15, %v1364_v13  ;;  %v1350_v60 = vadd.f32 %v1345_v21, %v1327_v42  ;;  %v1583_v21 = vstv %s2643_s22  ;;  %s2658_s22 = sld [smem:[#allocation8 + $0x44]] }
 0x241   : > { %v1370_v47 = vadd.f32 %v1365_v39, %v1349_v40  ;;  %v1562_v40 = vmul.f32 %v1560_v50, %v4444_v14  ;;  %v1586_v42 = vmul.f32 %v1583_v21, %v3169_v46 }
 0x243   : > { %v1383_v25 = vpop.permute.xlu0 %1382  ;;  %v1404_v23 = vpop.permute.xlu1 %1403 }
 0x244   : > { %v1388_v61 = vsel %vm499_vm6, %v1383_v25, %v3753_v52  ;;  %v1371_v25 = vadd.f32 %v1366_v30, %v1350_v60 }
 0x245   : > { %v1393_v26 = vadd.f32 %v1388_v61, %v1370_v47  ;;  %v1584_v61 = vmul.f32 %v1583_v21, %v3161_v43 }
 0x247   : > { %v3751_v37 = vpop.permute.xlu0 %1386  ;;  %v1408_v7 = vpop.permute.xlu1 %1407 }
 0x248   : > { %v1395_v53 = vadd.f32 %v3751_v37, %v1372_v24  ;;  %v1389_v12 = vsel %vm499_vm6, %v3753_v52, %v3751_v37  ;;  %v1585_v24 = vmul.f32 %v1583_v21, %v4446_v10 }
 0x249   : > { %v1394_v57 = vadd.f32 %v1389_v12, %v1371_v25 }
 0x24a   : > { %v1416_v13 = vadd.f32 %v1408_v7, %v1395_v53 }
 0x24b   : > { %v3755_v35 = vpop.permute.xlu0 %1405  ;;  %v1429_v38 = vpop.permute.xlu1 %1428 }
 0x24c   : > { %v1409_v41 = vsel %vm499_vm6, %v1404_v23, %v3755_v35  ;;  %v1410_v15 = vsel %vm499_vm6, %v3755_v35, %v1408_v7 }
 0x24d   : > { %v1414_v62 = vadd.f32 %v1409_v41, %v1393_v26  ;;  %v1415_v37 = vadd.f32 %v1410_v15, %v1394_v57  ;;  %v1627_v41 = vstv %s2645_s27  ;;  %s2659_s27 = sld [smem:[#allocation8 + $0x1a]] }
 0x24e   : > { %v1628_v60 = vmul.f32 %v1627_v41, %v3161_v43  ;;  %v1629_v26 = vmul.f32 %v1627_v41, %v4446_v10  ;;  %v1630_v12 = vmul.f32 %v1627_v41, %v3169_v46 }
 0x24f   : > { %v1427_v45 = vpop.permute.xlu0 %1426 }
 0x250   : > { %v1432_v8 = vsel %vm540_vm7, %v1427_v45, %v1429_v38 }
 0x251   : > { %v1437_v23 = vadd.f32 %v1432_v8, %v1414_v62 }
 0x253   : > { %v3758_v11 = vpop.permute.xlu0 %910 }
 0x257   : > { %v3761_v54 = vpop.permute.xlu0 %906 }
 0x290   : > { %v3765_v27 = vpop.permute.xlu1 %1214 }
 0x291   : > { %v3768_v4 = vpop.permute.xlu0 %1212 }
 0x294   : > { %v3773_v36 = vpop.permute.xlu1 %908 }
 0x295   : > { %v1431_v20 = vpop.permute.xlu0 %1430 }
 0x296   : > { %v1433_v29 = vsel %vm540_vm7, %v1429_v38, %v1431_v20  ;;  %v1439_v19 = vadd.f32 %v1431_v20, %v1416_v13 }
 0x297   : > { %v1438_v33 = vadd.f32 %v1433_v29, %v1415_v37 }
 0x298   : > { %v3779_v0 = vpop.permute.xlu1 %1210 }
 0x299   : > { %v1450_v48 = vpop.permute.xlu0 %1449 }
 0x29c   : > { %v1448_v18 = vpop.permute.xlu1 %1447 }
 0x29d   : > { %v1471_v55 = vpop.permute.xlu0 %1470  ;;  %v1453_v22 = vsel %vm540_vm7, %v1448_v18, %v1450_v48  ;;  %v1563_v18 = vmul.f32 %v1560_v50, %v4445_v28 }
 0x29e   : > { %v1458_v52 = vadd.f32 %v1453_v22, %v1437_v23  ;;  %v1692_v22 = vstv %s2648_s6  ;;  %s2661_s6 = sld [smem:[#allocation8 + $0x21]] }
 0x29f   : > { %v1693_v23 = vmul.f32 %v1692_v22, %v3093_v58  ;;  %v1695_v29 = vmul.f32 %v1692_v22, %v4445_v28 }
 0x2a0   : > { %v1452_v56 = vpop.permute.xlu1 %1451 }
 0x2a1   : > { %v1475_v59 = vpop.permute.xlu0 %1474  ;;  %v1454_v45 = vsel %vm540_vm7, %v1450_v48, %v1452_v56  ;;  %v1460_v32 = vadd.f32 %v1452_v56, %v1439_v19  ;;  %v1539_v48 = vstv %s2641_s24  ;;  %v1648_v56 = vstv %s2646_s29  ;;  %s2669_s24 = sld [smem:[#allocation8 + $0xd]] }
 0x2a2   : > { %v1459_v34 = vadd.f32 %v1454_v45, %v1438_v33  ;;  %v1540_v3 = vmul.f32 %v1539_v48, %v3161_v43  ;;  %v1541_v31 = vmul.f32 %v1539_v48, %v4446_v10  ;;  %v1542_v39 = vmul.f32 %v1539_v48, %v3169_v46  ;;  %s2672_s29 = sld [smem:[#allocation8 + $0x45]] }
 0x2a3   : > { %v1483_v38 = vadd.f32 %v1475_v59, %v1460_v32  ;;  %v1649_v8 = vmul.f32 %v1648_v56, %v3093_v58  ;;  %v1650_v25 = vmul.f32 %v1648_v56, %v4444_v14  ;;  %v1651_v62 = vmul.f32 %v1648_v56, %v4445_v28 }
 0x2a4   : > { %v1473_v5 = vpop.permute.xlu1 %1472  ;;  %v1843_v19 = vstv %s2655_s17  ;;  %s2674_s17 = sld [smem:[#allocation8 + $0x4c]] }
 0x2a5   : > { %v1476_v6 = vsel %vm581_vm8, %v1471_v55, %v1473_v5  ;;  %v1494_v35 = vpop.permute.xlu0 %1493  ;;  %v1477_v49 = vsel %vm581_vm8, %v1473_v5, %v1475_v59  ;;  %v1604_v55 = vstv %s2644_s18  ;;  %v1671_v59 = vstv %s2647_s4  ;;  %s2671_s18 = sld [smem:[#allocation8 + $0x14]] }
 0x2a6   : > { %v1481_v63 = vadd.f32 %v1476_v6, %v1458_v52  ;;  %v1482_v20 = vadd.f32 %v1477_v49, %v1459_v34  ;;  %v1605_v47 = vmul.f32 %v1604_v55, %v3093_v58  ;;  %v1606_v30 = vmul.f32 %v1604_v55, %v4444_v14  ;;  %s2673_s4 = sld [smem:[#allocation8 + $0x1b]] }
 0x2a7   : > { %v1607_v53 = vmul.f32 %v1604_v55, %v4445_v28  ;;  %v1672_v15 = vmul.f32 %v1671_v59, %v3161_v43  ;;  %v1673_v13 = vmul.f32 %v1671_v59, %v4446_v10  ;;  %v1674_v57 = vmul.f32 %v1671_v59, %v3169_v46 }
 0x2a8   : > { %v1492_v7 = vpop.permute.xlu1 %1491  ;;  %v1694_v5 = vmul.f32 %v1692_v22, %v4444_v14  ;;  %v1844_v6 = vmul.f32 %v1843_v19, %v3161_v43  ;;  %v1845_v37 = vmul.f32 %v1843_v19, %v4446_v10  ;;  %v1864_v52 = vstv %s2656_s19  ;;  %s2662_s19 = sld [smem:[#allocation8 + $0x52]] }
 0x2a9   : > { %v1497_v1 = vsel %vm581_vm8, %v1492_v7, %v1494_v35  ;;  %v1846_v45 = vmul.f32 %v1843_v19, %v3169_v46  ;;  %v1865_v32 = vmul.f32 %v1864_v52, %v3093_v58  ;;  %v1866_v33 = vmul.f32 %v1864_v52, %v4444_v14 }
 0x2aa   : > { %v1502_v9 = vadd.f32 %v1497_v1, %v1481_v63  ;;  %v1867_v63 = vmul.f32 %v1864_v52, %v4445_v28  ;;  %v1887_v1 = vstv %s2657_s15  ;;  %v1975_v59 = vstv %s2661_s6  ;;  %s2639_s15 = sld [smem:[#allocation8 + $0x4]] }
 0x2ab   : > { %v1978_v19 = vmul.f32 %v1975_v59, %v3169_v46  ;;  %s2677_s6 = sld [smem:[#allocation8 + $0x29]] }
 0x2ac   : > { %v1496_v2 = vpop.permute.xlu1 %1495  ;;  %1508 = vrot.lane.b32.xlu0 %v1502_v9, %s2931_s16  ;;  %v1888_v9 = vmul.f32 %v1887_v1, %v3161_v43 }
 0x2ad   : > { %v1498_v16 = vsel %vm581_vm8, %v1494_v35, %v1496_v2  ;;  %v1504_v51 = vadd.f32 %v1496_v2, %v1483_v38  ;;  %v2147_v35 = vstv %s2669_s24  ;;  %v1889_v38 = vmul.f32 %v1887_v1, %v4446_v10  ;;  %s2675_s24 = sld [smem:[#allocation8 + $0x22]] }
 0x2ae   : > { %v1503_v17 = vadd.f32 %v1498_v16, %v1482_v20  ;;  %v2148_v7 = vmul.f32 %v2147_v35, %v3161_v43  ;;  %v2149_v49 = vmul.f32 %v2147_v35, %v4446_v10  ;;  %v2150_v34 = vmul.f32 %v2147_v35, %v3169_v46 }
 0x2af   : > { %v1890_v20 = vmul.f32 %v1887_v1, %v3169_v46 }
 0x2b0   : > { %1510 = vrot.lane.b32.xlu1 %v1503_v17, %s2931_s16  ;;  %1512 = vrot.lane.b32.xlu0 %v1504_v51, %s2931_s16  ;;  %s2670_s16 = sld [smem:[#allocation8 + $0x3e]]  ;;  %v1908_v17 = vstv %s2658_s22 }
 0x2b1   : > { %v1911_v50 = vmul.f32 %v1908_v17, %v4445_v28  ;;  %s2663_s22 = sld [smem:[#allocation8 + $0x28]] }
 0x2b4   : > { %1546 = vrot.lane.b32.xlu1 %v1540_v3, %s2923_s8  ;;  %1548 = vrot.lane.b32.xlu0 %v1541_v31, %s2923_s8  ;;  %v1909_v3 = vmul.f32 %v1908_v17, %v3093_v58  ;;  %v1910_v31 = vmul.f32 %v1908_v17, %v4444_v14 }
 0x2b6   : > { %v2168_v2 = vstv %s2670_s16  ;;  %s2640_s16 = sld [smem:[#allocation8 + $0x35]] }
 0x2b7   : > { %v2169_v16 = vmul.f32 %v2168_v2, %v3093_v58  ;;  %v2170_v51 = vmul.f32 %v2168_v2, %v4444_v14  ;;  %v2171_v48 = vmul.f32 %v2168_v2, %v4445_v28 }
 0x2b8   : > { %1550 = vrot.lane.b32.xlu1 %v1542_v39, %s2923_s8  ;;  %1567 = vrot.lane.b32.xlu0 %v1561_v44, %s2923_s8  ;;  %v2191_v39 = vstv %s2671_s18  ;;  %s3985_s18 = sld [smem:[#allocation8 + $0x53]] }
 0x2b9   : > { %v2192_v44 = vmul.f32 %v2191_v39, %v3161_v43  ;;  %v2194_v21 = vmul.f32 %v2191_v39, %v3169_v46 }
 0x2bc   : > { %1569 = vrot.lane.b32.xlu1 %v1562_v40, %s2923_s8  ;;  %1571 = vrot.lane.b32.xlu0 %v1563_v18, %s2923_s8  ;;  %v2193_v40 = vmul.f32 %v2191_v39, %v4446_v10  ;;  %v1931_v18 = vstv %s2659_s27  ;;  %s4002_s27 = sld [smem:[#allocation8 + $0x2e]] }
 0x2bd   : > { %v1934_v55 = vmul.f32 %v1931_v18, %v3169_v46 }
 0x2c0   : > { %1590 = vrot.lane.b32.xlu1 %v1584_v61, %s2924_s21  ;;  %1592 = vrot.lane.b32.xlu0 %v1585_v24, %s2924_s21  ;;  %v1932_v61 = vmul.f32 %v1931_v18, %v3161_v43  ;;  %v1933_v24 = vmul.f32 %v1931_v18, %v4446_v10 }
 0x2c4   : > { %1594 = vrot.lane.b32.xlu1 %v1586_v42, %s2924_s21  ;;  %1611 = vrot.lane.b32.xlu0 %v1605_v47, %s2924_s21  ;;  %v2212_v42 = vstv %s2672_s29  ;;  %s4017_s29 = sld [smem:[#allocation8 + $0x5]] }
 0x2c5   : > { %v2213_v47 = vmul.f32 %v2212_v42, %v3093_v58  ;;  %v2215_v41 = vmul.f32 %v2212_v42, %v4445_v28 }
 0x2c8   : > { %1613 = vrot.lane.b32.xlu1 %v1606_v30, %s2924_s21  ;;  %1615 = vrot.lane.b32.xlu0 %v1607_v53, %s2924_s21  ;;  %v2214_v30 = vmul.f32 %v2212_v42, %v4444_v14 }
 0x2cc   : > { %1634 = vrot.lane.b32.xlu1 %v1628_v60, %s2925_s23  ;;  %1636 = vrot.lane.b32.xlu0 %v1629_v26, %s2925_s23 }
 0x2d0   : > { %1638 = vrot.lane.b32.xlu1 %v1630_v12, %s2925_s23  ;;  %1655 = vrot.lane.b32.xlu0 %v1649_v8, %s2925_s23  ;;  %v2235_v12 = vstv %s2673_s4  ;;  %s2664_s4 = sld [smem:[#allocation8 + $0x59]] }
 0x2d1   : > { %v2238_v22 = vmul.f32 %v2235_v12, %v3169_v46 }
 0x2d4   : > { %1657 = vrot.lane.b32.xlu1 %v1650_v25, %s2925_s23  ;;  %1659 = vrot.lane.b32.xlu0 %v1651_v62, %s2925_s23  ;;  %v2236_v25 = vmul.f32 %v2235_v12, %v3161_v43  ;;  %v2237_v62 = vmul.f32 %v2235_v12, %v4446_v10 }
 0x2d8   : > { %1678 = vrot.lane.b32.xlu1 %v1672_v15, %s2926_s25  ;;  %1680 = vrot.lane.b32.xlu0 %v1673_v13, %s2926_s25 }
 0x2dc   : > { %1682 = vrot.lane.b32.xlu1 %v1674_v57, %s2926_s25  ;;  %1699 = vrot.lane.b32.xlu0 %v1693_v23, %s2926_s25  ;;  %v1976_v57 = vmul.f32 %v1975_v59, %v3161_v43 }
 0x2e0   : > { %1701 = vrot.lane.b32.xlu1 %v1694_v5, %s2926_s25  ;;  %1703 = vrot.lane.b32.xlu0 %v1695_v29, %s2926_s25  ;;  %v1977_v29 = vmul.f32 %v1975_v59, %v4446_v10 }
 0x2e4   : > { %1850 = vrot.lane.b32.xlu1 %v1844_v6, %s2923_s8  ;;  %1852 = vrot.lane.b32.xlu0 %v1845_v37, %s2923_s8  ;;  %v2256_v6 = vstv %s2674_s17  ;;  %s2667_s17 = sld [smem:[#allocation8 + $0x6]] }
 0x2e8   : > { %1854 = vrot.lane.b32.xlu1 %v1846_v45, %s2923_s8  ;;  %1871 = vrot.lane.b32.xlu0 %v1865_v32, %s2923_s8  ;;  %v2257_v45 = vmul.f32 %v2256_v6, %v3093_v58  ;;  %v2258_v32 = vmul.f32 %v2256_v6, %v4444_v14 }
 0x2ec   : > { %1873 = vrot.lane.b32.xlu1 %v1866_v33, %s2923_s8  ;;  %1875 = vrot.lane.b32.xlu0 %v1867_v63, %s2923_s8 }
 0x2f0   : > { %2154 = vrot.lane.b32.xlu1 %v2148_v7, %s2923_s8  ;;  %2156 = vrot.lane.b32.xlu0 %v2149_v49, %s2923_s8  ;;  %v2259_v7 = vmul.f32 %v2256_v6, %v4445_v28 }
 0x2f4   : > { %2158 = vrot.lane.b32.xlu1 %v2150_v34, %s2923_s8  ;;  %1894 = vrot.lane.b32.xlu0 %v1888_v9, %s2924_s21 }
 0x2f8   : > { %1896 = vrot.lane.b32.xlu1 %v1889_v38, %s2924_s21  ;;  %1898 = vrot.lane.b32.xlu0 %v1890_v20, %s2924_s21  ;;  %v1996_v20 = vstv %s2662_s19  ;;  %s2665_s19 = sld [smem:[#allocation8 + $0x2f]] }
 0x2f9   : > { %v1998_v17 = vmul.f32 %v1996_v20, %v4444_v14 }
 0x2fc   : > { %2175 = vrot.lane.b32.xlu1 %v2169_v16, %s2923_s8  ;;  %2177 = vrot.lane.b32.xlu0 %v2170_v51, %s2923_s8  ;;  %v1997_v51 = vmul.f32 %v1996_v20, %v3093_v58 }
 0x300   : > { %2179 = vrot.lane.b32.xlu1 %v2171_v48, %s2923_s8  ;;  %1915 = vrot.lane.b32.xlu0 %v1909_v3, %s2924_s21  ;;  %s2660_s8 = sld [smem:[#allocation8 + $0x4b]]  ;;  %v2279_v48 = vstv %s2675_s24 }
 0x301   : > { %v2280_v39 = vmul.f32 %v2279_v48, %v3161_v43  ;;  %s2678_s24 = sld [smem:[#allocation8 + $0x5a]] }
 0x304   : > { %1917 = vrot.lane.b32.xlu1 %v1910_v31, %s2924_s21  ;;  %1919 = vrot.lane.b32.xlu0 %v1911_v50, %s2924_s21  ;;  %v1999_v50 = vmul.f32 %v1996_v20, %v4445_v28 }
 0x306   : > { %v1952_v53 = vstv %s2660_s8  ;;  %s2654_s8 = sld [smem:[#allocation8 + $0x36]] }
 0x307   : > { %v1953_v60 = vmul.f32 %v1952_v53, %v3093_v58  ;;  %v1954_v26 = vmul.f32 %v1952_v53, %v4444_v14  ;;  %v1955_v56 = vmul.f32 %v1952_v53, %v4445_v28 }
 0x308   : > { %2198 = vrot.lane.b32.xlu1 %v2192_v44, %s2924_s21  ;;  %2200 = vrot.lane.b32.xlu0 %v2193_v40, %s2924_s21  ;;  %v1523_v44 = vstv %s2639_s15  ;;  %s2666_s15 = sld [smem:[#allocation8 + $0x60]] }
 0x30c   : > { %2202 = vrot.lane.b32.xlu1 %v2194_v21, %s2924_s21  ;;  %1938 = vrot.lane.b32.xlu0 %v1932_v61, %s2925_s23  ;;  %v2281_v21 = vmul.f32 %v2279_v48, %v4446_v10  ;;  %v2282_v61 = vmul.f32 %v2279_v48, %v3169_v46 }
 0x310   : > { %1940 = vrot.lane.b32.xlu1 %v1933_v24, %s2925_s23  ;;  %1942 = vrot.lane.b32.xlu0 %v1934_v55, %s2925_s23  ;;  %v1530_v24 = vstv %s2640_s16  ;;  %v1526_v55 = vmul.f32 %v1523_v44, %v3169_v46  ;;  %s2679_s16 = sld [smem:[#allocation8 + $0x30]] }
 0x311   : > { %v1533_v53 = vmul.f32 %v1530_v24, %v4445_v28 }
 0x313   : > { %v1536_v59 = vadd.f32 %v1533_v53, %v1526_v55  ;;  %v2300_v55 = vstv %s3985_s18  ;;  %s349_s18 = sld [smem:[#allocation8]] }
 0x314   : > { %2219 = vrot.lane.b32.xlu1 %v2213_v47, %s2924_s21  ;;  %2221 = vrot.lane.b32.xlu0 %v2214_v30, %s2924_s21  ;;  %v1524_v47 = vmul.f32 %v1523_v44, %v3161_v43  ;;  %v1525_v30 = vmul.f32 %v1523_v44, %v4446_v10 }
 0x318   : > { %2223 = vrot.lane.b32.xlu1 %v2215_v41, %s2924_s21  ;;  %1959 = vrot.lane.b32.xlu0 %v1953_v60, %s2925_s23  ;;  %s2649_s21 = sld [smem:[#allocation8 + $0x27]]  ;;  %v1531_v41 = vmul.f32 %v1530_v24, %v3093_v58  ;;  %v1532_v60 = vmul.f32 %v1530_v24, %v4444_v14 }
 0x31c   : > { %1961 = vrot.lane.b32.xlu1 %v1954_v26, %s2925_s23  ;;  %1963 = vrot.lane.b32.xlu0 %v1955_v56, %s2925_s23 }
 0x31e   : > { %v3915_v8 = vpop.permute.xlu0 %1508  ;;  %v1715_v33 = vstv %s2649_s21  ;;  %s2668_s21 = sld [smem:[#allocation8 + $0x37]] }
 0x31f   : > { %v1716_v49 = vmul.f32 %v1715_v33, %v3161_v43  ;;  %v1717_v9 = vmul.f32 %v1715_v33, %v4446_v10  ;;  %v1718_v38 = vmul.f32 %v1715_v33, %v3169_v46 }
 0x320   : > { %2242 = vrot.lane.b32.xlu1 %v2236_v25, %s2925_s23  ;;  %2244 = vrot.lane.b32.xlu0 %v2237_v62, %s2925_s23 }
 0x322   : > { %v3921_v15 = vpop.permute.xlu1 %1510  ;;  %v3923_v13 = vpop.permute.xlu0 %1512 }
 0x324   : > { %2246 = vrot.lane.b32.xlu1 %v2238_v22, %s2925_s23  ;;  %1982 = vrot.lane.b32.xlu0 %v1976_v57, %s2926_s25  ;;  %v2019_v57 = vstv %s2663_s22  ;;  %s2934_s22 = smov 122  }
 0x325   : > { %v2022_v44 = vmul.f32 %v2019_v57, %v3169_v46 }
 0x326   : > { %v3929_v23 = vpop.permute.xlu1 %1546  ;;  %v3931_v5 = vpop.permute.xlu0 %1548 }
 0x327   : > { %v1552_v62 = vsel %vm376_vm3, %v3929_v23, %v3931_v5 }
 0x328   : > { %1984 = vrot.lane.b32.xlu1 %v1977_v29, %s2926_s25  ;;  %1986 = vrot.lane.b32.xlu0 %v1978_v19, %s2926_s25  ;;  %v1534_v29 = vadd.f32 %v1531_v41, %v1524_v47  ;;  %v1535_v19 = vadd.f32 %v1532_v60, %v1525_v30  ;;  %v2302_v41 = vmul.f32 %v2300_v55, %v4444_v14 }
 0x32a   : > { %v3937_v37 = vpop.permute.xlu1 %1550  ;;  %v3939_v52 = vpop.permute.xlu0 %1567 }
 0x32b   : > { %v1553_v22 = vsel %vm376_vm3, %v3931_v5, %v3937_v37  ;;  %v1559_v6 = vadd.f32 %v3937_v37, %v1536_v59 }
 0x32c   : > { %2263 = vrot.lane.b32.xlu1 %v2257_v45, %s2925_s23  ;;  %2265 = vrot.lane.b32.xlu0 %v2258_v32, %s2925_s23  ;;  %v1557_v32 = vadd.f32 %v1552_v62, %v1534_v29  ;;  %v1558_v33 = vadd.f32 %v1553_v22, %v1535_v19 }
 0x32e   : > { %v1570_v63 = vpop.permute.xlu1 %1569  ;;  %v3945_v35 = vpop.permute.xlu0 %1571 }
 0x32f   : > { %v1573_v45 = vsel %vm376_vm3, %v3939_v52, %v1570_v63  ;;  %v1574_v23 = vsel %vm376_vm3, %v1570_v63, %v3945_v35 }
 0x330   : > { %2267 = vrot.lane.b32.xlu1 %v2259_v7, %s2925_s23  ;;  %1722 = vrot.lane.b32.xlu0 %v1716_v49, %s2927_s28  ;;  %s2650_s23 = sld [smem:[#allocation8 + $0x58]]  ;;  %v1578_v63 = vadd.f32 %v1573_v45, %v1557_v32  ;;  %v1579_v20 = vadd.f32 %v1574_v23, %v1558_v33 }
 0x332   : > { %v3951_v1 = vpop.permute.xlu1 %1590  ;;  %v3953_v34 = vpop.permute.xlu0 %1592 }
 0x333   : > { %v1596_v37 = vsel %vm417_vm4, %v3951_v1, %v3953_v34 }
 0x334   : > { %1724 = vrot.lane.b32.xlu1 %v1717_v9, %s2927_s28  ;;  %1726 = vrot.lane.b32.xlu0 %v1718_v38, %s2927_s28  ;;  %v2020_v9 = vmul.f32 %v2019_v57, %v3161_v43  ;;  %v1580_v38 = vadd.f32 %v3945_v35, %v1559_v6  ;;  %v1601_v48 = vadd.f32 %v1596_v37, %v1578_v63  ;;  %v1834_v63 = vstv %s2654_s8  ;;  %s2689_s8 = sshll.u32 %s2907_s12, 5  ;;  %s2935_s12 = smov [#allocation9]  }
 0x335   : > { %v2303_v6 = vmul.f32 %v2300_v55, %v4445_v28 }
 0x336   : > { %v1595_v2 = vpop.permute.xlu1 %1594  ;;  %v1612_v16 = vpop.permute.xlu0 %1611  ;;  %v1736_v42 = vstv %s2650_s23  ;;  %s2680_s23 = sld [smem:[#allocation8 + $0x61]] }
 0x337   : > { %v1737_v12 = vmul.f32 %v1736_v42, %v3093_v58  ;;  %v1738_v25 = vmul.f32 %v1736_v42, %v4444_v14  ;;  %v1739_v49 = vmul.f32 %v1736_v42, %v4445_v28  ;;  %v1597_v52 = vsel %vm417_vm4, %v3953_v34, %v1595_v2 }
 0x338   : > { %2003 = vrot.lane.b32.xlu1 %v1997_v51, %s2926_s25  ;;  %2005 = vrot.lane.b32.xlu0 %v1998_v17, %s2926_s25  ;;  %v1603_v51 = vadd.f32 %v1595_v2, %v1580_v38  ;;  %v2021_v34 = vmul.f32 %v2019_v57, %v4446_v10 }
 0x33a   : > { %v1614_v3 = vpop.permute.xlu1 %1613  ;;  %v1616_v31 = vpop.permute.xlu0 %1615 }
 0x33b   : > { %v1617_v17 = vsel %vm417_vm4, %v1612_v16, %v1614_v3  ;;  %v1618_v35 = vsel %vm417_vm4, %v1614_v3, %v1616_v31 }
 0x33c   : > { %2007 = vrot.lane.b32.xlu1 %v1999_v50, %s2926_s25  ;;  %2286 = vrot.lane.b32.xlu0 %v2280_v39, %s2926_s25  ;;  %v1602_v50 = vadd.f32 %v1597_v52, %v1579_v20  ;;  %v1622_v42 = vadd.f32 %v1617_v17, %v1601_v48  ;;  %v2040_v17 = vstv %s2664_s4 }
 0x33e   : > { %v1635_v40 = vpop.permute.xlu1 %1634  ;;  %v1637_v18 = vpop.permute.xlu0 %1636  ;;  %v1623_v2 = vadd.f32 %v1618_v35, %v1602_v50  ;;  %v1837_v50 = vmul.f32 %v1834_v63, %v4445_v28 }
 0x340   : > { %2288 = vrot.lane.b32.xlu1 %v2281_v21, %s2926_s25  ;;  %2290 = vrot.lane.b32.xlu0 %v2282_v61, %s2926_s25  ;;  %v1624_v21 = vadd.f32 %v1616_v31, %v1603_v51  ;;  %v1640_v61 = vsel %vm458_vm5, %v1635_v40, %v1637_v18 }
 0x341   : > { %v1645_v31 = vadd.f32 %v1640_v61, %v1622_v42  ;;  %v2042_v61 = vmul.f32 %v2040_v17, %v4444_v14  ;;  %v2323_v42 = vstv %s2677_s6 }
 0x342   : > { %v1639_v26 = vpop.permute.xlu1 %1638  ;;  %v1656_v56 = vpop.permute.xlu0 %1655 }
 0x343   : > { %v1641_v24 = vsel %vm458_vm5, %v1637_v18, %v1639_v26  ;;  %v1647_v16 = vadd.f32 %v1639_v26, %v1624_v21  ;;  %v2301_v18 = vmul.f32 %v2300_v55, %v3093_v58  ;;  %v2041_v21 = vmul.f32 %v2040_v17, %v3093_v58 }
 0x344   : > { %1743 = vrot.lane.b32.xlu1 %v1737_v12, %s2927_s28  ;;  %1745 = vrot.lane.b32.xlu0 %v1738_v25, %s2927_s28  ;;  %v1646_v30 = vadd.f32 %v1641_v24, %v1623_v2  ;;  %v1759_v25 = vstv %s4002_s27  ;;  %s2584_s27 = sld [smem:[#allocation8 + $0x31]] }
 0x345   : > { %v1760_v45 = vmul.f32 %v1759_v25, %v3161_v43  ;;  %v1761_v37 = vmul.f32 %v1759_v25, %v4446_v10  ;;  %v1762_v52 = vmul.f32 %v1759_v25, %v3169_v46 }
 0x346   : > { %v1658_v5 = vpop.permute.xlu1 %1657  ;;  %v1660_v7 = vpop.permute.xlu0 %1659 }
 0x347   : > { %v1661_v3 = vsel %vm458_vm5, %v1656_v56, %v1658_v5  ;;  %v1662_v47 = vsel %vm458_vm5, %v1658_v5, %v1660_v7  ;;  %v1668_v60 = vadd.f32 %v1660_v7, %v1647_v16 }
 0x348   : > { %1747 = vrot.lane.b32.xlu1 %v1739_v49, %s2927_s28  ;;  %2026 = vrot.lane.b32.xlu0 %v2020_v9, %s2927_s28  ;;  %v1666_v56 = vadd.f32 %v1661_v3, %v1645_v31  ;;  %v1667_v62 = vadd.f32 %v1662_v47, %v1646_v30  ;;  %v1827_v49 = vstv %s4017_s29  ;;  %s2583_s29 = sshll.u32 %s3060_s30, 1 }
 0x349   : > { %v1830_v51 = vmul.f32 %v1827_v49, %v3169_v46  ;;  %v1828_v35 = vmul.f32 %v1827_v49, %v3161_v43  ;;  %v1829_v48 = vmul.f32 %v1827_v49, %v4446_v10  ;;  %v2138_v49 = vstv %s2668_s21  ;;  %s189_s4 = scalar_lea.vmem [#allocation9], %s2583_s29  ;;  %s2477_s21 = scalar_lea.hbm %s4368_s2, %s2689_s8 }
 0x34a   : > { %v1679_v1 = vpop.permute.xlu1 %1678  ;;  %v1681_v39 = vpop.permute.xlu0 %1680  ;;  %s2479_s6 = sshll.u32 %s189_s4, 4  ;;  %s2480_s6 = int_to_ptr.vmem [resolvable:$true] %s2479_s6 }
 0x34b   : > { %v1684_v12 = vsel %vm499_vm6, %v1679_v1, %v1681_v39  ;;  %v1835_v1 = vmul.f32 %v1834_v63, %v3093_v58  ;;  %v1840_v24 = vadd.f32 %v1837_v50, %v1830_v51 }
 0x34c   : > { %2028 = vrot.lane.b32.xlu1 %v2021_v34, %s2927_s28  ;;  %2030 = vrot.lane.b32.xlu0 %v2022_v44, %s2927_s28  ;;  %v1689_v22 = vadd.f32 %v1684_v12, %v1666_v56 }
 0x34d   : > { %v1838_v2 = vadd.f32 %v1835_v1, %v1828_v35 }
 0x34e   : > { %v1683_v40 = vpop.permute.xlu1 %1682  ;;  %v1700_v53 = vpop.permute.xlu0 %1699 }
 0x34f   : > { %v1685_v26 = vsel %vm499_vm6, %v1681_v39, %v1683_v40  ;;  %v1691_v59 = vadd.f32 %v1683_v40, %v1668_v60  ;;  %v1836_v39 = vmul.f32 %v1834_v63, %v4444_v14 }
 0x350   : > { %2307 = vrot.lane.b32.xlu1 %v2301_v18, %s2926_s25  ;;  %2309 = vrot.lane.b32.xlu0 %v2302_v41, %s2926_s25  ;;  %v1690_v57 = vadd.f32 %v1685_v26, %v1667_v62  ;;  %v2324_v18 = vmul.f32 %v2323_v42, %v3161_v43 }
 0x351   : > { %v1839_v16 = vadd.f32 %v1836_v39, %v1829_v48 }
 0x352   : > { %v1702_v29 = vpop.permute.xlu1 %1701  ;;  %v1704_v19 = vpop.permute.xlu0 %1703 }
 0x353   : > { %v1705_v23 = vsel %vm499_vm6, %v1700_v53, %v1702_v29  ;;  %v1706_v32 = vsel %vm499_vm6, %v1702_v29, %v1704_v19  ;;  %v4030_v33 = vadd.f32 %v1704_v19, %v1691_v59  ;;  %v2043_v53 = vmul.f32 %v2040_v17, %v4445_v28 }
 0x354   : > { %v4032_v5 = vadd.f32 %v1705_v23, %v1689_v22  ;;  %v4034_v7 = vadd.f32 %v1706_v32, %v1690_v57  ;;  %2311 = vrot.lane.b32.xlu1 %v2303_v6, %s2926_s25  ;;  %1766 = vrot.lane.b32.xlu0 %v1760_v45, %s2928_s7  ;;  %s2652_s25 = sld [smem:[#allocation8 + $0x5f]]  ;;  %v2325_v59 = vmul.f32 %v2323_v42, %v4446_v10  ;;  %v2131_v19 = vstv %s2667_s17 }
 0x355   : > { %v2326_v22 = vmul.f32 %v2323_v42, %v3169_v46  ;;  %v2133_v63 = vmul.f32 %v2131_v19, %v4446_v10  ;;  %v2134_v48 = vmul.f32 %v2131_v19, %v3169_v46 }
 0x356   : > { %v1851_v9 = vpop.permute.xlu1 %1850  ;;  %v1853_v38 = vpop.permute.xlu0 %1852 }
 0x357   : > { %v1856_v20 = vsel %vm376_vm3, %v1851_v9, %v1853_v38 }
 0x358   : > { %1768 = vrot.lane.b32.xlu1 %v1761_v37, %s2928_s7  ;;  %1770 = vrot.lane.b32.xlu0 %v1762_v52, %s2928_s7  ;;  %v1861_v47 = vadd.f32 %v1856_v20, %v1838_v2  ;;  %v2132_v37 = vmul.f32 %v2131_v19, %v3161_v43  ;;  %v2139_v52 = vmul.f32 %v2138_v49, %v3093_v58 }
 0x35a   : > { %v1855_v34 = vpop.permute.xlu1 %1854  ;;  %v1872_v44 = vpop.permute.xlu0 %1871  ;;  %v1780_v29 = vstv %s2652_s25 }
 0x35b   : > { %v1857_v55 = vsel %vm376_vm3, %v1853_v38, %v1855_v34  ;;  %v1863_v3 = vadd.f32 %v1855_v34, %v1840_v24  ;;  %v1781_v23 = vmul.f32 %v1780_v29, %v3093_v58  ;;  %v1782_v32 = vmul.f32 %v1780_v29, %v4444_v14 }
 0x35c   : > { %2047 = vrot.lane.b32.xlu1 %v2041_v21, %s2927_s28  ;;  %2049 = vrot.lane.b32.xlu0 %v2042_v61, %s2927_s28  ;;  %v1862_v31 = vadd.f32 %v1857_v55, %v1839_v16  ;;  %v2063_v38 = vstv %s2665_s19  ;;  %v1783_v17 = vmul.f32 %v1780_v29, %v4445_v28  ;;  %v2142_v34 = vadd.f32 %v2139_v52, %v2132_v37  ;;  %s2465_s19 = scalar_lea.sflag [#allocation6], %s3060_s30 }
 0x35d   : > { %v2064_v35 = vmul.f32 %v2063_v38, %v3161_v43  ;;  %v2141_v61 = vmul.f32 %v2138_v49, %v4445_v28  ;;  %v2140_v55 = vmul.f32 %v2138_v49, %v4444_v14  ;;  %v2065_v16 = vmul.f32 %v2063_v38, %v4446_v10 }
 0x35e   : > { %v1874_v30 = vpop.permute.xlu1 %1873  ;;  %v1876_v40 = vpop.permute.xlu0 %1875 }
 0x35f   : > { %v1877_v41 = vsel %vm376_vm3, %v1872_v44, %v1874_v30  ;;  %v1878_v60 = vsel %vm376_vm3, %v1874_v30, %v1876_v40  ;;  %v1884_v12 = vadd.f32 %v1876_v40, %v1863_v3  ;;  %v2066_v3 = vmul.f32 %v2063_v38, %v3169_v46 }
 0x360   : > { %v1882_v26 = vadd.f32 %v1877_v41, %v1861_v47  ;;  %v1883_v25 = vadd.f32 %v1878_v60, %v1862_v31  ;;  %2051 = vrot.lane.b32.xlu1 %v2043_v53, %s2927_s28  ;;  %2330 = vrot.lane.b32.xlu0 %v2324_v18, %s2927_s28  ;;  %v2144_v47 = vadd.f32 %v2141_v61, %v2134_v48  ;;  %v2344_v30 = vstv %s2678_s24  ;;  %s2831_s24 = scalar_lea.vmem %s2480_s6, 32 }
 0x361   : > { %v2143_v40 = vadd.f32 %v2140_v55, %v2133_v63  ;;  %v2347_v19 = vmul.f32 %v2344_v30, %v4445_v28  ;;  %p2832_p1 = scmp.ne.s32.totalorder %s2480_s6, %s2831_s24 }
 0x362   : > { %v2155_v56 = vpop.permute.xlu1 %2154  ;;  %v2157_v62 = vpop.permute.xlu0 %2156 }
 0x363   : > { %v2160_v57 = vsel %vm376_vm3, %v2155_v56, %v2157_v62  ;;  %p2833_p8 = pnand %p2832_p1, %p3037_p0 }
 0x364   : > { %2332 = vrot.lane.b32.xlu1 %v2325_v59, %s2927_s28  ;;  %2334 = vrot.lane.b32.xlu0 %v2326_v22, %s2927_s28  ;;  %v2165_v24 = vadd.f32 %v2160_v57, %v2142_v34  ;;  %v2084_v59 = vstv %s2666_s15  ;;  %s2835_s15 = sshll.u32 %s2935_s12, 4  ;;  %s2836_s15 = int_to_ptr.vmem [resolvable:$false] %s2835_s15 }
 0x365   : > { %v2086_v52 = vmul.f32 %v2084_v59, %v4444_v14  ;;  %v2087_v63 = vmul.f32 %v2084_v59, %v4445_v28  ;;  %p2834_p13 = pneg %p2833_p8  ;;  %p2838_p11 = scmp.lt.s32.totalorder %s2480_s6, %s2836_s15 }
 0x366   : > { %v2159_v6 = vpop.permute.xlu1 %2158  ;;  %v1895_v45 = vpop.permute.xlu0 %1894 }
 0x367   : > { %v2161_v9 = vsel %vm376_vm3, %v2157_v62, %v2159_v6  ;;  %v2167_v18 = vadd.f32 %v2159_v6, %v2144_v47  ;;  %v2085_v6 = vmul.f32 %v2084_v59, %v3093_v58 }
 0x368   : > { %1787 = vrot.lane.b32.xlu1 %v1781_v23, %s2928_s7  ;;  %1789 = vrot.lane.b32.xlu0 %v1782_v32, %s2928_s7  ;;  %v2166_v41 = vadd.f32 %v2161_v9, %v2143_v40 }
 0x36a   : > { %v1897_v20 = vpop.permute.xlu1 %1896  ;;  %v1899_v51 = vpop.permute.xlu0 %1898 }
 0x36b   : > { %v1900_v50 = vsel %vm417_vm4, %v1895_v45, %v1897_v20  ;;  %v1901_v1 = vsel %vm417_vm4, %v1897_v20, %v1899_v51  ;;  %v1907_v39 = vadd.f32 %v1899_v51, %v1884_v12  ;;  %v2367_v51 = vstv %s2679_s16  ;;  %s2837_s16 = scalar_lea.vmem %s2836_s15, 64 }
 0x36c   : > { %v1905_v44 = vadd.f32 %v1900_v50, %v1882_v26  ;;  %v1906_v21 = vadd.f32 %v1901_v1, %v1883_v25  ;;  %1791 = vrot.lane.b32.xlu1 %v1783_v17, %s2928_s7  ;;  %2070 = vrot.lane.b32.xlu0 %v2064_v35, %s2928_s7  ;;  %v2345_v26 = vmul.f32 %v2344_v30, %v3093_v58  ;;  %p2839_p2 = scmp.lt.s32.totalorder %s2837_s16, %s2831_s24 }
 0x36d   : > { %v2346_v25 = vmul.f32 %v2344_v30, %v4444_v14  ;;  %v2368_v50 = vmul.f32 %v2367_v51, %v3161_v43  ;;  %v2369_v1 = vmul.f32 %v2367_v51, %v4446_v10  ;;  %v2370_v55 = vmul.f32 %v2367_v51, %v3169_v46 }
 0x36e   : > { %v2176_v42 = vpop.permute.xlu1 %2175  ;;  %v2178_v2 = vpop.permute.xlu0 %2177  ;;  %p2840_p12 = por %p2839_p2, %p2838_p11 }
 0x36f   : > { %v2181_v31 = vsel %vm376_vm3, %v2176_v42, %v2178_v2 }
 0x370   : > { %v2186_v53 = vadd.f32 %v2181_v31, %v2165_v24  ;;  %2072 = vrot.lane.b32.xlu1 %v2065_v16, %s2928_s7  ;;  %2074 = vrot.lane.b32.xlu0 %v2066_v3, %s2928_s7  ;;  %p2841_p3 = pnand %p2840_p12, %p2834_p13 }
 0x372   : > { %v2180_v60 = vpop.permute.xlu1 %2179  ;;  %v1916_v12 = vpop.permute.xlu0 %1915 }
 0x373   : > { %v2182_v56 = vsel %vm376_vm3, %v2178_v2, %v2180_v60  ;;  %v2188_v62 = vadd.f32 %v2180_v60, %v2167_v18 }
 0x374   : > { %v2187_v22 = vadd.f32 %v2182_v56, %v2166_v41  ;;  %2351 = vrot.lane.b32.xlu1 %v2345_v26, %s2927_s28  ;;  %2353 = vrot.lane.b32.xlu0 %v2346_v25, %s2927_s28 }
 0x376   : > { %v1918_v57 = vpop.permute.xlu1 %1917  ;;  %v1920_v29 = vpop.permute.xlu0 %1919 }
 0x377   : > { %v1921_v45 = vsel %vm417_vm4, %v1916_v12, %v1918_v57  ;;  %v1922_v23 = vsel %vm417_vm4, %v1918_v57, %v1920_v29  ;;  %v1928_v32 = vadd.f32 %v1920_v29, %v1907_v39 }
 0x378   : > { %v1926_v49 = vadd.f32 %v1921_v45, %v1905_v44  ;;  %v1927_v9 = vadd.f32 %v1922_v23, %v1906_v21  ;;  %2355 = vrot.lane.b32.xlu1 %v2347_v19, %s2927_s28  ;;  %2091 = vrot.lane.b32.xlu0 %v2085_v6, %s2928_s7  ;;  %v2388_v44 = vstv %s2680_s23  ;;  %s2932_s28 = smov 124  }
 0x379   : > { %v2389_v42 = vmul.f32 %v2388_v44, %v3093_v58  ;;  %v2391_v18 = vmul.f32 %v2388_v44, %v4445_v28 }
 0x37a   : > { %v2199_v38 = vpop.permute.xlu1 %2198  ;;  %v2201_v37 = vpop.permute.xlu0 %2200 }
 0x37b   : > { %v2204_v20 = vsel %vm417_vm4, %v2199_v38, %v2201_v37 }
 0x37c   : > { %v2209_v17 = vadd.f32 %v2204_v20, %v2186_v53  ;;  %2093 = vrot.lane.b32.xlu1 %v2086_v52, %s2928_s7  ;;  %2095 = vrot.lane.b32.xlu0 %v2087_v63, %s2928_s7  ;;  %v2390_v53 = vmul.f32 %v2388_v44, %v4444_v14 }
 0x37e   : > { %v2203_v35 = vpop.permute.xlu1 %2202  ;;  %v1939_v48 = vpop.permute.xlu0 %1938 }
 0x37f   : > { %v2205_v39 = vsel %vm417_vm4, %v2201_v37, %v2203_v35  ;;  %v2211_v34 = vadd.f32 %v2203_v35, %v2188_v62 }
 0x380   : > { %v2210_v21 = vadd.f32 %v2205_v39, %v2187_v22  ;;  %2374 = vrot.lane.b32.xlu1 %v2368_v50, %s2928_s7  ;;  %2376 = vrot.lane.b32.xlu0 %v2369_v1, %s2928_s7 }
 0x382   : > { %v1941_v61 = vpop.permute.xlu1 %1940  ;;  %v1943_v24 = vpop.permute.xlu0 %1942 }
 0x383   : > { %v1944_v2 = vsel %vm458_vm5, %v1939_v48, %v1941_v61  ;;  %v1945_v16 = vsel %vm458_vm5, %v1941_v61, %v1943_v24  ;;  %v1951_v3 = vadd.f32 %v1943_v24, %v1928_v32 }
 0x384   : > { %v1949_v47 = vadd.f32 %v1944_v2, %v1926_v49  ;;  %v1950_v31 = vadd.f32 %v1945_v16, %v1927_v9  ;;  %2378 = vrot.lane.b32.xlu1 %v2370_v55, %s2928_s7  ;;  %2395 = vrot.lane.b32.xlu0 %v2389_v42, %s2928_s7 }
 0x386   : > { %v2220_v30 = vpop.permute.xlu1 %2219  ;;  %v2222_v40 = vpop.permute.xlu0 %2221 }
 0x387   : > { %v2225_v46 = vsel %vm417_vm4, %v2220_v30, %v2222_v40 }
 0x388   : > { %v2230_v41 = vadd.f32 %v2225_v46, %v2209_v17  ;;  %2397 = vrot.lane.b32.xlu1 %v2390_v53, %s2928_s7  ;;  %2399 = vrot.lane.b32.xlu0 %v2391_v18, %s2928_s7  ;;  %s2933_s7 = smov 123  }
 0x38a   : > { %v2224_v60 = vpop.permute.xlu1 %2223  ;;  %v1960_v12 = vpop.permute.xlu0 %1959 }
 0x38b   : > { %v2226_v26 = vsel %vm417_vm4, %v2222_v40, %v2224_v60  ;;  %v2232_v25 = vadd.f32 %v2224_v60, %v2211_v34 }
 0x38c   : > { %v2231_v56 = vadd.f32 %v2226_v26, %v2210_v21 }
 0x38e   : > { %v1962_v62 = vpop.permute.xlu1 %1961  ;;  %v1964_v59 = vpop.permute.xlu0 %1963 }
 0x38f   : > { %v1965_v22 = vsel %vm458_vm5, %v1960_v12, %v1962_v62  ;;  %v1966_v57 = vsel %vm458_vm5, %v1962_v62, %v1964_v59  ;;  %v1972_v28 = vadd.f32 %v1964_v59, %v1951_v3 }
 0x390   : > { %v1970_v29 = vadd.f32 %v1965_v22, %v1949_v47  ;;  %v1971_v19 = vadd.f32 %v1966_v57, %v1950_v31 }
 0x392   : > { %v2243_v6 = vpop.permute.xlu1 %2242  ;;  %v2245_v45 = vpop.permute.xlu0 %2244 }
 0x393   : > { %v2248_v23 = vsel %vm458_vm5, %v2243_v6, %v2245_v45 }
 0x394   : > { %v2253_v32 = vadd.f32 %v2248_v23, %v2230_v41 }
 0x396   : > { %v2247_v49 = vpop.permute.xlu1 %2246  ;;  %v1983_v9 = vpop.permute.xlu0 %1982 }
 0x397   : > { %v2249_v38 = vsel %vm458_vm5, %v2245_v45, %v2247_v49  ;;  %v2255_v37 = vadd.f32 %v2247_v49, %v2232_v25 }
 0x398   : > { %v2254_v52 = vadd.f32 %v2249_v38, %v2231_v56 }
 0x39a   : > { %v1985_v63 = vpop.permute.xlu1 %1984  ;;  %v1987_v20 = vpop.permute.xlu0 %1986 }
 0x39b   : > { %v1988_v51 = vsel %vm499_vm6, %v1983_v9, %v1985_v63  ;;  %v1989_v17 = vsel %vm499_vm6, %v1985_v63, %v1987_v20  ;;  %v4127_v35 = vadd.f32 %v1987_v20, %v1972_v28 }
 0x39c   : > { %v4129_v48 = vadd.f32 %v1988_v51, %v1970_v29  ;;  %v4131_v50 = vadd.f32 %v1989_v17, %v1971_v19 }
 0x39e   : > { %v2264_v1 = vpop.permute.xlu1 %2263  ;;  %v2266_v39 = vpop.permute.xlu0 %2265 }
 0x39f   : > { %v2269_v34 = vsel %vm458_vm5, %v2264_v1, %v2266_v39 }
 0x3a0   : > { %v2274_v44 = vadd.f32 %v2269_v34, %v2253_v32 }
 0x3a2   : > { %v2268_v21 = vpop.permute.xlu1 %2267  ;;  %v1723_v61 = vpop.permute.xlu0 %1722 }
 0x3a3   : > { %v2270_v24 = vsel %vm458_vm5, %v2266_v39, %v2268_v21  ;;  %v2276_v55 = vadd.f32 %v2268_v21, %v2255_v37 }
 0x3a4   : > { %v4135_v42 = vadd.f32 %v2270_v24, %v2254_v52 }
 0x3a6   : > { %v1725_v2 = vpop.permute.xlu1 %1724  ;;  %v1727_v16 = vpop.permute.xlu0 %1726 }
 0x3a7   : > { %v1728_v49 = vsel %vm540_vm7, %v1723_v61, %v1725_v2  ;;  %v1729_v63 = vsel %vm540_vm7, %v1725_v2, %v1727_v16  ;;  %v1735_v17 = vadd.f32 %v1727_v16, %v4030_v33 }
 0x3a8   : > { %v1733_v38 = vadd.f32 %v1728_v49, %v4032_v5  ;;  %v1734_v39 = vadd.f32 %v1729_v63, %v4034_v7 }
 0x3aa   : > { %v2004_v3 = vpop.permute.xlu1 %2003  ;;  %v2006_v47 = vpop.permute.xlu0 %2005 }
 0x3ae   : > { %v4137_v31 = vpop.permute.xlu1 %2007  ;;  %v2287_v30 = vpop.permute.xlu0 %2286 }
 0x3af   : > { %v2010_v49 = vsel %vm499_vm6, %v2006_v47, %v4137_v31 }
 0x3b2   : > { %v4139_v40 = vpop.permute.xlu1 %2288  ;;  %v4141_v53 = vpop.permute.xlu0 %2290 }
 0x3b3   : > { %v2292_v18 = vsel %vm499_vm6, %v2287_v30, %v4139_v40  ;;  %v4146_v46 = vadd.f32 %v4141_v53, %v2276_v55 }
 0x3b4   : > { %v4148_v41 = vadd.f32 %v2292_v18, %v2274_v44 }
 0x3b6   : > { %v1744_v60 = vpop.permute.xlu1 %1743  ;;  %v1746_v12 = vpop.permute.xlu0 %1745 }
 0x3b7   : > { %v1749_v9 = vsel %vm540_vm7, %v1744_v60, %v1746_v12 }
 0x3b8   : > { %v1754_v51 = vadd.f32 %v1749_v9, %v1733_v38 }
 0x3ba   : > { %v1748_v26 = vpop.permute.xlu1 %1747  ;;  %v2027_v25 = vpop.permute.xlu0 %2026 }
 0x3bb   : > { %v1750_v1 = vsel %vm540_vm7, %v1746_v12, %v1748_v26  ;;  %v1756_v61 = vadd.f32 %v1748_v26, %v1735_v17 }
 0x3bc   : > { %v1755_v55 = vadd.f32 %v1750_v1, %v1734_v39 }
 0x3be   : > { %v2029_v56 = vpop.permute.xlu1 %2028  ;;  %v2031_v62 = vpop.permute.xlu0 %2030 }
 0x3bf   : > { %v2032_v38 = vsel %vm540_vm7, %v2027_v25, %v2029_v56  ;;  %v2033_v63 = vsel %vm540_vm7, %v2029_v56, %v2031_v62  ;;  %v2016_v25 = vadd.f32 %v4137_v31, %v4127_v35 }
 0x3c2   : > { %v4150_v59 = vpop.permute.xlu1 %2307  ;;  %v4152_v22 = vpop.permute.xlu0 %2309 }
 0x3c3   : > { %v2313_v35 = vsel %vm499_vm6, %v4150_v59, %v4152_v22 }
 0x3c6   : > { %v4154_v57 = vpop.permute.xlu1 %2311  ;;  %v1767_v28 = vpop.permute.xlu0 %1766 }
 0x3c7   : > { %v2314_v31 = vsel %vm499_vm6, %v4152_v22, %v4154_v57 }
 0x3ca   : > { %v1769_v29 = vpop.permute.xlu1 %1768  ;;  %v1771_v19 = vpop.permute.xlu0 %1770 }
 0x3cb   : > { %v1772_v20 = vsel %vm581_vm8, %v1767_v28, %v1769_v29  ;;  %v1773_v5 = vsel %vm581_vm8, %v1769_v29, %v1771_v19  ;;  %v1779_v2 = vadd.f32 %v1771_v19, %v1756_v61  ;;  %v2009_v29 = vsel %vm499_vm6, %v2004_v3, %v2006_v47 }
 0x3cc   : > { %v1777_v34 = vadd.f32 %v1772_v20, %v1754_v51  ;;  %v1778_v18 = vadd.f32 %v1773_v5, %v1755_v55  ;;  %v2014_v20 = vadd.f32 %v2009_v29, %v4129_v48  ;;  %v2015_v51 = vadd.f32 %v2010_v49, %v4131_v50 }
 0x3cd   : > { %v2039_v48 = vadd.f32 %v2031_v62, %v2016_v25 }
 0x3ce   : > { %v2048_v6 = vpop.permute.xlu1 %2047  ;;  %v2050_v45 = vpop.permute.xlu0 %2049  ;;  %v2037_v39 = vadd.f32 %v2032_v38, %v2014_v20 }
 0x3cf   : > { %v2053_v17 = vsel %vm540_vm7, %v2048_v6, %v2050_v45 }
 0x3d0   : > { %v2058_v56 = vadd.f32 %v2053_v17, %v2037_v39 }
 0x3d2   : > { %v2052_v23 = vpop.permute.xlu1 %2051  ;;  %v4156_v32 = vpop.permute.xlu0 %2330 }
 0x3d3   : > { %v2054_v1 = vsel %vm540_vm7, %v2050_v45, %v2052_v23  ;;  %v2293_v45 = vsel %vm499_vm6, %v4139_v40, %v4141_v53 }
 0x3d4   : > { %v2298_v62 = vadd.f32 %v2293_v45, %v4135_v42 }
 0x3d6   : > { %v4161_v37 = vpop.permute.xlu1 %2332  ;;  %v4163_v52 = vpop.permute.xlu0 %2334 }
 0x3d7   : > { %v2336_v53 = vsel %vm540_vm7, %v4156_v32, %v4161_v37  ;;  %v2337_v59 = vsel %vm540_vm7, %v4161_v37, %v4163_v52  ;;  %v2320_v37 = vadd.f32 %v4154_v57, %v4146_v46  ;;  %v351_v57 = vstv %s349_s18 }
 0x3d8   : > { %v352_v25 = vmul.f32 %v351_v57, %v3161_v43  ;;  %v4451_v43 = vld [vmem:[#allocation18_spill] sm:$0xff] }
 0x3d9   : > { %v2343_v20 = vadd.f32 %v4163_v52, %v2320_v37  ;;  %v356_v52 = vstv %s2584_s27 }
 0x3da   : > { %v1788_v44 = vpop.permute.xlu1 %1787  ;;  %v1790_v21 = vpop.permute.xlu0 %1789 }
 0x3db   : > { %v1793_v24 = vsel %vm581_vm8, %v1788_v44, %v1790_v21 }
 0x3dc   : > { %v1798_v30 = vadd.f32 %v1793_v24, %v1777_v34  ;;  %v2038_v34 = vadd.f32 %v2033_v63, %v2015_v51 }
 0x3de   : > { %v1792_v60 = vpop.permute.xlu1 %1791  ;;  %1810 = vrot.lane.b32.xlu1 %v1798_v30, %s2932_s28  ;;  %v2071_v33 = vpop.permute.xlu0 %2070  ;;  %v2059_v61 = vadd.f32 %v2054_v1, %v2038_v34 }
 0x3df   : > { %v1794_v16 = vsel %vm581_vm8, %v1790_v21, %v1792_v60  ;;  %v1800_v12 = vadd.f32 %v1792_v60, %v1779_v2  ;;  %v2060_v2 = vadd.f32 %v2052_v23, %v2039_v48  ;;  %v2318_v23 = vadd.f32 %v2313_v35, %v4148_v41  ;;  %v4447_v48 = vld [vmem:[#allocation47_spill] sm:$0xff] }
 0x3e0   : > { %v1799_v7 = vadd.f32 %v1794_v16, %v1778_v18 }
 0x3e2   : > { %v2073_v28 = vpop.permute.xlu1 %2072  ;;  %1812 = vrot.lane.b32.xlu0 %v1799_v7, %s2932_s28  ;;  %1814 = vrot.lane.b32.xlu1 %v1800_v12, %s2932_s28  ;;  %v2075_v26 = vpop.permute.xlu0 %2074  ;;  %v2319_v12 = vadd.f32 %v2314_v31, %v2298_v62  ;;  %v4453_v31 = vld [vmem:[#allocation49_spill] sm:$0xff]  ;;  %v4454_v62 = vld [vmem:[#allocation38_spill] sm:$0xff] }
 0x3e3   : > { %v2076_v47 = vsel %vm581_vm8, %v2071_v33, %v2073_v28  ;;  %v2077_v21 = vsel %vm581_vm8, %v2073_v28, %v2075_v26  ;;  %v2083_v33 = vadd.f32 %v2075_v26, %v2060_v2  ;;  %v2341_v28 = vadd.f32 %v2336_v53, %v2318_v23  ;;  %v4456_v23 = vld [vmem:[#allocation22_spill] sm:$0xff] }
 0x3e4   : > { %v2081_v5 = vadd.f32 %v2076_v47, %v2058_v56  ;;  %v2082_v50 = vadd.f32 %v2077_v21, %v2059_v61  ;;  %v2342_v26 = vadd.f32 %v2337_v59, %v2319_v12  ;;  %v353_v56 = vmul.f32 %v351_v57, %v4446_v10  ;;  %v4457_v12 = vld [vmem:[#allocation21_spill] sm:$0xff] }
 0x3e5   : > { %v357_v61 = vmul.f32 %v356_v52, %v3093_v58 }
 0x3e6   : > { %v2352_v9 = vpop.permute.xlu1 %2351  ;;  %v2354_v19 = vpop.permute.xlu0 %2353 }
 0x3e7   : > { %v2357_v42 = vsel %vm540_vm7, %v2352_v9, %v2354_v19 }
 0x3e8   : > { %v2362_v63 = vadd.f32 %v2357_v42, %v2341_v28  ;;  %v4458_v42 = vld [vmem:[#allocation23_spill] sm:$0xff] }
 0x3ea   : > { %v2356_v3 = vpop.permute.xlu1 %2355  ;;  %v2092_v44 = vpop.permute.xlu0 %2091 }
 0x3eb   : > { %v2358_v7 = vsel %vm540_vm7, %v2354_v19, %v2356_v3  ;;  %v2364_v34 = vadd.f32 %v2356_v3, %v2343_v20  ;;  %v358_v3 = vmul.f32 %v356_v52, %v4444_v14  ;;  %v4462_v20 = vld [vmem:[#allocation24_spill] sm:$0xff] }
 0x3ec   : > { %v2363_v41 = vadd.f32 %v2358_v7, %v2342_v26  ;;  %v438_v7 = vsel %vm417_vm4, %v4456_v23, %v4458_v42 }
 0x3ee   : > { %v2094_v24 = vpop.permute.xlu1 %2093  ;;  %v2096_v6 = vpop.permute.xlu0 %2095 }
 0x3ef   : > { %v2097_v55 = vsel %vm581_vm8, %v2092_v44, %v2094_v24  ;;  %v2098_v30 = vsel %vm581_vm8, %v2094_v24, %v2096_v6  ;;  %v2104_v22 = vadd.f32 %v2096_v6, %v2083_v33  ;;  %v359_v24 = vadd.f32 %v357_v61, %v352_v25  ;;  %v4449_v6 = vld [vmem:[#allocation37_spill] sm:$0xff]  ;;  %v4468_v25 = vld [vmem:[#allocation26_spill] sm:$0xff] }
 0x3f0   : > { %v2102_v18 = vadd.f32 %v2097_v55, %v2081_v5  ;;  %v2103_v60 = vadd.f32 %v2098_v30, %v2082_v50  ;;  %v4448_v5 = vld [vmem:[#allocation36_spill] sm:$0xff]  ;;  %v378_v45 = vsel %vm376_vm3, %v4447_v48, %v4449_v6  ;;  %v360_v55 = vadd.f32 %v358_v3, %v353_v56  ;;  %v4469_v56 = vld [vmem:[#allocation29_spill] sm:$0xff]  ;;  %v4470_v3 = vld [vmem:[#allocation31_spill] sm:$0xff] }
 0x3f1   : > { %v377_v50 = vsel %vm376_vm3, %v4448_v5, %v4447_v48  ;;  %v418_v33 = vsel %vm417_vm4, %v4454_v62, %v4453_v31  ;;  %v519_v61 = vsel %vm499_vm6, %v4469_v56, %v4468_v25  ;;  %v520_v48 = vsel %vm499_vm6, %v4468_v25, %v4470_v3  ;;  %v4472_v6 = vld [vmem:[#allocation44_spill] sm:$0xff] }
 0x3f2   : > { %v2375_v16 = vpop.permute.xlu1 %2374  ;;  %2114 = vrot.lane.b32.xlu0 %v2102_v18, %s2933_s7  ;;  %2116 = vrot.lane.b32.xlu1 %v2103_v60, %s2933_s7  ;;  %v2377_v40 = vpop.permute.xlu0 %2376  ;;  %v381_v30 = vadd.f32 %v377_v50, %v359_v24  ;;  %v382_v2 = vadd.f32 %v378_v45, %v360_v55  ;;  %v4450_v18 = vld [vmem:[#allocation20_spill] sm:$0xff]  ;;  %v4452_v60 = vld [vmem:[#allocation19_spill] sm:$0xff]  ;;  %v4473_v55 = vld [vmem:[#allocation45_spill] sm:$0xff] }
 0x3f3   : > { %v2380_v38 = vsel %vm581_vm8, %v2375_v16, %v2377_v40  ;;  %v396_v10 = vsel %vm376_vm3, %v4451_v43, %v4450_v18  ;;  %v397_v58 = vsel %vm376_vm3, %v4450_v18, %v4452_v60  ;;  %v4455_v16 = vld [vmem:[#allocation39_spill] sm:$0xff]  ;;  %v4471_v24 = vld [vmem:[#allocation52_spill] sm:$0xff]  ;;  %v4474_v43 = vlaneseq }
 0x3f4   : > { %v2385_v51 = vadd.f32 %v2380_v38, %v2362_v63  ;;  %v400_v14 = vadd.f32 %v396_v10, %v381_v30  ;;  %v401_v35 = vadd.f32 %v397_v58, %v382_v2  ;;  %v541_v45 = vsel %vm540_vm7, %v4472_v6, %v4471_v24  ;;  %v4475_v60 = vld [vmem:[#allocation28_spill] sm:$0xff] }
 0x3f5   : > { %v542_v30 = vsel %vm540_vm7, %v4471_v24, %v4473_v55  ;;  %v323_v10 = vand.u32 127, %v4474_v43  ;;  %v4476_v58 = vld [vmem:[#allocation32_spill] sm:$0xff]  ;;  %vm2120_vm3 = vcmask 1006592  }
 0x3f6   : > { %v2379_v29 = vpop.permute.xlu1 %2378  ;;  %2118 = vrot.lane.b32.xlu0 %v2104_v22, %s2933_s7  ;;  %v2396_v49 = vpop.permute.xlu0 %2395  ;;  %v422_v53 = vadd.f32 %v418_v33, %v400_v14  ;;  %v437_v22 = vsel %vm417_vm4, %v4457_v12, %v4456_v23  ;;  %v560_v14 = vsel %vm540_vm7, %v4476_v58, %v4475_v60  ;;  %v4480_v23 = vld [vmem:[#allocation48_spill] sm:$0xff] }
 0x3f7   : > { %v2381_v32 = vsel %vm581_vm8, %v2377_v40, %v2379_v29  ;;  %v2387_v21 = vadd.f32 %v2379_v29, %v2364_v34  ;;  %v419_v40 = vsel %vm417_vm4, %v4453_v31, %v4455_v16  ;;  %v4459_v29 = vld [vmem:[#allocation50_spill] sm:$0xff]  ;;  %v4465_v34 = vld [vmem:[#allocation51_spill] sm:$0xff]  ;;  %v4478_v16 = vld [vmem:[#allocation53_spill] sm:$0xff] }
 0x3f8   : > { %v2386_v9 = vadd.f32 %v2381_v32, %v2363_v41  ;;  %v423_v59 = vadd.f32 %v419_v40, %v401_v35  ;;  %v441_v28 = vadd.f32 %v437_v22, %v422_v53  ;;  %v4461_v32 = vld [vmem:[#allocation41_spill] sm:$0xff]  ;;  %v4479_v40 = vld [vmem:[#allocation46_spill] sm:$0xff]  ;;  %v583_v12 = vsel %vm581_vm8, %v4478_v16, %v4480_v23 }
 0x3f9   : > { %v460_v37 = vsel %vm458_vm5, %v4459_v29, %v4461_v32  ;;  %v4477_v35 = vld [vmem:[#allocation33_spill] sm:$0xff]  ;;  %v582_v53 = vsel %vm581_vm8, %v4479_v40, %v4478_v16 }
 0x3fa   : > { %v2398_v17 = vpop.permute.xlu1 %2397  ;;  %v2400_v19 = vpop.permute.xlu0 %2399  ;;  %v442_v26 = vadd.f32 %v438_v7, %v423_v59  ;;  %v561_v31 = vsel %vm540_vm7, %v4475_v60, %v4477_v35  ;;  %v324_v59 = vadd.s32 128, %v323_v10  ;;  %v329_v7 = vand.u32 15, %v323_v10 }
 0x3fb   : > { %v2401_v1 = vsel %vm581_vm8, %v2396_v49, %v2398_v17  ;;  %v2402_v39 = vsel %vm581_vm8, %v2398_v17, %v2400_v19  ;;  %v2408_v46 = vadd.f32 %v2400_v19, %v2387_v21  ;;  %v4460_v49 = vld [vmem:[#allocation40_spill] sm:$0xff]  ;;  %v4464_v17 = vld [vmem:[#allocation27_spill] sm:$0xff] }
 0x3fc   : > { %v2406_v44 = vadd.f32 %v2401_v1, %v2385_v51  ;;  %v2407_v47 = vadd.f32 %v2402_v39, %v2386_v9  ;;  %v459_v38 = vsel %vm458_vm5, %v4460_v49, %v4459_v29  ;;  %v464_v41 = vadd.f32 %v460_v37, %v442_v26  ;;  %v4463_v51 = vld [vmem:[#allocation25_spill] sm:$0xff]  ;;  %v4467_v21 = vld [vmem:[#allocation43_spill] sm:$0xff]  ;;  %v4481_v49 = vld [vmem:[#allocation30_spill] sm:$0xff] }
 0x3fd   : > { %v463_v63 = vadd.f32 %v459_v38, %v441_v28  ;;  %v478_v9 = vsel %vm458_vm5, %v4463_v51, %v4462_v20  ;;  %v479_v19 = vsel %vm458_vm5, %v4462_v20, %v4464_v17  ;;  %v4285_v26 = vand.u32 15, %v324_v59  ;;  %v4482_v38 = vld [vmem:[#allocation34_spill] sm:$0xff]  ;;  %v4483_v37 = vld [vmem:[#allocation35_spill] sm:$0xff] }
 0x3fe   : > { %2418 = vrot.lane.b32.xlu1 %v2406_v44, %s2934_s22  ;;  %2420 = vrot.lane.b32.xlu0 %v2407_v47, %s2934_s22  ;;  %v483_v39 = vadd.f32 %v479_v19, %v464_v41  ;;  %v4466_v44 = vld [vmem:[#allocation42_spill] sm:$0xff]  ;;  %v601_v32 = vsel %vm581_vm8, %v4482_v38, %v4481_v49  ;;  %vm897_vm10 = vcmp.ge.s32.totalorder %v329_v7, 2  ;;  %v913_v41 = vsel %vm912_vm9, %v3761_v54, %v3773_v36 }
 0x3ff   : > { %v482_v1 = vadd.f32 %v478_v9, %v463_v63  ;;  %v500_v47 = vsel %vm499_vm6, %v4466_v44, %v4465_v34  ;;  %v602_v63 = vsel %vm581_vm8, %v4481_v49, %v4483_v37  ;;  %vm898_vm12 = vcmp.ge.s32.totalorder %v4285_v26, 2 }
 0x400   : > { %v914_v51 = vsel %vm912_vm9, %v3773_v36, %v3758_v11  ;;  %vm607_vm13 = vcmp.ge.s32.totalorder %v329_v7, 3  ;;  %vm1201_vm14 = vcmp.ge.s32.totalorder %v329_v7, 1  ;;  %v1217_v19 = vsel %vm1216_vm11, %v3779_v0, %v3768_v4 }
 0x401   : > { %v504_v57 = vadd.f32 %v500_v47, %v482_v1  ;;  %vm608_vm15 = vcmp.ge.s32.totalorder %v4285_v26, 3  ;;  %v917_v1 = vsel %vm897_vm10, %v913_v41, 0.0  ;;  %v1221_v44 = vsel %vm1201_vm14, %v1217_v19, 0.0 }
 0x402   : > { %2422 = vrot.lane.b32.xlu1 %v2408_v46, %s2934_s22  ;;  %v501_v46 = vsel %vm499_vm6, %v4465_v34, %v4467_v21  ;;  %vm1803_vm4 = vcmp.lt.s32.totalorder %v329_v7, 15  ;;  %vm1202_vm5 = vcmp.ge.s32.totalorder %v4285_v26, 1  ;;  %v1218_v0 = vsel %vm1216_vm11, %v3768_v4, %v3765_v27 }
 0x403   : > { %v505_v52 = vadd.f32 %v501_v46, %v483_v39  ;;  %v523_v5 = vadd.f32 %v519_v61, %v504_v57  ;;  %v918_v39 = vsel %vm898_vm12, %v914_v51, 0.0  ;;  %v1515_v57 = vsel %vm1514_vm2, %v3915_v8, %v3921_v15 }
 0x404   : > { %vm2107_vm6 = vcmp.lt.s32.totalorder %v329_v7, 14  ;;  %v1222_v3 = vsel %vm1202_vm5, %v1218_v0, 0.0  ;;  %vm1804_vm7 = vcmp.lt.s32.totalorder %v4285_v26, 15  ;;  %v1516_v27 = vsel %vm1514_vm2, %v3921_v15, %v3923_v13 }
 0x405   : > { %v524_v50 = vadd.f32 %v520_v48, %v505_v52  ;;  %v545_v2 = vadd.f32 %v541_v45, %v523_v5  ;;  %vm2424_vm8 = vcmask 998400   ;;  %vm2108_vm9 = vcmp.lt.s32.totalorder %v4285_v26, 14 }
 0x406   : > { %vm2411_vm10 = vcmp.lt.s32.totalorder %v329_v7, 13  ;;  %vm2412_vm11 = vcmp.lt.s32.totalorder %v4285_v26, 13 }
 0x407   : > { %v546_v18 = vadd.f32 %v542_v30, %v524_v50  ;;  %v564_v62 = vadd.f32 %v560_v14, %v545_v2 }
 0x409   : > { %v565_v33 = vadd.f32 %v561_v31, %v546_v18  ;;  %v586_v42 = vadd.f32 %v582_v53, %v564_v62 }
 0x40b   : > { %v587_v28 = vadd.f32 %v583_v12, %v565_v33  ;;  %v605_v20 = vadd.f32 %v601_v32, %v586_v42  ;;  %v4484_v42 = vld [vmem:[#allocation14_spill] sm:$0xff] }
 0x40d   : > { %v606_v17 = vadd.f32 %v602_v63, %v587_v28  ;;  %v613_v34 = vsel %vm607_vm13, %v605_v20, 0.0 }
 0x40e   : > { %v919_v36 = vadd.f32 %v917_v1, %v613_v34 }
 0x40f   : > { %v614_v11 = vsel %vm608_vm15, %v606_v17, 0.0 }
 0x410   : > { %v920_v46 = vadd.f32 %v918_v39, %v614_v11  ;;  %v1223_v52 = vadd.f32 %v1221_v44, %v919_v36 }
 0x412   : > { %v1519_v48 = vadd.f32 %v1515_v57, %v1223_v52  ;;  %v1224_v50 = vadd.f32 %v1222_v3, %v920_v46 }
 0x414   : > { %v1520_v30 = vadd.f32 %v1516_v27, %v1224_v50 }
 0x450   : > { %v1811_v22 = vpop.permute.xlu1 %1810 }
 0x454   : > { %v1813_v29 = vpop.permute.xlu0 %1812  ;;  %v1815_v9 = vpop.permute.xlu1 %1814 }
 0x455   : > { %v1817_v21 = vsel %vm1816_vm0, %v1811_v22, %v1813_v29  ;;  %v1818_v5 = vsel %vm1816_vm0, %v1813_v29, %v1815_v9 }
 0x456   : > { %v1821_v56 = vsel %vm1803_vm4, %v1817_v21, 0.0  ;;  %v1822_v6 = vsel %vm1804_vm7, %v1818_v5, 0.0 }
 0x457   : > { %v1823_v8 = vadd.f32 %v1821_v56, %v1519_v48  ;;  %v1824_v60 = vadd.f32 %v1822_v6, %v1520_v30 }
 0x464   : > { %v2115_v54 = vpop.permute.xlu0 %2114  ;;  %v2117_v47 = vpop.permute.xlu1 %2116 }
 0x465   : > { %v2121_v25 = vsel %vm2120_vm3, %v2115_v54, %v2117_v47 }
 0x466   : > { %v2125_v4 = vsel %vm2107_vm6, %v2121_v25, 0.0 }
 0x467   : > { %v2127_v2 = vadd.f32 %v2125_v4, %v1823_v8 }
 0x468   : > { %v2119_v61 = vpop.permute.xlu0 %2118 }
 0x469   : > { %v2122_v24 = vsel %vm2120_vm3, %v2117_v47, %v2119_v61 }
 0x46a   : > { %v2126_v43 = vsel %vm2108_vm9, %v2122_v24, 0.0 }
 0x46b   : > { %v2128_v13 = vadd.f32 %v2126_v43, %v1824_v60 }
 0x470   : > { %v2419_v45 = vpop.permute.xlu1 %2418  ;;  %v2421_v55 = vpop.permute.xlu0 %2420 }
 0x471   : > { %v2425_v18 = vsel %vm2424_vm8, %v2419_v45, %v2421_v55 }
 0x472   : > { %v2429_v10 = vsel %vm2411_vm10, %v2425_v18, 0.0 }
 0x473   : > { %v2431_v58 = vadd.f32 %v2429_v10, %v2127_v2 }
 0x474   : > { %v2423_v15 = vpop.permute.xlu1 %2422 }
 0x475   : > { %v2681_v14 = vmul.f32 -1.442695, %v2431_v58  ;;  %v2426_v35 = vsel %vm2424_vm8, %v2421_v55, %v2423_v15 }
 0x476   : > { %v2430_v31 = vsel %vm2412_vm11, %v2426_v35, 0.0 }
 0x477   : > { %2780 = vpow2.f32 %v2681_v14  ;;  %v2432_v62 = vadd.f32 %v2430_v31, %v2128_v13 }
 0x479   : > { %v2682_v33 = vmul.f32 -1.442695, %v2432_v62 }
 0x47b   : > { %2782 = vpow2.f32 %v2682_v33 }
 0x484   : > { %v2781_v16 = vpop.eup %2780 }
 0x485   : > { %v2439_v40 = vadd.f32 1.0, %v2781_v16 }
 0x487   : > { %2784 = vrcp.f32 %v2439_v40 }
 0x488   : > { %v2783_v53 = vpop.eup %2782 }
 0x489   : > { %v2440_v59 = vadd.f32 1.0, %v2783_v53 }
 0x48b   : > { %2786 = vrcp.f32 %v2440_v59 }
 0x494   : > { %v2785_v23 = vpop.eup %2784 }
 0x498   : > { %v2787_v12 = vpop.eup %2786 }
 0x499   : > { %v2447_v22 = vcombine.low %v2785_v23, %v2787_v12 }
 0x49b   : > { %v2454_v7 = vrot.slane %v2447_v22, %v4484_v42 }
 0x49d   : > { %v2461_v28 = vrot.slane %v2454_v7, %v4484_v42 }
 0x49f   : > { %2463 = vst.msk [vmem:[%s189_s4] sm:$0x3] %vm3073_vm1, %v2461_v28 }
 0x4a0   : > { %2844 = shalt.err (!%p2841_p3)
}
 0x4a1   : > { %s2845_s23 = scalar_lea.hbm %s2477_s21, 32  ;;  %s2849_s7 = scalar_lea.hbm %s4368_s2, 64 }
 0x4a2   : > { %p2846_p5 = scmp.ne.s32.totalorder %s2477_s21, %s2845_s23  ;;  %p2850_p6 = scmp.lt.s32.totalorder %s2477_s21, %s4368_s2 }
 0x4a3   : > { %p2851_p9 = scmp.lt.s32.totalorder %s2849_s7, %s2845_s23 }
 0x4a4   : > { %p2847_p7 = pnand %p2846_p5, %p3037_p0 }
 0x4a5   : > { %p2852_p4 = por %p2851_p9, %p2850_p6 }
 0x4a6   : > { %p2848_p10 = pneg %p2847_p7 }
 0x4a8   : > { %p2853_p1 = pnand %p2852_p4, %p2848_p10 }
 0x4aa   : > { %2856 = shalt.err (!%p2853_p1)
}
 0x4ab   : > { %2696 = dma.vmem_to_hbm [thread:$0]  (%p3037_p0), %s2480_s6, 32, %s2477_s21, %s2465_s19  }
 0x4ac PF: > { %s2491_s27 = sand.u32 1, %s2895_s9   ;;  %p4486_p8 = scmp.ne.s32.totalorder %s4395_s20, 0 }
 0x4ad   : > { %p4487_p13 = scmp.ge.s32.totalorder %s2915_s14, 2  ;;  %s2492_s29 = scalar_lea.sflag [#allocation6], %s2491_s27 }
 0x4af   : > { %p2707_p11 = pnand %p4487_p13, %p4486_p8 }
 0x4b1   : > { %p2708_p2 = pneg %p2707_p11 }
 0x4b3   : > { %2890 = dma.done.wait (%p2708_p2), %s2492_s29, 32  }
 0x4b4   : > { %2892 = vsyncadd (%p2708_p2), %s2492_s29, 4294967264  ;;  %s19_s14 = sadd.s32 1, %s2915_s14   ;;  %s4488_s9 = smov %s2899_s10 }
 0x4b5   : > { %p16_p12 = scmp.ge.s32.totalorder %s19_s14, 4   ;;  %s4489_s10 = smov %s2903_s11 }
 0x4b6   : > { %s4490_s11 = smov %s3043_s5  ;;  %s4491_s12 = smov %s2911_s13 }
 0x4b7   : > { %s4492_s13 = smov %s4494_s26  ;;  %18 = sbr.rel (!%p16_p12) target bundleno = 7 (0x7), region = 86 }
 0x4bc   :  { %2497 = vsyncpa [#allocation5], 1 }
 0x4bd   :  { %2499 = vsyncpa [#allocation5 + $0x1], 1 }
 0x4be   :  { %2500 = vsyncpa [#allocation6], 1 }
 0x4bf   :  { %2502 = vsyncpa [#allocation6 + $0x1], 1 }
 0x4c0   :  { %2503 = vsyncpa [#allocation7], 1 }
 0x4c1   :  { %2505 = vsyncpa [#allocation7 + $0x1], 1 }

</bundles_post_ra>
